<compile_context>
chip_gen: v7x
topology: tpu7x:2x2x1
jax: 0.10.0
libtpu: 0.0.40
codegen_flags: <defaults>
</compile_context>

<pallas_src>
import functools

import jax
import jax.numpy as jnp
from jax import lax
from jax.experimental import pallas as pl
from jax.experimental.pallas import tpu as pltpu


def _round_up(x, m):
    return ((x + m - 1) // m) * m


def _pick_row_tile(qh, qwb):
    # Target ~256 GEMM rows (th * qwb) per grid step; th is always a multiple of 8
    # (sublane-aligned row slicing, friendly M for the MXU).
    tgt = max(1, 256 // max(qwb, 1))
    th = min(_round_up(qh, 8), max(8, 8 * (tgt // 8)))
    return th


def _vmem_block_bytes(shape, itemsize):
    # Conservative (8, 128)-tiled VMEM footprint of one block.
    s = list(shape)
    if len(s) >= 1:
        s[-1] = _round_up(s[-1], 128)
    if len(s) >= 2:
        s[-2] = _round_up(s[-2], 8)
    t = itemsize
    for d in s:
        t *= d
    return t


# ----------------------------- Pallas kernel ---------------------------------
def _convt_phase_kernel(x_ref, w_ref, b_ref, o_ref, patch_ref, *,
                        th, qwb, wpack, win_w, noff_h, cin, kdim):
    """One (batch image, output-row tile) step of the phase-merged transposed conv.

    x_ref:     (1, Hp, WB, wpack*Cin)  undilated, halo-padded, width-blocked input (bf16)
    w_ref:     (kdim, NP)              phase-merged + width-packed taps (bf16),
                                       kdim = noff_h*win_w*Cin, NP = wpack*sh*sw*Cout
    b_ref:     (1, NP)                 packed bias row (f32)
    o_ref:     (1, th*QWB, NP)         packed output tile (bf16, lane-dense real data)
    patch_ref: (th, QWB, kdim)         VMEM scratch for the folded im2col patch (bf16)
    """
    r = pl.program_id(1)
    row0 = pl.multiple_of(r * th, 8)

    # Assemble the im2col patch: every kernel tap (and the width-packing window) is folded
    # into the contraction dim, so the whole tile is ONE MXU GEMM.
    for a in range(noff_h):
        rows = pl.ds(row0 + a, th)
        for j in range(win_w):
            col = (a * win_w + j) * cin
            patch_ref[:, :, col:col + cin] = x_ref[
                0, rows, pl.ds(j // wpack, qwb), pl.ds((j % wpack) * cin, cin)]

    patch = patch_ref[...].reshape(th * qwb, kdim)
    acc = jnp.dot(patch, w_ref[...], preferred_element_type=jnp.float32)
    acc = acc + b_ref[...]                     # f32 bias add on the VPU (v5e-safe)
    o_ref[0] = acc.astype(o_ref.dtype)


# ------------------------------ forward pass ---------------------------------
def quantized_conv_transpose2d_forward(
        x, pca_weights, pca_components, weight_mean, bias, *,
        in_channels, out_channels, kernel_size, stride, padding,
        output_padding, dilation, groups=1):
    # TODO(synk): grouped transposed conv (groups > 1) not implemented.
    assert groups == 1
    kh, kw = kernel_size
    sh, sw = stride
    pad_h, pad_w = padding
    oph, opw = output_padding
    dil_h, dil_w = dilation
    n, cin, h, w_in = x.shape
    assert cin == in_channels
    f32 = jnp.float32
    bf16 = jnp.bfloat16

    # --- 1) restore weights (tiny matmul; emulate the module's fp16 storage) in XLA -----
    w_flat = (pca_weights.astype(f32) @ pca_components.astype(f32)
              + weight_mean.astype(f32)[None, :]).astype(jnp.float16)
    w_full = w_flat.astype(f32).reshape(in_channels, out_channels, kh, kw)

    # --- 2) static sub-pixel (phase) bookkeeping -----------------------------------------
    # conv_transpose == stride-1 correlation of the zero-dilated/padded input with the
    # spatially flipped kernel.  Output row oy = sh*qy + py only touches REAL input rows
    # qy + off for taps ih with (py + ih*dil_h - lo_h) % sh == 0 (same along W), so the
    # kernel reads the undilated input directly and never materializes the dilated image.
    lo_h = dil_h * (kh - 1) - pad_h
    lo_w = dil_w * (kw - 1) - pad_w
    oh = (h - 1) * sh - 2 * pad_h + dil_h * (kh - 1) + oph + 1
    ow = (w_in - 1) * sw - 2 * pad_w + dil_w * (kw - 1) + opw + 1

    taps_h = [(py, (py + ih * dil_h - lo_h) // sh, ih)
              for py in range(sh) for ih in range(kh)
              if (py + ih * dil_h - lo_h) % sh == 0]
    taps_w = [(px, (px + iw * dil_w - lo_w) // sw, iw)
              for px in range(sw) for iw in range(kw)
              if (px + iw * dil_w - lo_w) % sw == 0]
    min_oh_off = min(o for _, o, _ in taps_h)
    max_oh_off = max(o for _, o, _ in taps_h)
    min_ow_off = min(o for _, o, _ in taps_w)
    max_ow_off = max(o for _, o, _ in taps_w)
    noff_h = max_oh_off - min_oh_off + 1
    noff_w = max_ow_off - min_ow_off + 1

    qh = -(-oh // sh)                       # undilated output grid (one point = sh*sw pixels)
    qw = -(-ow // sw)
    cp = sh * sw * out_channels             # all output phases of one grid point

    # Width packing: make the stored last dim >= 128 lanes of REAL data (no zero padding
    # of Cout).  For production channel counts (cp >= 128) this degenerates to wpack == 1.
    wpack = 1 if cp >= 128 else min(64, -(-128 // cp))
    qw_pad = _round_up(qw, wpack)
    qwb = qw_pad // wpack
    win_w = wpack + noff_w - 1              # input cols feeding one packed output block
    npk = wpack * cp                        # packed N == stored lane width
    kdim = noff_h * win_w * cin             # folded contraction depth

    th = _pick_row_tile(qh, qwb)
    assert th % 8 == 0
    qh_pad = _round_up(qh, th)

    # --- 3) phase-merged, width-packed weight (static scatter of the real taps) ---------
    w_exp = jnp.zeros((kdim, npk), f32)
    for (py, oh_off, ih) in taps_h:
        a = oh_off - min_oh_off
        for (px, ow_off, iw) in taps_w:
            b = ow_off - min_ow_off
            tap = w_full[:, :, kh - 1 - ih, kw - 1 - iw]        # (cin, cout), flipped
            for dq in range(wpack):
                r0 = (a * win_w + (b + dq)) * cin
                c0 = dq * cp + (py * sw + px) * out_channels
                w_exp = w_exp.at[r0:r0 + cin, c0:c0 + out_channels].set(tap)
    w_exp = w_exp.astype(bf16)

    if bias is None:
        b_row = jnp.zeros((1, npk), f32)
    else:
        b_row = jnp.tile(bias.astype(f32), sh * sw * wpack).reshape(1, npk)

    # --- 4) undilated input: NHWC, small halo pad, width-blocked for packed reads -------
    x_nhwc = x.astype(bf16).transpose(0, 2, 3, 1)
    hp = qh_pad + noff_h - 1
    wp = qw_pad + noff_w - 1
    x_sh = lax.pad(x_nhwc, jnp.zeros((), bf16),
                   ((0, 0, 0),
                    (-min_oh_off, hp - h + min_oh_off, 0),
                    (-min_ow_off, wp - w_in + min_ow_off, 0),
                    (0, 0, 0)))
    wp_pad = _round_up(wp, wpack)
    if wp_pad > wp:
        x_sh = jnp.pad(x_sh, ((0, 0), (0, 0), (0, wp_pad - wp), (0, 0)))
    wb = wp_pad // wpack
    x_pack = x_sh.reshape(n, hp, wb, wpack * cin)
    assert x_pack.shape == (n, hp, wb, wpack * cin)

    # --- 5) fused transposed-conv kernel -------------------------------------------------
    kernel = functools.partial(_convt_phase_kernel, th=th, qwb=qwb, wpack=wpack,
                               win_w=win_w, noff_h=noff_h, cin=cin, kdim=kdim)
    grid = (n, qh_pad // th)

    vmem_need = (2 * (_vmem_block_bytes((1, hp, wb, wpack * cin), 2)
                      + _vmem_block_bytes((kdim, npk), 2)
                      + _vmem_block_bytes((1, npk), 4)
                      + _vmem_block_bytes((1, th * qwb, npk), 2))
                 + _vmem_block_bytes((th, qwb, kdim), 2)
                 + 2 * th * qwb * npk * 4)
    vmem_limit = int(min(96 * 2**20, max(32 * 2**20, 2 * vmem_need)))

    flops = 2 * n * qh_pad * qwb * kdim * npk
    bytes_accessed = int(x_pack.size * 2 + w_exp.size * 2 + b_row.size * 4
                         + n * qh_pad * qwb * npk * 2)

    out_packed = pl.pallas_call(
        kernel,
        out_shape=jax.ShapeDtypeStruct((n, qh_pad * qwb, npk), bf16),
        grid_spec=pltpu.PrefetchScalarGridSpec(
            num_scalar_prefetch=0,
            grid=grid,
            in_specs=[
                # Whole (undilated) image for one batch element; its block index is
                # constant across the row-tile axis, so it is DMA'd only when b changes.
                # TODO(synk): for very large decoder resolutions switch this to a halo'd
                # row-band (manual double-buffered make_async_copy on a pl.ANY ref).
                pl.BlockSpec((1, hp, wb, wpack * cin), lambda bi, ri: (bi, 0, 0, 0)),
                # Weight / bias blocks are grid-constant (fetched once; could additionally
                # be single-buffered via pipeline_mode=pl.Buffered(1) to halve their VMEM).
                pl.BlockSpec((kdim, npk), lambda bi, ri: (0, 0)),
                pl.BlockSpec((1, npk), lambda bi, ri: (0, 0)),
            ],
            out_specs=pl.BlockSpec((1, th * qwb, npk), lambda bi, ri: (bi, ri, 0)),
            scratch_shapes=[pltpu.VMEM((th, qwb, kdim), bf16)],
        ),
        compiler_params=pltpu.CompilerParams(
            dimension_semantics=("parallel", "parallel"),
            vmem_limit_bytes=vmem_limit),
        cost_estimate=pl.CostEstimate(flops=flops, transcendentals=0,
                                      bytes_accessed=bytes_accessed),
    )(x_pack, w_exp, b_row)

    # --- 6) depth-to-space epilogue: unpack phases, crop padding, back to NCHW fp16 -----
    y = out_packed.reshape(n, qh_pad, qwb, wpack, sh, sw, out_channels)
    y = y.transpose(0, 1, 4, 2, 3, 5, 6)            # (n, qh, sh, qwb, wpack, sw, cout)
    y = y.reshape(n, qh_pad * sh, qw_pad * sw, out_channels)
    y = y[:, :oh, :ow, :].transpose(0, 3, 1, 2)
    return y.astype(jnp.float16)


# --------------------------------- demo --------------------------------------
if __name__ == "__main__":
    key = jax.random.PRNGKey(0)
    k1, k2, k3, k4, k5 = jax.random.split(key, 5)

    in_channels, out_channels = 4, 4
    kernel_size = (4, 4)
    stride = (2, 2)
    padding = (1, 1)
    output_padding = (0, 0)
    dilation = (1, 1)
    n_components = 3
    kdim_pca = out_channels * kernel_size[0] * kernel_size[1]

    # synthetic PCA decomposition of the conv-transpose weight (fp16 like the buffers)
    pca_weights = jax.random.normal(k1, (in_channels, n_components)).astype(jnp.float16)
    pca_components = jax.random.normal(k2, (n_components, kdim_pca)).astype(jnp.float16)
    weight_mean = (0.05 * jax.random.normal(k3, (kdim_pca,))).astype(jnp.float16)
    bias = (0.1 * jax.random.normal(k4, (out_channels,))).astype(jnp.float16)

    x = jax.random.normal(k5, (2, in_channels, 16, 16)).astype(jnp.float16)

    out = quantized_conv_transpose2d_forward(
        x, pca_weights, pca_components, weight_mean, bias,
        in_channels=in_channels, out_channels=out_channels,
        kernel_size=kernel_size, stride=stride, padding=padding,
        output_padding=output_padding, dilation=dilation, groups=1)
    out = jax.block_until_ready(out)

    assert out.shape == (2, out_channels, 32, 32), out.shape
    assert out.dtype == jnp.float16

    # cross-check against XLA's transposed conv (same fp16-restored weight, f32 compute)
    w_flat_ref = (pca_weights.astype(jnp.float32) @ pca_components.astype(jnp.float32)
                  + weight_mean.astype(jnp.float32)[None, :])
    w_restored = w_flat_ref.astype(jnp.float16).astype(jnp.float32).reshape(
        in_channels, out_channels, *kernel_size)
    w_oihw = jnp.flip(w_restored, axis=(2, 3)).transpose(1, 0, 2, 3)
    ref = lax.conv_general_dilated(
        x.astype(jnp.float32), w_oihw, window_strides=(1, 1),
        padding=[(dilation[0] * (kernel_size[0] - 1) - padding[0],
                  dilation[0] * (kernel_size[0] - 1) - padding[0] + output_padding[0]),
                 (dilation[1] * (kernel_size[1] - 1) - padding[1],
                  dilation[1] * (kernel_size[1] - 1) - padding[1] + output_padding[1])],
        lhs_dilation=stride, rhs_dilation=dilation,
        dimension_numbers=("NCHW", "OIHW", "NCHW"))
    ref = ref + bias.astype(jnp.float32).reshape(1, -1, 1, 1)

    # scale-aware error check (bf16 MXU operands vs the f32 reference)
    err = float(jnp.max(jnp.abs(out.astype(jnp.float32) - ref)))
    scale = float(jnp.max(jnp.abs(ref)))
    assert err / scale < 2e-2, (err, scale)

    print("KERNEL_OK")
</pallas_src>

<mosaic_0001>
module attributes {stable_mosaic.version = 11 : i64} {
  func.func @_convt_phase_kernel(%arg0: i32, %arg1: i32, %arg2: memref<1x18x3x32xbf16, #tpu.memory_space<vmem>>, %arg3: memref<120x128xbf16, #tpu.memory_space<vmem>>, %arg4: memref<1x128xf32, #tpu.memory_space<vmem>>, %arg5: memref<1x32x128xbf16, #tpu.memory_space<vmem>>, %arg6: memref<16x2x120xbf16, #tpu.memory_space<vmem>>) attributes {dimension_semantics = [#tpu.dimension_semantics<parallel>, #tpu.dimension_semantics<parallel>], iteration_bounds = array<i64: 2, 1>, scalar_prefetch = 0 : i64, scratch_operands = 1 : i64, tpu.core_type = #tpu.core_type<tc>, window_params = [{transform_indices = @transform_0, window_bounds = array<i64: 1, 18, 3, 32>}, {pipeline_mode = #tpu.pipeline_mode<synchronous>, transform_indices = @transform_1, window_bounds = array<i64: 120, 128>}, {pipeline_mode = #tpu.pipeline_mode<synchronous>, transform_indices = @transform_2, window_bounds = array<i64: 1, 128>}, {transform_indices = @transform_3, window_bounds = array<i64: 1, 32, 128>}]} {
    %c16_i32 = arith.constant 16 : i32
    %0 = arith.muli %arg1, %c16_i32 : i32
    %1 = tpu.assume_multiple %0, 8 : i32
    %c0_i32 = arith.constant 0 : i32
    %2 = arith.addi %1, %c0_i32 : i32
    %c0 = arith.constant 0 : index
    %3 = arith.index_cast %2 : i32 to index
    %c0_0 = arith.constant 0 : index
    %c0_1 = arith.constant 0 : index
    %4 = vector.load %arg2[%c0, %3, %c0_0, %c0_1] : memref<1x18x3x32xbf16, #tpu.memory_space<vmem>>, vector<1x16x2x4xbf16>
    %5 = vector.shape_cast %4 : vector<1x16x2x4xbf16> to vector<16x2x4xbf16>
    %c0_2 = arith.constant 0 : index
    %c0_3 = arith.constant 0 : index
    %c0_4 = arith.constant 0 : index
    %6 = vector.load %arg6[%c0_2, %c0_3, %c0_4] : memref<16x2x120xbf16, #tpu.memory_space<vmem>>, vector<16x2x4xbf16>
    tpu.vector_store %arg6[%c0_2, %c0_3, %c0_4], %5 {strides = array<i32>} : memref<16x2x120xbf16, #tpu.memory_space<vmem>>, vector<16x2x4xbf16>,
    %c0_5 = arith.constant 0 : index
    %7 = arith.index_cast %2 : i32 to index
    %c0_6 = arith.constant 0 : index
    %c4 = arith.constant 4 : index
    %8 = vector.load %arg2[%c0_5, %7, %c0_6, %c4] : memref<1x18x3x32xbf16, #tpu.memory_space<vmem>>, vector<1x16x2x4xbf16>
    %9 = vector.shape_cast %8 : vector<1x16x2x4xbf16> to vector<16x2x4xbf16>
    %c0_7 = arith.constant 0 : index
    %c0_8 = arith.constant 0 : index
    %c4_9 = arith.constant 4 : index
    %10 = vector.load %arg6[%c0_7, %c0_8, %c4_9] : memref<16x2x120xbf16, #tpu.memory_space<vmem>>, vector<16x2x4xbf16>
    tpu.vector_store %arg6[%c0_7, %c0_8, %c4_9], %9 {strides = array<i32>} : memref<16x2x120xbf16, #tpu.memory_space<vmem>>, vector<16x2x4xbf16>,
    %c0_10 = arith.constant 0 : index
    %11 = arith.index_cast %2 : i32 to index
    %c0_11 = arith.constant 0 : index
    %c8 = arith.constant 8 : index
    %12 = vector.load %arg2[%c0_10, %11, %c0_11, %c8] : memref<1x18x3x32xbf16, #tpu.memory_space<vmem>>, vector<1x16x2x4xbf16>
    %13 = vector.shape_cast %12 : vector<1x16x2x4xbf16> to vector<16x2x4xbf16>
    %c0_12 = arith.constant 0 : index
    %c0_13 = arith.constant 0 : index
    %c8_14 = arith.constant 8 : index
    %14 = vector.load %arg6[%c0_12, %c0_13, %c8_14] : memref<16x2x120xbf16, #tpu.memory_space<vmem>>, vector<16x2x4xbf16>
    tpu.vector_store %arg6[%c0_12, %c0_13, %c8_14], %13 {strides = array<i32>} : memref<16x2x120xbf16, #tpu.memory_space<vmem>>, vector<16x2x4xbf16>,
    %c0_15 = arith.constant 0 : index
    %15 = arith.index_cast %2 : i32 to index
    %c0_16 = arith.constant 0 : index
    %c12 = arith.constant 12 : index
    %16 = vector.load %arg2[%c0_15, %15, %c0_16, %c12] : memref<1x18x3x32xbf16, #tpu.memory_space<vmem>>, vector<1x16x2x4xbf16>
    %17 = vector.shape_cast %16 : vector<1x16x2x4xbf16> to vector<16x2x4xbf16>
    %c0_17 = arith.constant 0 : index
    %c0_18 = arith.constant 0 : index
    %c12_19 = arith.constant 12 : index
    %18 = vector.load %arg6[%c0_17, %c0_18, %c12_19] : memref<16x2x120xbf16, #tpu.memory_space<vmem>>, vector<16x2x4xbf16>
    tpu.vector_store %arg6[%c0_17, %c0_18, %c12_19], %17 {strides = array<i32>} : memref<16x2x120xbf16, #tpu.memory_space<vmem>>, vector<16x2x4xbf16>,
    %c0_20 = arith.constant 0 : index
    %19 = arith.index_cast %2 : i32 to index
    %c0_21 = arith.constant 0 : index
    %c16 = arith.constant 16 : index
    %20 = vector.load %arg2[%c0_20, %19, %c0_21, %c16] : memref<1x18x3x32xbf16, #tpu.memory_space<vmem>>, vector<1x16x2x4xbf16>
    %21 = vector.shape_cast %20 : vector<1x16x2x4xbf16> to vector<16x2x4xbf16>
    %c0_22 = arith.constant 0 : index
    %c0_23 = arith.constant 0 : index
    %c16_24 = arith.constant 16 : index
    %22 = vector.load %arg6[%c0_22, %c0_23, %c16_24] : memref<16x2x120xbf16, #tpu.memory_space<vmem>>, vector<16x2x4xbf16>
    tpu.vector_store %arg6[%c0_22, %c0_23, %c16_24], %21 {strides = array<i32>} : memref<16x2x120xbf16, #tpu.memory_space<vmem>>, vector<16x2x4xbf16>,
    %c0_25 = arith.constant 0 : index
    %23 = arith.index_cast %2 : i32 to index
    %c0_26 = arith.constant 0 : index
    %c20 = arith.constant 20 : index
    %24 = vector.load %arg2[%c0_25, %23, %c0_26, %c20] : memref<1x18x3x32xbf16, #tpu.memory_space<vmem>>, vector<1x16x2x4xbf16>
    %25 = vector.shape_cast %24 : vector<1x16x2x4xbf16> to vector<16x2x4xbf16>
    %c0_27 = arith.constant 0 : index
    %c0_28 = arith.constant 0 : index
    %c20_29 = arith.constant 20 : index
    %26 = vector.load %arg6[%c0_27, %c0_28, %c20_29] : memref<16x2x120xbf16, #tpu.memory_space<vmem>>, vector<16x2x4xbf16>
    tpu.vector_store %arg6[%c0_27, %c0_28, %c20_29], %25 {strides = array<i32>} : memref<16x2x120xbf16, #tpu.memory_space<vmem>>, vector<16x2x4xbf16>,
    %c0_30 = arith.constant 0 : index
    %27 = arith.index_cast %2 : i32 to index
    %c0_31 = arith.constant 0 : index
    %c24 = arith.constant 24 : index
    %28 = vector.load %arg2[%c0_30, %27, %c0_31, %c24] : memref<1x18x3x32xbf16, #tpu.memory_space<vmem>>, vector<1x16x2x4xbf16>
    %29 = vector.shape_cast %28 : vector<1x16x2x4xbf16> to vector<16x2x4xbf16>
    %c0_32 = arith.constant 0 : index
    %c0_33 = arith.constant 0 : index
    %c24_34 = arith.constant 24 : index
    %30 = vector.load %arg6[%c0_32, %c0_33, %c24_34] : memref<16x2x120xbf16, #tpu.memory_space<vmem>>, vector<16x2x4xbf16>
    tpu.vector_store %arg6[%c0_32, %c0_33, %c24_34], %29 {strides = array<i32>} : memref<16x2x120xbf16, #tpu.memory_space<vmem>>, vector<16x2x4xbf16>,
    %c0_35 = arith.constant 0 : index
    %31 = arith.index_cast %2 : i32 to index
    %c0_36 = arith.constant 0 : index
    %c28 = arith.constant 28 : index
    %32 = vector.load %arg2[%c0_35, %31, %c0_36, %c28] : memref<1x18x3x32xbf16, #tpu.memory_space<vmem>>, vector<1x16x2x4xbf16>
    %33 = vector.shape_cast %32 : vector<1x16x2x4xbf16> to vector<16x2x4xbf16>
    %c0_37 = arith.constant 0 : index
    %c0_38 = arith.constant 0 : index
    %c28_39 = arith.constant 28 : index
    %34 = vector.load %arg6[%c0_37, %c0_38, %c28_39] : memref<16x2x120xbf16, #tpu.memory_space<vmem>>, vector<16x2x4xbf16>
    tpu.vector_store %arg6[%c0_37, %c0_38, %c28_39], %33 {strides = array<i32>} : memref<16x2x120xbf16, #tpu.memory_space<vmem>>, vector<16x2x4xbf16>,
    %c0_40 = arith.constant 0 : index
    %35 = arith.index_cast %2 : i32 to index
    %c1 = arith.constant 1 : index
    %c0_41 = arith.constant 0 : index
    %36 = vector.load %arg2[%c0_40, %35, %c1, %c0_41] : memref<1x18x3x32xbf16, #tpu.memory_space<vmem>>, vector<1x16x2x4xbf16>
    %37 = vector.shape_cast %36 : vector<1x16x2x4xbf16> to vector<16x2x4xbf16>
    %c0_42 = arith.constant 0 : index
    %c0_43 = arith.constant 0 : index
    %c32 = arith.constant 32 : index
    %38 = vector.load %arg6[%c0_42, %c0_43, %c32] : memref<16x2x120xbf16, #tpu.memory_space<vmem>>, vector<16x2x4xbf16>
    tpu.vector_store %arg6[%c0_42, %c0_43, %c32], %37 {strides = array<i32>} : memref<16x2x120xbf16, #tpu.memory_space<vmem>>, vector<16x2x4xbf16>,
    %c0_44 = arith.constant 0 : index
    %39 = arith.index_cast %2 : i32 to index
    %c1_45 = arith.constant 1 : index
    %c4_46 = arith.constant 4 : index
    %40 = vector.load %arg2[%c0_44, %39, %c1_45, %c4_46] : memref<1x18x3x32xbf16, #tpu.memory_space<vmem>>, vector<1x16x2x4xbf16>
    %41 = vector.shape_cast %40 : vector<1x16x2x4xbf16> to vector<16x2x4xbf16>
    %c0_47 = arith.constant 0 : index
    %c0_48 = arith.constant 0 : index
    %c36 = arith.constant 36 : index
    %42 = vector.load %arg6[%c0_47, %c0_48, %c36] : memref<16x2x120xbf16, #tpu.memory_space<vmem>>, vector<16x2x4xbf16>
    tpu.vector_store %arg6[%c0_47, %c0_48, %c36], %41 {strides = array<i32>} : memref<16x2x120xbf16, #tpu.memory_space<vmem>>, vector<16x2x4xbf16>,
    %c1_i32 = arith.constant 1 : i32
    %43 = arith.addi %1, %c1_i32 : i32
    %c0_49 = arith.constant 0 : index
    %44 = arith.index_cast %43 : i32 to index
    %c0_50 = arith.constant 0 : index
    %c0_51 = arith.constant 0 : index
    %45 = vector.load %arg2[%c0_49, %44, %c0_50, %c0_51] : memref<1x18x3x32xbf16, #tpu.memory_space<vmem>>, vector<1x16x2x4xbf16>
    %46 = vector.shape_cast %45 : vector<1x16x2x4xbf16> to vector<16x2x4xbf16>
    %c0_52 = arith.constant 0 : index
    %c0_53 = arith.constant 0 : index
    %c40 = arith.constant 40 : index
    %47 = vector.load %arg6[%c0_52, %c0_53, %c40] : memref<16x2x120xbf16, #tpu.memory_space<vmem>>, vector<16x2x4xbf16>
    tpu.vector_store %arg6[%c0_52, %c0_53, %c40], %46 {strides = array<i32>} : memref<16x2x120xbf16, #tpu.memory_space<vmem>>, vector<16x2x4xbf16>,
    %c0_54 = arith.constant 0 : index
    %48 = arith.index_cast %43 : i32 to index
    %c0_55 = arith.constant 0 : index
    %c4_56 = arith.constant 4 : index
    %49 = vector.load %arg2[%c0_54, %48, %c0_55, %c4_56] : memref<1x18x3x32xbf16, #tpu.memory_space<vmem>>, vector<1x16x2x4xbf16>
    %50 = vector.shape_cast %49 : vector<1x16x2x4xbf16> to vector<16x2x4xbf16>
    %c0_57 = arith.constant 0 : index
    %c0_58 = arith.constant 0 : index
    %c44 = arith.constant 44 : index
    %51 = vector.load %arg6[%c0_57, %c0_58, %c44] : memref<16x2x120xbf16, #tpu.memory_space<vmem>>, vector<16x2x4xbf16>
    tpu.vector_store %arg6[%c0_57, %c0_58, %c44], %50 {strides = array<i32>} : memref<16x2x120xbf16, #tpu.memory_space<vmem>>, vector<16x2x4xbf16>,
    %c0_59 = arith.constant 0 : index
    %52 = arith.index_cast %43 : i32 to index
    %c0_60 = arith.constant 0 : index
    %c8_61 = arith.constant 8 : index
    %53 = vector.load %arg2[%c0_59, %52, %c0_60, %c8_61] : memref<1x18x3x32xbf16, #tpu.memory_space<vmem>>, vector<1x16x2x4xbf16>
    %54 = vector.shape_cast %53 : vector<1x16x2x4xbf16> to vector<16x2x4xbf16>
    %c0_62 = arith.constant 0 : index
    %c0_63 = arith.constant 0 : index
    %c48 = arith.constant 48 : index
    %55 = vector.load %arg6[%c0_62, %c0_63, %c48] : memref<16x2x120xbf16, #tpu.memory_space<vmem>>, vector<16x2x4xbf16>
    tpu.vector_store %arg6[%c0_62, %c0_63, %c48], %54 {strides = array<i32>} : memref<16x2x120xbf16, #tpu.memory_space<vmem>>, vector<16x2x4xbf16>,
    %c0_64 = arith.constant 0 : index
    %56 = arith.index_cast %43 : i32 to index
    %c0_65 = arith.constant 0 : index
    %c12_66 = arith.constant 12 : index
    %57 = vector.load %arg2[%c0_64, %56, %c0_65, %c12_66] : memref<1x18x3x32xbf16, #tpu.memory_space<vmem>>, vector<1x16x2x4xbf16>
    %58 = vector.shape_cast %57 : vector<1x16x2x4xbf16> to vector<16x2x4xbf16>
    %c0_67 = arith.constant 0 : index
    %c0_68 = arith.constant 0 : index
    %c52 = arith.constant 52 : index
    %59 = vector.load %arg6[%c0_67, %c0_68, %c52] : memref<16x2x120xbf16, #tpu.memory_space<vmem>>, vector<16x2x4xbf16>
    tpu.vector_store %arg6[%c0_67, %c0_68, %c52], %58 {strides = array<i32>} : memref<16x2x120xbf16, #tpu.memory_space<vmem>>, vector<16x2x4xbf16>,
    %c0_69 = arith.constant 0 : index
    %60 = arith.index_cast %43 : i32 to index
    %c0_70 = arith.constant 0 : index
    %c16_71 = arith.constant 16 : index
    %61 = vector.load %arg2[%c0_69, %60, %c0_70, %c16_71] : memref<1x18x3x32xbf16, #tpu.memory_space<vmem>>, vector<1x16x2x4xbf16>
    %62 = vector.shape_cast %61 : vector<1x16x2x4xbf16> to vector<16x2x4xbf16>
    %c0_72 = arith.constant 0 : index
    %c0_73 = arith.constant 0 : index
    %c56 = arith.constant 56 : index
    %63 = vector.load %arg6[%c0_72, %c0_73, %c56] : memref<16x2x120xbf16, #tpu.memory_space<vmem>>, vector<16x2x4xbf16>
    tpu.vector_store %arg6[%c0_72, %c0_73, %c56], %62 {strides = array<i32>} : memref<16x2x120xbf16, #tpu.memory_space<vmem>>, vector<16x2x4xbf16>,
    %c0_74 = arith.constant 0 : index
    %64 = arith.index_cast %43 : i32 to index
    %c0_75 = arith.constant 0 : index
    %c20_76 = arith.constant 20 : index
    %65 = vector.load %arg2[%c0_74, %64, %c0_75, %c20_76] : memref<1x18x3x32xbf16, #tpu.memory_space<vmem>>, vector<1x16x2x4xbf16>
    %66 = vector.shape_cast %65 : vector<1x16x2x4xbf16> to vector<16x2x4xbf16>
    %c0_77 = arith.constant 0 : index
    %c0_78 = arith.constant 0 : index
    %c60 = arith.constant 60 : index
    %67 = vector.load %arg6[%c0_77, %c0_78, %c60] : memref<16x2x120xbf16, #tpu.memory_space<vmem>>, vector<16x2x4xbf16>
    tpu.vector_store %arg6[%c0_77, %c0_78, %c60], %66 {strides = array<i32>} : memref<16x2x120xbf16, #tpu.memory_space<vmem>>, vector<16x2x4xbf16>,
    %c0_79 = arith.constant 0 : index
    %68 = arith.index_cast %43 : i32 to index
    %c0_80 = arith.constant 0 : index
    %c24_81 = arith.constant 24 : index
    %69 = vector.load %arg2[%c0_79, %68, %c0_80, %c24_81] : memref<1x18x3x32xbf16, #tpu.memory_space<vmem>>, vector<1x16x2x4xbf16>
    %70 = vector.shape_cast %69 : vector<1x16x2x4xbf16> to vector<16x2x4xbf16>
    %c0_82 = arith.constant 0 : index
    %c0_83 = arith.constant 0 : index
    %c64 = arith.constant 64 : index
    %71 = vector.load %arg6[%c0_82, %c0_83, %c64] : memref<16x2x120xbf16, #tpu.memory_space<vmem>>, vector<16x2x4xbf16>
    tpu.vector_store %arg6[%c0_82, %c0_83, %c64], %70 {strides = array<i32>} : memref<16x2x120xbf16, #tpu.memory_space<vmem>>, vector<16x2x4xbf16>,
    %c0_84 = arith.constant 0 : index
    %72 = arith.index_cast %43 : i32 to index
    %c0_85 = arith.constant 0 : index
    %c28_86 = arith.constant 28 : index
    %73 = vector.load %arg2[%c0_84, %72, %c0_85, %c28_86] : memref<1x18x3x32xbf16, #tpu.memory_space<vmem>>, vector<1x16x2x4xbf16>
    %74 = vector.shape_cast %73 : vector<1x16x2x4xbf16> to vector<16x2x4xbf16>
    %c0_87 = arith.constant 0 : index
    %c0_88 = arith.constant 0 : index
    %c68 = arith.constant 68 : index
    %75 = vector.load %arg6[%c0_87, %c0_88, %c68] : memref<16x2x120xbf16, #tpu.memory_space<vmem>>, vector<16x2x4xbf16>
    tpu.vector_store %arg6[%c0_87, %c0_88, %c68], %74 {strides = array<i32>} : memref<16x2x120xbf16, #tpu.memory_space<vmem>>, vector<16x2x4xbf16>,
    %c0_89 = arith.constant 0 : index
    %76 = arith.index_cast %43 : i32 to index
    %c1_90 = arith.constant 1 : index
    %c0_91 = arith.constant 0 : index
    %77 = vector.load %arg2[%c0_89, %76, %c1_90, %c0_91] : memref<1x18x3x32xbf16, #tpu.memory_space<vmem>>, vector<1x16x2x4xbf16>
    %78 = vector.shape_cast %77 : vector<1x16x2x4xbf16> to vector<16x2x4xbf16>
    %c0_92 = arith.constant 0 : index
    %c0_93 = arith.constant 0 : index
    %c72 = arith.constant 72 : index
    %79 = vector.load %arg6[%c0_92, %c0_93, %c72] : memref<16x2x120xbf16, #tpu.memory_space<vmem>>, vector<16x2x4xbf16>
    tpu.vector_store %arg6[%c0_92, %c0_93, %c72], %78 {strides = array<i32>} : memref<16x2x120xbf16, #tpu.memory_space<vmem>>, vector<16x2x4xbf16>,
    %c0_94 = arith.constant 0 : index
    %80 = arith.index_cast %43 : i32 to index
    %c1_95 = arith.constant 1 : index
    %c4_96 = arith.constant 4 : index
    %81 = vector.load %arg2[%c0_94, %80, %c1_95, %c4_96] : memref<1x18x3x32xbf16, #tpu.memory_space<vmem>>, vector<1x16x2x4xbf16>
    %82 = vector.shape_cast %81 : vector<1x16x2x4xbf16> to vector<16x2x4xbf16>
    %c0_97 = arith.constant 0 : index
    %c0_98 = arith.constant 0 : index
    %c76 = arith.constant 76 : index
    %83 = vector.load %arg6[%c0_97, %c0_98, %c76] : memref<16x2x120xbf16, #tpu.memory_space<vmem>>, vector<16x2x4xbf16>
    tpu.vector_store %arg6[%c0_97, %c0_98, %c76], %82 {strides = array<i32>} : memref<16x2x120xbf16, #tpu.memory_space<vmem>>, vector<16x2x4xbf16>,
    %c2_i32 = arith.constant 2 : i32
    %84 = arith.addi %1, %c2_i32 : i32
    %c0_99 = arith.constant 0 : index
    %85 = arith.index_cast %84 : i32 to index
    %c0_100 = arith.constant 0 : index
    %c0_101 = arith.constant 0 : index
    %86 = vector.load %arg2[%c0_99, %85, %c0_100, %c0_101] : memref<1x18x3x32xbf16, #tpu.memory_space<vmem>>, vector<1x16x2x4xbf16>
    %87 = vector.shape_cast %86 : vector<1x16x2x4xbf16> to vector<16x2x4xbf16>
    %c0_102 = arith.constant 0 : index
    %c0_103 = arith.constant 0 : index
    %c80 = arith.constant 80 : index
    %88 = vector.load %arg6[%c0_102, %c0_103, %c80] : memref<16x2x120xbf16, #tpu.memory_space<vmem>>, vector<16x2x4xbf16>
    tpu.vector_store %arg6[%c0_102, %c0_103, %c80], %87 {strides = array<i32>} : memref<16x2x120xbf16, #tpu.memory_space<vmem>>, vector<16x2x4xbf16>,
    %c0_104 = arith.constant 0 : index
    %89 = arith.index_cast %84 : i32 to index
    %c0_105 = arith.constant 0 : index
    %c4_106 = arith.constant 4 : index
    %90 = vector.load %arg2[%c0_104, %89, %c0_105, %c4_106] : memref<1x18x3x32xbf16, #tpu.memory_space<vmem>>, vector<1x16x2x4xbf16>
    %91 = vector.shape_cast %90 : vector<1x16x2x4xbf16> to vector<16x2x4xbf16>
    %c0_107 = arith.constant 0 : index
    %c0_108 = arith.constant 0 : index
    %c84 = arith.constant 84 : index
    %92 = vector.load %arg6[%c0_107, %c0_108, %c84] : memref<16x2x120xbf16, #tpu.memory_space<vmem>>, vector<16x2x4xbf16>
    tpu.vector_store %arg6[%c0_107, %c0_108, %c84], %91 {strides = array<i32>} : memref<16x2x120xbf16, #tpu.memory_space<vmem>>, vector<16x2x4xbf16>,
    %c0_109 = arith.constant 0 : index
    %93 = arith.index_cast %84 : i32 to index
    %c0_110 = arith.constant 0 : index
    %c8_111 = arith.constant 8 : index
    %94 = vector.load %arg2[%c0_109, %93, %c0_110, %c8_111] : memref<1x18x3x32xbf16, #tpu.memory_space<vmem>>, vector<1x16x2x4xbf16>
    %95 = vector.shape_cast %94 : vector<1x16x2x4xbf16> to vector<16x2x4xbf16>
    %c0_112 = arith.constant 0 : index
    %c0_113 = arith.constant 0 : index
    %c88 = arith.constant 88 : index
    %96 = vector.load %arg6[%c0_112, %c0_113, %c88] : memref<16x2x120xbf16, #tpu.memory_space<vmem>>, vector<16x2x4xbf16>
    tpu.vector_store %arg6[%c0_112, %c0_113, %c88], %95 {strides = array<i32>} : memref<16x2x120xbf16, #tpu.memory_space<vmem>>, vector<16x2x4xbf16>,
    %c0_114 = arith.constant 0 : index
    %97 = arith.index_cast %84 : i32 to index
    %c0_115 = arith.constant 0 : index
    %c12_116 = arith.constant 12 : index
    %98 = vector.load %arg2[%c0_114, %97, %c0_115, %c12_116] : memref<1x18x3x32xbf16, #tpu.memory_space<vmem>>, vector<1x16x2x4xbf16>
    %99 = vector.shape_cast %98 : vector<1x16x2x4xbf16> to vector<16x2x4xbf16>
    %c0_117 = arith.constant 0 : index
    %c0_118 = arith.constant 0 : index
    %c92 = arith.constant 92 : index
    %100 = vector.load %arg6[%c0_117, %c0_118, %c92] : memref<16x2x120xbf16, #tpu.memory_space<vmem>>, vector<16x2x4xbf16>
    tpu.vector_store %arg6[%c0_117, %c0_118, %c92], %99 {strides = array<i32>} : memref<16x2x120xbf16, #tpu.memory_space<vmem>>, vector<16x2x4xbf16>,
    %c0_119 = arith.constant 0 : index
    %101 = arith.index_cast %84 : i32 to index
    %c0_120 = arith.constant 0 : index
    %c16_121 = arith.constant 16 : index
    %102 = vector.load %arg2[%c0_119, %101, %c0_120, %c16_121] : memref<1x18x3x32xbf16, #tpu.memory_space<vmem>>, vector<1x16x2x4xbf16>
    %103 = vector.shape_cast %102 : vector<1x16x2x4xbf16> to vector<16x2x4xbf16>
    %c0_122 = arith.constant 0 : index
    %c0_123 = arith.constant 0 : index
    %c96 = arith.constant 96 : index
    %104 = vector.load %arg6[%c0_122, %c0_123, %c96] : memref<16x2x120xbf16, #tpu.memory_space<vmem>>, vector<16x2x4xbf16>
    tpu.vector_store %arg6[%c0_122, %c0_123, %c96], %103 {strides = array<i32>} : memref<16x2x120xbf16, #tpu.memory_space<vmem>>, vector<16x2x4xbf16>,
    %c0_124 = arith.constant 0 : index
    %105 = arith.index_cast %84 : i32 to index
    %c0_125 = arith.constant 0 : index
    %c20_126 = arith.constant 20 : index
    %106 = vector.load %arg2[%c0_124, %105, %c0_125, %c20_126] : memref<1x18x3x32xbf16, #tpu.memory_space<vmem>>, vector<1x16x2x4xbf16>
    %107 = vector.shape_cast %106 : vector<1x16x2x4xbf16> to vector<16x2x4xbf16>
    %c0_127 = arith.constant 0 : index
    %c0_128 = arith.constant 0 : index
    %c100 = arith.constant 100 : index
    %108 = vector.load %arg6[%c0_127, %c0_128, %c100] : memref<16x2x120xbf16, #tpu.memory_space<vmem>>, vector<16x2x4xbf16>
    tpu.vector_store %arg6[%c0_127, %c0_128, %c100], %107 {strides = array<i32>} : memref<16x2x120xbf16, #tpu.memory_space<vmem>>, vector<16x2x4xbf16>,
    %c0_129 = arith.constant 0 : index
    %109 = arith.index_cast %84 : i32 to index
    %c0_130 = arith.constant 0 : index
    %c24_131 = arith.constant 24 : index
    %110 = vector.load %arg2[%c0_129, %109, %c0_130, %c24_131] : memref<1x18x3x32xbf16, #tpu.memory_space<vmem>>, vector<1x16x2x4xbf16>
    %111 = vector.shape_cast %110 : vector<1x16x2x4xbf16> to vector<16x2x4xbf16>
    %c0_132 = arith.constant 0 : index
    %c0_133 = arith.constant 0 : index
    %c104 = arith.constant 104 : index
    %112 = vector.load %arg6[%c0_132, %c0_133, %c104] : memref<16x2x120xbf16, #tpu.memory_space<vmem>>, vector<16x2x4xbf16>
    tpu.vector_store %arg6[%c0_132, %c0_133, %c104], %111 {strides = array<i32>} : memref<16x2x120xbf16, #tpu.memory_space<vmem>>, vector<16x2x4xbf16>,
    %c0_134 = arith.constant 0 : index
    %113 = arith.index_cast %84 : i32 to index
    %c0_135 = arith.constant 0 : index
    %c28_136 = arith.constant 28 : index
    %114 = vector.load %arg2[%c0_134, %113, %c0_135, %c28_136] : memref<1x18x3x32xbf16, #tpu.memory_space<vmem>>, vector<1x16x2x4xbf16>
    %115 = vector.shape_cast %114 : vector<1x16x2x4xbf16> to vector<16x2x4xbf16>
    %c0_137 = arith.constant 0 : index
    %c0_138 = arith.constant 0 : index
    %c108 = arith.constant 108 : index
    %116 = vector.load %arg6[%c0_137, %c0_138, %c108] : memref<16x2x120xbf16, #tpu.memory_space<vmem>>, vector<16x2x4xbf16>
    tpu.vector_store %arg6[%c0_137, %c0_138, %c108], %115 {strides = array<i32>} : memref<16x2x120xbf16, #tpu.memory_space<vmem>>, vector<16x2x4xbf16>,
    %c0_139 = arith.constant 0 : index
    %117 = arith.index_cast %84 : i32 to index
    %c1_140 = arith.constant 1 : index
    %c0_141 = arith.constant 0 : index
    %118 = vector.load %arg2[%c0_139, %117, %c1_140, %c0_141] : memref<1x18x3x32xbf16, #tpu.memory_space<vmem>>, vector<1x16x2x4xbf16>
    %119 = vector.shape_cast %118 : vector<1x16x2x4xbf16> to vector<16x2x4xbf16>
    %c0_142 = arith.constant 0 : index
    %c0_143 = arith.constant 0 : index
    %c112 = arith.constant 112 : index
    %120 = vector.load %arg6[%c0_142, %c0_143, %c112] : memref<16x2x120xbf16, #tpu.memory_space<vmem>>, vector<16x2x4xbf16>
    tpu.vector_store %arg6[%c0_142, %c0_143, %c112], %119 {strides = array<i32>} : memref<16x2x120xbf16, #tpu.memory_space<vmem>>, vector<16x2x4xbf16>,
    %c0_144 = arith.constant 0 : index
    %121 = arith.index_cast %84 : i32 to index
    %c1_145 = arith.constant 1 : index
    %c4_146 = arith.constant 4 : index
    %122 = vector.load %arg2[%c0_144, %121, %c1_145, %c4_146] : memref<1x18x3x32xbf16, #tpu.memory_space<vmem>>, vector<1x16x2x4xbf16>
    %123 = vector.shape_cast %122 : vector<1x16x2x4xbf16> to vector<16x2x4xbf16>
    %c0_147 = arith.constant 0 : index
    %c0_148 = arith.constant 0 : index
    %c116 = arith.constant 116 : index
    %124 = vector.load %arg6[%c0_147, %c0_148, %c116] : memref<16x2x120xbf16, #tpu.memory_space<vmem>>, vector<16x2x4xbf16>
    tpu.vector_store %arg6[%c0_147, %c0_148, %c116], %123 {strides = array<i32>} : memref<16x2x120xbf16, #tpu.memory_space<vmem>>, vector<16x2x4xbf16>,
    %c0_149 = arith.constant 0 : index
    %c0_150 = arith.constant 0 : index
    %c0_151 = arith.constant 0 : index
    %125 = vector.load %arg6[%c0_149, %c0_150, %c0_151] : memref<16x2x120xbf16, #tpu.memory_space<vmem>>, vector<16x2x120xbf16>
    %126 = vector.shape_cast %125 : vector<16x2x120xbf16> to vector<32x120xbf16>
    %c0_152 = arith.constant 0 : index
    %c0_153 = arith.constant 0 : index
    %127 = vector.load %arg3[%c0_152, %c0_153] : memref<120x128xbf16, #tpu.memory_space<vmem>>, vector<120x128xbf16>
    %cst = arith.constant dense<0.000000e+00> : vector<32x128xf32>
    %128 = tpu.matmul %126, %127, %cst {dimension_numbers = #tpu.dot_dimension_numbers<[1], [0], [0], [1], [0, 0, 1, 1], [], []>} : vector<32x120xbf16>, vector<120x128xbf16>, vector<32x128xf32> -> vector<32x128xf32>
    %c0_154 = arith.constant 0 : index
    %c0_155 = arith.constant 0 : index
    %129 = vector.load %arg4[%c0_154, %c0_155] : memref<1x128xf32, #tpu.memory_space<vmem>>, vector<1x128xf32>
    %130 = vector.broadcast %129 : vector<1x128xf32> to vector<32x128xf32>
    %131 = arith.addf %128, %130 : vector<32x128xf32>
    %132 = arith.truncf %131 : vector<32x128xf32> to vector<32x128xbf16>
    %c0_156 = arith.constant 0 : index
    %c0_157 = arith.constant 0 : index
    %c0_158 = arith.constant 0 : index
    %133 = vector.load %arg5[%c0_156, %c0_157, %c0_158] : memref<1x32x128xbf16, #tpu.memory_space<vmem>>, vector<1x32x128xbf16>
    %134 = vector.shape_cast %133 : vector<1x32x128xbf16> to vector<32x128xbf16>
    %135 = vector.shape_cast %132 : vector<32x128xbf16> to vector<1x32x128xbf16>
    tpu.vector_store %arg5[%c0_156, %c0_157, %c0_158], %135 {strides = array<i32>} : memref<1x32x128xbf16, #tpu.memory_space<vmem>>, vector<1x32x128xbf16>,
    return
  }
  func.func @transform_0(%arg0: i32, %arg1: i32) -> (i32, i32, i32, i32) {
    %c0_i32 = arith.constant 0 : i32
    %c0_i32_0 = arith.constant 0 : i32
    %c0_i32_1 = arith.constant 0 : i32
    %c0_i32_2 = arith.constant 0 : i32
    return %arg0, %c0_i32, %c0_i32_0, %c0_i32_1 : i32, i32, i32, i32
  }
  func.func @transform_1(%arg0: i32, %arg1: i32) -> (i32, i32) {
    %c0_i32 = arith.constant 0 : i32
    %c0_i32_0 = arith.constant 0 : i32
    %c0_i32_1 = arith.constant 0 : i32
    return %c0_i32, %c0_i32_0 : i32, i32
  }
  func.func @transform_2(%arg0: i32, %arg1: i32) -> (i32, i32) {
    %c0_i32 = arith.constant 0 : i32
    %c0_i32_0 = arith.constant 0 : i32
    %c0_i32_1 = arith.constant 0 : i32
    return %c0_i32, %c0_i32_0 : i32, i32
  }
  func.func @transform_3(%arg0: i32, %arg1: i32) -> (i32, i32, i32) {
    %c0_i32 = arith.constant 0 : i32
    %c0_i32_0 = arith.constant 0 : i32
    return %arg0, %arg1, %c0_i32 : i32, i32, i32
  }
}

</mosaic_0001>

<bundles_post_ra>
// kernel: tpu_custom_call.1
= control target key start
LH: loop header
LB: loop body
LE: loop exit
PB: predicated region body
PF: predicated region fallthrough
CT: control target
= control target key end

     0   :  { %8 = vsyncpa [#allocation4], 0  ;;  %s9260_s0 = inlined_call_operand.vmem [shape: bf16[2,18,3,32], index: 0, kind: input, shape index: {}]   ;;  %s9261_s1 = inlined_call_operand.vmem [shape: bf16[120,128], index: 1, kind: input, shape index: {}]   ;;  %s9262_s2 = inlined_call_operand.vmem [shape: f32[1,128], index: 2, kind: input, shape index: {}]   ;;  %s9263_s3 = inlined_call_operand.hbm [shape: bf16[2,32,128], index: 3, kind: output, shape index: {}]  }
   0x1   :  { %10 = vsyncpa [#allocation4 + $0x1], 0  ;;  %s7430_s12 = smov 0   ;;  %s7432_s13 = smov 0  }
   0x2   :  { %s7434_s14 = smov 0   ;;  %s7436_s15 = smov 0  }
   0x3   :  { %s7438_s16 = smov 0   ;;  %s7440_s17 = smov 0  }
   0x4 LB: > { %s6407_s18 = sadd.s32 4294967295, %s7399_s17   ;;  %s6408_s19 = sadd.s32 4294967294, %s7399_s17   ;;  %s7399_s17 = sphi %s7440_s17, %s16_s17   ;;  %s7395_s16 = sphi %s7438_s16, %s9272_s16   ;;  %s7391_s15 = sphi %s7436_s15, %s9271_s15   ;;  %s7387_s14 = sphi %s7434_s14, %s9270_s14   ;;  %s7383_s13 = sphi %s7432_s13, %s9269_s13   ;;  %s7379_s12 = sphi %s7430_s12, %s9268_s12  }
   0x5   : > { %s28_s20 = sadd.s32 1, %s7395_s16  ;;  %s105_s21 = sadd.s32 1, %s7387_s14 }
   0x6   : > { %p30_p0 = scmp.ge.s32.totalorder %s28_s20, 2  ;;  %p115_p1 = scmp.ne.s32.totalorder %s7387_s14, %s7383_s13 }
   0x7   : > { %p116_p2 = scmp.eq.s32.totalorder %s6407_s18, 1  ;;  %p121_p3 = scmp.ne.s32.totalorder %s7383_s13, %s7379_s12 }
   0x8   : > { %s9274_s20 = smov (%p30_p0, %s28_s20), 0  ;;  %p122_p5 = scmp.eq.s32.totalorder %s6408_s19, 1 }
   0x9   : > { %p7470_p4 = por %p116_p2, %p115_p1  ;;  %s100_s23 = ssub.s32 %s7395_s16, %s9274_s20 }
   0xa   : > { %p6411_p6 = scmp.ge.s32.totalorder %s7399_s17, 1  ;;  %p103_p7 = scmp.eq.s32.totalorder %s100_s23, 0 }
   0xb   : > { %p7477_p8 = por %p122_p5, %p121_p3  ;;  %p154_p9 = scmp.lt.s32.totalorder %s7399_s17, 3 }
   0xc   : > { %s7483_s25 = scalar_select %p103_p7, %s7387_s14, %s105_s21  }
   0xd   : > { %p155_p10 = pnand %p6411_p6, %p154_p9 }
   0xe   : > { %p178_p11 = scmp.lt.s32.totalorder (!%p155_p10), %s7391_s15, 1  ;;  %vm612_vm0 = vsmask.f32 (!%p155_p10), 256  ;;  %vm613_vm1 = vsmask.f32 (!%p155_p10), 1284  ;;  %vm204_vm12 = vcmask (!%p155_p10), 24576  }
   0xf   : > { %158 = sbr.rel (%p155_p10) target bundleno = 1126 (0x466), region = 32  ;;  %vm614_vm2 = vmor (!%p155_p10), %vm612_vm0, %vm613_vm1  ;;  %vm615_vm3 = vsmask.f32 (!%p155_p10), 2312  ;;  %vm617_vm4 = vsmask.f32 (!%p155_p10), 3340  ;;  %s7401_s4 = smov (!%p155_p10), 32  }
  0x10   : > { %vm619_vm5 = vsmask.f32 (!%p155_p10), 4368  ;;  %vm616_vm6 = vmor (!%p155_p10), %vm614_vm2, %vm615_vm3  ;;  %vm621_vm7 = vsmask.f32 (!%p155_p10), 5396  ;;  %vm623_vm9 = vsmask.f32 (!%p155_p10), 6424 }
  0x11   : > { %vm618_vm8 = vmor (!%p155_p10), %vm616_vm6, %vm617_vm4  ;;  %vm625_vm14 = vsmask.f32 (!%p155_p10), 7452  ;;  %vm237_vm0 = vcmask (!%p155_p10), 57376   ;;  %vm270_vm1 = vcmask (!%p155_p10), 90176   ;;  %vm303_vm2 = vcmask (!%p155_p10), 122976   ;;  %s7402_s5 = smov (!%p155_p10), 40  }
  0x12   : > { %vm620_vm10 = vmor (!%p155_p10), %vm618_vm8, %vm619_vm5  ;;  %vm336_vm3 = vcmask (!%p155_p10), 155776   ;;  %vm369_vm4 = vcmask (!%p155_p10), 188576   ;;  %vm402_vm5 = vcmask (!%p155_p10), 221376   ;;  %vm435_vm6 = vcmask (!%p155_p10), 254176   ;;  %s7403_s6 = smov (!%p155_p10), 72   ;;  %s7404_s7 = smov (!%p155_p10), 80  }
  0x13   : > { %vm622_vm11 = vmor (!%p155_p10), %vm620_vm10, %vm621_vm7  ;;  %vm819_vm7 = vcmask (!%p155_p10), 286976   ;;  %vm1188_vm8 = vcmask (!%p155_p10), 319776   ;;  %vm1609_vm10 = vcmask (!%p155_p10), 385376   ;;  %s7405_s8 = smov (!%p155_p10), 112   ;;  %v7313_v5 = vld [vmem:[%s9261_s1] sm:$0xff] (!%p155_p10)   ;;  %s7206_s21 = sshll.u32 (!%p155_p10), %s7391_s15, 8 }
  0x14   : > { %vm624_vm13 = vmor (!%p155_p10), %vm622_vm11, %vm623_vm9  ;;  %vm1400_vm9 = vcmask (!%p155_p10), 352576   ;;  %vm1818_vm11 = vcmask (!%p155_p10), 418176   ;;  %7228 = vmatprep.subr.bf16.mxu0 (!%p155_p10), %v7313_v5  ;;  %s7407_s29 = smov (!%p155_p10), [#allocation3]  }
  0x15   : > { %vm7496_vm15 = vmor (!%p155_p10), %vm624_vm13, %vm625_vm14  ;;  %vm2236_vm13 = vcmask (!%p155_p10), 483776   ;;  %vm2445_vm14 = vcmask (!%p155_p10), 516576   ;;  %7229 = vmatpush3.bf16.msra.mxu0 (!%p155_p10), %v7313_v5 }
  0x16   : > { %s179_s26 = scalar_select %p178_p11, %s7391_s15, 1 }
  0x18   : > { %s7249_s27 = smul.u32 36, %s179_s26 }
  0x1a   : > { %s7490_s30 = scalar_lea.vmem %s9260_s0, %s7249_s27  ;;  %s9212_s27 = scalar_lea.hbm %s9263_s3, %s7206_s21 }
  0x1b   : > { %v6416_v0 = vld.sshfl [vmem:[%s7490_s30 + $0x4] sm:$0x11 pattern:$0x75316420] }
  0x1c   : > { %v190_v1 = vld [vmem:[%s7490_s30 + $0x4] sm:$0x1]  ;;  %v507_v2 = vcombine.high %v6416_v0, %v6416_v0  ;;  %v646_v3 = vshrl.u32 %v6416_v0, 16 }
  0x1d   : > { %v6414_v4 = vld.sshfl [vmem:[%s7490_s30] sm:$0x11 pattern:$0x75316420]  ;;  %207 = vst.msk [vmem:[#allocation2 + $0x2] sm:$0x1] %vm204_vm12, %v190_v1 }
  0x1e   : > { %v491_v6 = vcombine.high %v6414_v4, %v6414_v4  ;;  %v628_v7 = vshrl.u32 %v6414_v4, 16  ;;  %v6417_v8 = vld.sshfl [vmem:[%s7490_s30 + $0x6] sm:$0x11 pattern:$0x75316420]  ;;  %v651_v9 = vshll.u32 %v507_v2, 16 }
  0x1f   : > { %v515_v10 = vcombine.high %v6417_v8, %v6417_v8  ;;  %v655_v11 = vshrl.u32 %v6417_v8, 16  ;;  %v6415_v12 = vld.sshfl [vmem:[%s7490_s30 + $0x2] sm:$0x11 pattern:$0x75316420] }
  0x20   : > { %v633_v13 = vshll.u32 %v491_v6, 16  ;;  %v499_v14 = vcombine.high %v6415_v12, %v6415_v12  ;;  %v637_v15 = vshrl.u32 %v6415_v12, 16  ;;  %v6419_v16 = vld.sshfl [vmem:[%s7490_s30 + $0xa] sm:$0x11 pattern:$0x75316420]  ;;  %v7505_v17 = vsel %vm7496_vm15, %v646_v3, %v651_v9 }
  0x21   : > { %v660_v18 = vshll.u32 %v515_v10, 16  ;;  %v531_v19 = vcombine.high %v6419_v16, %v6419_v16  ;;  %v6418_v20 = vld.sshfl [vmem:[%s7490_s30 + $0x8] sm:$0x11 pattern:$0x75316420]  ;;  %775 = vrot.lane.b32.xlu1 %v7505_v17, %s7401_s4  ;;  %v673_v26 = vshrl.u32 %v6419_v16, 16 }
  0x22   : > { %v7512_v21 = vsel %vm7496_vm15, %v628_v7, %v633_v13  ;;  %v642_v22 = vshll.u32 %v499_v14, 16  ;;  %v523_v23 = vcombine.high %v6418_v20, %v6418_v20  ;;  %v6421_v24 = vld.sshfl [vmem:[%s7490_s30 + $0xe] sm:$0x11 pattern:$0x75316420]  ;;  %v664_v31 = vshrl.u32 %v6418_v20, 16 }
  0x23   : > { %771 = vrot.lane.b32.xlu0 %v7512_v21, %s7401_s4  ;;  %v7519_v25 = vsel %vm7496_vm15, %v655_v11, %v660_v18  ;;  %v678_v27 = vshll.u32 %v531_v19, 16  ;;  %v547_v28 = vcombine.high %v6421_v24, %v6421_v24  ;;  %v6420_v29 = vld.sshfl [vmem:[%s7490_s30 + $0xc] sm:$0x11 pattern:$0x75316420]  ;;  %v691_v37 = vshrl.u32 %v6421_v24, 16 }
  0x24   : > { %v7524_v30 = vsel %vm7496_vm15, %v637_v15, %v642_v22  ;;  %v669_v32 = vshll.u32 %v523_v23, 16  ;;  %v539_v33 = vcombine.high %v6420_v29, %v6420_v29  ;;  %v6423_v34 = vld.sshfl [vmem:[%s7490_s30 + $0x12] sm:$0x11 pattern:$0x75316420]  ;;  %v682_v42 = vshrl.u32 %v6420_v29, 16 }
  0x25   : > { %v6422_v35 = vld.sshfl [vmem:[%s7490_s30 + $0x10] sm:$0x11 pattern:$0x75316420]  ;;  %777 = vrot.lane.b32.xlu1 %v7519_v25, %s7401_s4  ;;  %v7534_v36 = vsel %vm7496_vm15, %v673_v26, %v678_v27  ;;  %v696_v38 = vshll.u32 %v547_v28, 16  ;;  %v563_v39 = vcombine.high %v6423_v34, %v6423_v34  ;;  %v709_v46 = vshrl.u32 %v6423_v34, 16 }
  0x26   : > { %v6425_v40 = vld.sshfl [vmem:[%s7490_s30 + $0x16] sm:$0x11 pattern:$0x75316420]  ;;  %v7539_v41 = vsel %vm7496_vm15, %v664_v31, %v669_v32  ;;  %v687_v43 = vshll.u32 %v539_v33, 16  ;;  %v555_v44 = vcombine.high %v6422_v35, %v6422_v35  ;;  %v700_v52 = vshrl.u32 %v6422_v35, 16 }
  0x27   : > { %773 = vrot.lane.b32.xlu0 %v7524_v30, %s7401_s4  ;;  %v6424_v45 = vld.sshfl [vmem:[%s7490_s30 + $0x14] sm:$0x11 pattern:$0x75316420]  ;;  %v7548_v47 = vsel %vm7496_vm15, %v691_v37, %v696_v38  ;;  %v714_v48 = vshll.u32 %v563_v39, 16  ;;  %v579_v49 = vcombine.high %v6425_v40, %v6425_v40  ;;  %v727_v56 = vshrl.u32 %v6425_v40, 16 }
  0x28   : > { %v571_v50 = vcombine.high %v6424_v45, %v6424_v45  ;;  %v7552_v51 = vsel %vm7496_vm15, %v682_v42, %v687_v43  ;;  %v705_v53 = vshll.u32 %v555_v44, 16  ;;  %v6427_v54 = vld.sshfl [vmem:[%s7490_s30 + $0x1a] sm:$0x11 pattern:$0x75316420]  ;;  %v718_v57 = vshrl.u32 %v6424_v45, 16 }
  0x29   : > { %781 = vrot.lane.b32.xlu1 %v7534_v36, %s7401_s4  ;;  %v6426_v55 = vld.sshfl [vmem:[%s7490_s30 + $0x18] sm:$0x11 pattern:$0x75316420]  ;;  %v7562_v58 = vsel %vm7496_vm15, %v709_v46, %v714_v48  ;;  %v732_v59 = vshll.u32 %v579_v49, 16  ;;  %v595_v61 = vcombine.high %v6427_v54, %v6427_v54  ;;  %v745_v8 = vshrl.u32 %v6427_v54, 16 }
  0x2a   : > { %v723_v60 = vshll.u32 %v571_v50, 16  ;;  %v223_v62 = vld [vmem:[%s7490_s30 + $0x4] sm:$0x1]  ;;  %v7567_v63 = vsel %vm7496_vm15, %v700_v52, %v705_v53  ;;  %v587_v0 = vcombine.high %v6426_v55, %v6426_v55  ;;  %v736_v13 = vshrl.u32 %v6426_v55, 16  ;;  %v188_v19 = vld [vmem:[%s7490_s30] sm:$0x1] }
  0x2b   : > { %779 = vrot.lane.b32.xlu0 %v7539_v41, %s7401_s4  ;;  %v6429_v1 = vld.sshfl [vmem:[%s7490_s30 + $0x1e] sm:$0x11 pattern:$0x75316420]  ;;  %240 = vst.msk [vmem:[#allocation2 + $0x2] sm:$0x1] %vm237_vm0, %v223_v62  ;;  %v7583_v7 = vsel %vm7496_vm15, %v727_v56, %v732_v59 }
  0x2c   : > { %v256_v2 = vld [vmem:[%s7490_s30 + $0x4] sm:$0x1]  ;;  %v6428_v3 = vld.sshfl [vmem:[%s7490_s30 + $0x1c] sm:$0x11 pattern:$0x75316420]  ;;  %v611_v10 = vcombine.high %v6429_v1, %v6429_v1  ;;  %v7589_v12 = vsel %vm7496_vm15, %v718_v57, %v723_v60 }
  0x2d   : > { %785 = vrot.lane.b32.xlu1 %v7548_v47, %s7401_s4  ;;  %273 = vst.msk [vmem:[#allocation2 + $0x2] sm:$0x1] %vm270_vm1, %v256_v2  ;;  %v289_v4 = vld [vmem:[%s7490_s30 + $0x4] sm:$0x1]  ;;  %v750_v9 = vshll.u32 %v595_v61, 16  ;;  %v741_v14 = vshll.u32 %v587_v0, 16  ;;  %v603_v15 = vcombine.high %v6428_v3, %v6428_v3 }
  0x2e   : > { %306 = vst.msk [vmem:[#allocation2 + $0x2] sm:$0x1] %vm303_vm2, %v289_v4  ;;  %v322_v6 = vld [vmem:[%s7490_s30 + $0x4] sm:$0x1]  ;;  %v763_v22 = vshrl.u32 %v6429_v1, 16  ;;  %v768_v23 = vshll.u32 %v611_v10, 16 }
  0x2f   : > { %783 = vrot.lane.b32.xlu0 %v7552_v51, %s7401_s4  ;;  %339 = vst.msk [vmem:[#allocation2 + $0x2] sm:$0x1] %vm336_vm3, %v322_v6  ;;  %v355_v11 = vld [vmem:[%s7490_s30 + $0x4] sm:$0x1]  ;;  %v7603_v20 = vsel %vm7496_vm15, %v745_v8, %v750_v9  ;;  %v221_v24 = vld [vmem:[%s7490_s30] sm:$0x1]  ;;  %v7609_v26 = vsel %vm7496_vm15, %v736_v13, %v741_v14 }
  0x30   : > { %372 = vst.msk [vmem:[#allocation2 + $0x2] sm:$0x1] %vm369_vm4, %v355_v11  ;;  %v388_v16 = vld [vmem:[%s7490_s30 + $0x4] sm:$0x1]  ;;  %v754_v27 = vshrl.u32 %v6428_v3, 16  ;;  %v759_v28 = vshll.u32 %v603_v15, 16  ;;  %v7623_v33 = vsel %vm7496_vm15, %v763_v22, %v768_v23 }
  0x31   : > { %789 = vrot.lane.b32.xlu1 %v7562_v58, %s7401_s4  ;;  %405 = vst.msk [vmem:[#allocation2 + $0x2] sm:$0x1] %vm402_vm5, %v388_v16  ;;  %v421_v18 = vld [vmem:[%s7490_s30 + $0x4] sm:$0x1]  ;;  %v254_v29 = vld [vmem:[%s7490_s30] sm:$0x1] }
  0x32   : > { %438 = vst.msk [vmem:[#allocation2 + $0x2] sm:$0x1] %vm435_vm6, %v421_v18  ;;  %v287_v31 = vld [vmem:[%s7490_s30] sm:$0x1]  ;;  %v7629_v35 = vsel %vm7496_vm15, %v754_v27, %v759_v28  ;;  %v191_v39 = vld [vmem:[%s7490_s30 + $0x6] sm:$0x1] }
  0x33   : > { %787 = vrot.lane.b32.xlu0 %v7567_v63, %s7401_s4  ;;  %205 = vst.msk [vmem:[#allocation2] sm:$0x1] %vm204_vm12, %v188_v19  ;;  %v320_v32 = vld [vmem:[%s7490_s30] sm:$0x1]  ;;  %208 = vst.msk [vmem:[#allocation2 + $0x3] sm:$0x1] %vm204_vm12, %v191_v39 }
  0x34   : > { %238 = vst.msk [vmem:[#allocation2] sm:$0x1] %vm237_vm0, %v221_v24  ;;  %v353_v34 = vld [vmem:[%s7490_s30] sm:$0x1]  ;;  %v224_v40 = vld [vmem:[%s7490_s30 + $0x6] sm:$0x1] }
  0x35   : > { %793 = vrot.lane.b32.xlu1 %v7583_v7, %s7401_s4  ;;  %271 = vst.msk [vmem:[#allocation2] sm:$0x1] %vm270_vm1, %v254_v29  ;;  %v386_v37 = vld [vmem:[%s7490_s30] sm:$0x1]  ;;  %v257_v42 = vld [vmem:[%s7490_s30 + $0x6] sm:$0x1] }
  0x36   : > { %304 = vst.msk [vmem:[#allocation2] sm:$0x1] %vm303_vm2, %v287_v31  ;;  %v419_v38 = vld [vmem:[%s7490_s30] sm:$0x1]  ;;  %v290_v43 = vld [vmem:[%s7490_s30 + $0x6] sm:$0x1] }
  0x37   : > { %791 = vrot.lane.b32.xlu0 %v7589_v12, %s7401_s4  ;;  %337 = vst.msk [vmem:[#allocation2] sm:$0x1] %vm336_vm3, %v320_v32  ;;  %v323_v44 = vld [vmem:[%s7490_s30 + $0x6] sm:$0x1]  ;;  %v189_v48 = vld [vmem:[%s7490_s30 + $0x2] sm:$0x1] }
  0x38   : > { %370 = vst.msk [vmem:[#allocation2] sm:$0x1] %vm369_vm4, %v353_v34  ;;  %v356_v45 = vld [vmem:[%s7490_s30 + $0x6] sm:$0x1]  ;;  %v222_v49 = vld [vmem:[%s7490_s30 + $0x2] sm:$0x1] }
  0x39   : > { %797 = vrot.lane.b32.xlu1 %v7603_v20, %s7401_s4  ;;  %403 = vst.msk [vmem:[#allocation2] sm:$0x1] %vm402_vm5, %v386_v37  ;;  %v389_v46 = vld [vmem:[%s7490_s30 + $0x6] sm:$0x1]  ;;  %v255_v52 = vld [vmem:[%s7490_s30 + $0x2] sm:$0x1] }
  0x3a   : > { %436 = vst.msk [vmem:[#allocation2] sm:$0x1] %vm435_vm6, %v419_v38  ;;  %v422_v50 = vld [vmem:[%s7490_s30 + $0x6] sm:$0x1]  ;;  %v288_v53 = vld [vmem:[%s7490_s30 + $0x2] sm:$0x1] }
  0x3b   : > { %795 = vrot.lane.b32.xlu0 %v7609_v26, %s7401_s4  ;;  %241 = vst.msk [vmem:[#allocation2 + $0x3] sm:$0x1] %vm237_vm0, %v224_v40  ;;  %v321_v54 = vld [vmem:[%s7490_s30 + $0x2] sm:$0x1]  ;;  %v193_v57 = vld [vmem:[%s7490_s30 + $0xa] sm:$0x1] }
  0x3c   : > { %274 = vst.msk [vmem:[#allocation2 + $0x3] sm:$0x1] %vm270_vm1, %v257_v42  ;;  %v354_v55 = vld [vmem:[%s7490_s30 + $0x2] sm:$0x1]  ;;  %v226_v59 = vld [vmem:[%s7490_s30 + $0xa] sm:$0x1] }
  0x3d   : > { %801 = vrot.lane.b32.xlu1 %v7623_v33, %s7401_s4  ;;  %307 = vst.msk [vmem:[#allocation2 + $0x3] sm:$0x1] %vm303_vm2, %v290_v43  ;;  %v387_v56 = vld [vmem:[%s7490_s30 + $0x2] sm:$0x1]  ;;  %v259_v60 = vld [vmem:[%s7490_s30 + $0xa] sm:$0x1] }
  0x3e   : > { %206 = vst.msk [vmem:[#allocation2 + $0x1] sm:$0x1] %vm204_vm12, %v189_v48  ;;  %210 = vst.msk [vmem:[#allocation2 + $0x5] sm:$0x1] %vm204_vm12, %v193_v57  ;;  %v292_v61 = vld [vmem:[%s7490_s30 + $0xa] sm:$0x1] }
  0x3f   : > { %799 = vrot.lane.b32.xlu0 %v7629_v35, %s7401_s4  ;;  %340 = vst.msk [vmem:[#allocation2 + $0x3] sm:$0x1] %vm336_vm3, %v323_v44  ;;  %v325_v62 = vld [vmem:[%s7490_s30 + $0xa] sm:$0x1]  ;;  %v192_v1 = vld [vmem:[%s7490_s30 + $0x8] sm:$0x1] }
  0x40   : > { %239 = vst.msk [vmem:[#allocation2 + $0x1] sm:$0x1] %vm237_vm0, %v222_v49  ;;  %243 = vst.msk [vmem:[#allocation2 + $0x5] sm:$0x1] %vm237_vm0, %v226_v59  ;;  %v391_v0 = vld [vmem:[%s7490_s30 + $0xa] sm:$0x1] }
  0x41   : > { %1142 = vrot.lane.b32.xlu1 %v7524_v30, %s7401_s4  ;;  %373 = vst.msk [vmem:[#allocation2 + $0x3] sm:$0x1] %vm369_vm4, %v356_v45  ;;  %v420_v30 = vld [vmem:[%s7490_s30 + $0x2] sm:$0x1]  ;;  %v225_v2 = vld [vmem:[%s7490_s30 + $0x8] sm:$0x1] }
  0x42   : > { %272 = vst.msk [vmem:[#allocation2 + $0x1] sm:$0x1] %vm270_vm1, %v255_v52  ;;  %276 = vst.msk [vmem:[#allocation2 + $0x5] sm:$0x1] %vm270_vm1, %v259_v60  ;;  %v258_v3 = vld [vmem:[%s7490_s30 + $0x8] sm:$0x1] }
  0x43   : > { %1140 = vrot.lane.b32.xlu0 %v7512_v21, %s7401_s4  ;;  %406 = vst.msk [vmem:[#allocation2 + $0x3] sm:$0x1] %vm402_vm5, %v389_v46  ;;  %v358_v21 = vld [vmem:[%s7490_s30 + $0xa] sm:$0x1]  ;;  %v291_v4 = vld [vmem:[%s7490_s30 + $0x8] sm:$0x1] }
  0x44   : > { %305 = vst.msk [vmem:[#allocation2 + $0x1] sm:$0x1] %vm303_vm2, %v288_v53  ;;  %309 = vst.msk [vmem:[#allocation2 + $0x5] sm:$0x1] %vm303_vm2, %v292_v61  ;;  %v424_v6 = vld [vmem:[%s7490_s30 + $0xa] sm:$0x1] }
  0x45   : > { %439 = vst.msk [vmem:[#allocation2 + $0x3] sm:$0x1] %vm435_vm6, %v422_v50  ;;  %1146 = vrot.lane.b32.xlu1 %v7519_v25, %s7401_s4  ;;  %v324_v8 = vld [vmem:[%s7490_s30 + $0x8] sm:$0x1]  ;;  %v195_v10 = vld [vmem:[%s7490_s30 + $0xe] sm:$0x1] }
  0x46   : > { %338 = vst.msk [vmem:[#allocation2 + $0x1] sm:$0x1] %vm336_vm3, %v321_v54  ;;  %v357_v9 = vld [vmem:[%s7490_s30 + $0x8] sm:$0x1]  ;;  %342 = vst.msk [vmem:[#allocation2 + $0x5] sm:$0x1] %vm336_vm3, %v325_v62 }
  0x47   : > { %371 = vst.msk [vmem:[#allocation2 + $0x1] sm:$0x1] %vm369_vm4, %v354_v55  ;;  %1144 = vrot.lane.b32.xlu0 %v7505_v17, %s7401_s4  ;;  %v390_v25 = vld [vmem:[%s7490_s30 + $0x8] sm:$0x1]  ;;  %v228_v11 = vld [vmem:[%s7490_s30 + $0xe] sm:$0x1] }
  0x48   : > { %209 = vst.msk [vmem:[#allocation2 + $0x4] sm:$0x1] %vm204_vm12, %v192_v1  ;;  %v423_v13 = vld [vmem:[%s7490_s30 + $0x8] sm:$0x1]  ;;  %212 = vst.msk [vmem:[#allocation2 + $0x7] sm:$0x1] %vm204_vm12, %v195_v10 }
  0x49   : > { %404 = vst.msk [vmem:[#allocation2 + $0x1] sm:$0x1] %vm402_vm5, %v387_v56  ;;  %v261_v17 = vld [vmem:[%s7490_s30 + $0xe] sm:$0x1]  ;;  %1150 = vrot.lane.b32.xlu1 %v7534_v36, %s7401_s4  ;;  %v194_v19 = vld [vmem:[%s7490_s30 + $0xc] sm:$0x1] }
  0x4a   : > { %242 = vst.msk [vmem:[#allocation2 + $0x4] sm:$0x1] %vm237_vm0, %v225_v2  ;;  %v294_v14 = vld [vmem:[%s7490_s30 + $0xe] sm:$0x1]  ;;  %245 = vst.msk [vmem:[#allocation2 + $0x7] sm:$0x1] %vm237_vm0, %v228_v11 }
  0x4b   : > { %437 = vst.msk [vmem:[#allocation2 + $0x1] sm:$0x1] %vm435_vm6, %v420_v30  ;;  %v327_v15 = vld [vmem:[%s7490_s30 + $0xe] sm:$0x1]  ;;  %v227_v22 = vld [vmem:[%s7490_s30 + $0xc] sm:$0x1]  ;;  %1148 = vrot.lane.b32.xlu0 %v7539_v41, %s7401_s4 }
  0x4c   : > { %275 = vst.msk [vmem:[#allocation2 + $0x4] sm:$0x1] %vm270_vm1, %v258_v3  ;;  %v360_v16 = vld [vmem:[%s7490_s30 + $0xe] sm:$0x1]  ;;  %278 = vst.msk [vmem:[#allocation2 + $0x7] sm:$0x1] %vm270_vm1, %v261_v17 }
  0x4d   : > { %375 = vst.msk [vmem:[#allocation2 + $0x5] sm:$0x1] %vm369_vm4, %v358_v21  ;;  %v393_v18 = vld [vmem:[%s7490_s30 + $0xe] sm:$0x1]  ;;  %v260_v23 = vld [vmem:[%s7490_s30 + $0xc] sm:$0x1]  ;;  %1154 = vrot.lane.b32.xlu1 %v7548_v47, %s7401_s4 }
  0x4e   : > { %308 = vst.msk [vmem:[#allocation2 + $0x4] sm:$0x1] %vm303_vm2, %v291_v4  ;;  %311 = vst.msk [vmem:[#allocation2 + $0x7] sm:$0x1] %vm303_vm2, %v294_v14  ;;  %v426_v36 = vld [vmem:[%s7490_s30 + $0xe] sm:$0x1] }
  0x4f   : > { %408 = vst.msk [vmem:[#allocation2 + $0x5] sm:$0x1] %vm402_vm5, %v391_v0  ;;  %v293_v24 = vld [vmem:[%s7490_s30 + $0xc] sm:$0x1]  ;;  %v197_v29 = vld [vmem:[%s7490_s30 + $0x12] sm:$0x1]  ;;  %1152 = vrot.lane.b32.xlu0 %v7552_v51, %s7401_s4 }
  0x50   : > { %341 = vst.msk [vmem:[#allocation2 + $0x4] sm:$0x1] %vm336_vm3, %v324_v8  ;;  %v326_v27 = vld [vmem:[%s7490_s30 + $0xc] sm:$0x1]  ;;  %344 = vst.msk [vmem:[#allocation2 + $0x7] sm:$0x1] %vm336_vm3, %v327_v15 }
  0x51   : > { %441 = vst.msk [vmem:[#allocation2 + $0x5] sm:$0x1] %vm435_vm6, %v424_v6  ;;  %v359_v41 = vld [vmem:[%s7490_s30 + $0xc] sm:$0x1]  ;;  %v230_v31 = vld [vmem:[%s7490_s30 + $0x12] sm:$0x1]  ;;  %1158 = vrot.lane.b32.xlu1 %v7562_v58, %s7401_s4 }
  0x52   : > { %374 = vst.msk [vmem:[#allocation2 + $0x4] sm:$0x1] %vm369_vm4, %v357_v9  ;;  %v392_v28 = vld [vmem:[%s7490_s30 + $0xc] sm:$0x1]  ;;  %377 = vst.msk [vmem:[#allocation2 + $0x7] sm:$0x1] %vm369_vm4, %v360_v16 }
  0x53   : > { %407 = vst.msk [vmem:[#allocation2 + $0x4] sm:$0x1] %vm402_vm5, %v390_v25  ;;  %v263_v32 = vld [vmem:[%s7490_s30 + $0x12] sm:$0x1]  ;;  %410 = vst.msk [vmem:[#allocation2 + $0x7] sm:$0x1] %vm402_vm5, %v393_v18  ;;  %1156 = vrot.lane.b32.xlu0 %v7567_v63, %s7401_s4 }
  0x54   : > { %211 = vst.msk [vmem:[#allocation2 + $0x6] sm:$0x1] %vm204_vm12, %v194_v19  ;;  %214 = vst.msk [vmem:[#allocation2 + $0x9] sm:$0x1] %vm204_vm12, %v197_v29  ;;  %v296_v34 = vld [vmem:[%s7490_s30 + $0x12] sm:$0x1] }
  0x55   : > { %440 = vst.msk [vmem:[#allocation2 + $0x4] sm:$0x1] %vm435_vm6, %v423_v13  ;;  %v425_v37 = vld [vmem:[%s7490_s30 + $0xc] sm:$0x1]  ;;  %v329_v38 = vld [vmem:[%s7490_s30 + $0x12] sm:$0x1]  ;;  %1162 = vrot.lane.b32.xlu1 %v7583_v7, %s7401_s4 }
  0x56   : > { %244 = vst.msk [vmem:[#allocation2 + $0x6] sm:$0x1] %vm237_vm0, %v227_v22  ;;  %247 = vst.msk [vmem:[#allocation2 + $0x9] sm:$0x1] %vm237_vm0, %v230_v31  ;;  %v362_v39 = vld [vmem:[%s7490_s30 + $0x12] sm:$0x1] }
  0x57   : > { %277 = vst.msk [vmem:[#allocation2 + $0x6] sm:$0x1] %vm270_vm1, %v260_v23  ;;  %280 = vst.msk [vmem:[#allocation2 + $0x9] sm:$0x1] %vm270_vm1, %v263_v32  ;;  %v395_v47 = vld [vmem:[%s7490_s30 + $0x12] sm:$0x1]  ;;  %1160 = vrot.lane.b32.xlu0 %v7589_v12, %s7401_s4 }
  0x58   : > { %310 = vst.msk [vmem:[#allocation2 + $0x6] sm:$0x1] %vm303_vm2, %v293_v24  ;;  %v196_v40 = vld [vmem:[%s7490_s30 + $0x10] sm:$0x1]  ;;  %313 = vst.msk [vmem:[#allocation2 + $0x9] sm:$0x1] %vm303_vm2, %v296_v34 }
  0x59   : > { %443 = vst.msk [vmem:[#allocation2 + $0x7] sm:$0x1] %vm435_vm6, %v426_v36  ;;  %v229_v42 = vld [vmem:[%s7490_s30 + $0x10] sm:$0x1]  ;;  %v428_v43 = vld [vmem:[%s7490_s30 + $0x12] sm:$0x1]  ;;  %1166 = vrot.lane.b32.xlu1 %v7603_v20, %s7401_s4 }
  0x5a   : > { %343 = vst.msk [vmem:[#allocation2 + $0x6] sm:$0x1] %vm336_vm3, %v326_v27  ;;  %v262_v51 = vld [vmem:[%s7490_s30 + $0x10] sm:$0x1]  ;;  %346 = vst.msk [vmem:[#allocation2 + $0x9] sm:$0x1] %vm336_vm3, %v329_v38 }
  0x5b   : > { %376 = vst.msk [vmem:[#allocation2 + $0x6] sm:$0x1] %vm369_vm4, %v359_v41  ;;  %v295_v44 = vld [vmem:[%s7490_s30 + $0x10] sm:$0x1]  ;;  %379 = vst.msk [vmem:[#allocation2 + $0x9] sm:$0x1] %vm369_vm4, %v362_v39  ;;  %1164 = vrot.lane.b32.xlu0 %v7609_v26, %s7401_s4 }
  0x5c   : > { %213 = vst.msk [vmem:[#allocation2 + $0x8] sm:$0x1] %vm204_vm12, %v196_v40  ;;  %v328_v45 = vld [vmem:[%s7490_s30 + $0x10] sm:$0x1]  ;;  %v199_v49 = vld [vmem:[%s7490_s30 + $0x16] sm:$0x1] }
  0x5d   : > { %409 = vst.msk [vmem:[#allocation2 + $0x6] sm:$0x1] %vm402_vm5, %v392_v28  ;;  %v361_v46 = vld [vmem:[%s7490_s30 + $0x10] sm:$0x1]  ;;  %v232_v50 = vld [vmem:[%s7490_s30 + $0x16] sm:$0x1]  ;;  %1170 = vrot.lane.b32.xlu1 %v7623_v33, %s7401_s4 }
  0x5e   : > { %246 = vst.msk [vmem:[#allocation2 + $0x8] sm:$0x1] %vm237_vm0, %v229_v42  ;;  %v394_v48 = vld [vmem:[%s7490_s30 + $0x10] sm:$0x1]  ;;  %v265_v52 = vld [vmem:[%s7490_s30 + $0x16] sm:$0x1] }
  0x5f   : > { %442 = vst.msk [vmem:[#allocation2 + $0x6] sm:$0x1] %vm435_vm6, %v425_v37  ;;  %v427_v58 = vld [vmem:[%s7490_s30 + $0x10] sm:$0x1]  ;;  %v298_v53 = vld [vmem:[%s7490_s30 + $0x16] sm:$0x1]  ;;  %1168 = vrot.lane.b32.xlu0 %v7629_v35, %s7401_s4 }
  0x60   : > { %279 = vst.msk [vmem:[#allocation2 + $0x8] sm:$0x1] %vm270_vm1, %v262_v51  ;;  %v331_v54 = vld [vmem:[%s7490_s30 + $0x16] sm:$0x1]  ;;  %v198_v56 = vld [vmem:[%s7490_s30 + $0x14] sm:$0x1] }
  0x61   : > { %412 = vst.msk [vmem:[#allocation2 + $0x9] sm:$0x1] %vm402_vm5, %v395_v47  ;;  %v364_v63 = vld [vmem:[%s7490_s30 + $0x16] sm:$0x1]  ;;  %v231_v57 = vld [vmem:[%s7490_s30 + $0x14] sm:$0x1] }
  0x62   : > { %312 = vst.msk [vmem:[#allocation2 + $0x8] sm:$0x1] %vm303_vm2, %v295_v44  ;;  %v397_v55 = vld [vmem:[%s7490_s30 + $0x16] sm:$0x1]  ;;  %v264_v59 = vld [vmem:[%s7490_s30 + $0x14] sm:$0x1] }
  0x63   : > { %216 = vst.msk [vmem:[#allocation2 + $0xb] sm:$0x1] %vm204_vm12, %v199_v49  ;;  %215 = vst.msk [vmem:[#allocation2 + $0xa] sm:$0x1] %vm204_vm12, %v198_v56  ;;  %v297_v60 = vld [vmem:[%s7490_s30 + $0x14] sm:$0x1] }
  0x64   : > { %445 = vst.msk [vmem:[#allocation2 + $0x9] sm:$0x1] %vm435_vm6, %v428_v43  ;;  %v430_v30 = vld [vmem:[%s7490_s30 + $0x16] sm:$0x1]  ;;  %v330_v61 = vld [vmem:[%s7490_s30 + $0x14] sm:$0x1] }
  0x65   : > { %345 = vst.msk [vmem:[#allocation2 + $0x8] sm:$0x1] %vm336_vm3, %v328_v45  ;;  %v363_v62 = vld [vmem:[%s7490_s30 + $0x14] sm:$0x1]  ;;  %v201_v21 = vld [vmem:[%s7490_s30 + $0x1a] sm:$0x1] }
  0x66   : > { %249 = vst.msk [vmem:[#allocation2 + $0xb] sm:$0x1] %vm237_vm0, %v232_v50  ;;  %248 = vst.msk [vmem:[#allocation2 + $0xa] sm:$0x1] %vm237_vm0, %v231_v57  ;;  %v396_v7 = vld [vmem:[%s7490_s30 + $0x14] sm:$0x1] }
  0x67   : > { %378 = vst.msk [vmem:[#allocation2 + $0x8] sm:$0x1] %vm369_vm4, %v361_v46  ;;  %v234_v0 = vld [vmem:[%s7490_s30 + $0x1a] sm:$0x1]  ;;  %v429_v1 = vld [vmem:[%s7490_s30 + $0x14] sm:$0x1] }
  0x68   : > { %282 = vst.msk [vmem:[#allocation2 + $0xb] sm:$0x1] %vm270_vm1, %v265_v52  ;;  %281 = vst.msk [vmem:[#allocation2 + $0xa] sm:$0x1] %vm270_vm1, %v264_v59  ;;  %v267_v12 = vld [vmem:[%s7490_s30 + $0x1a] sm:$0x1] }
  0x69   : > { %411 = vst.msk [vmem:[#allocation2 + $0x8] sm:$0x1] %vm402_vm5, %v394_v48  ;;  %v300_v2 = vld [vmem:[%s7490_s30 + $0x1a] sm:$0x1]  ;;  %v200_v8 = vld [vmem:[%s7490_s30 + $0x18] sm:$0x1] }
  0x6a   : > { %315 = vst.msk [vmem:[#allocation2 + $0xb] sm:$0x1] %vm303_vm2, %v298_v53  ;;  %314 = vst.msk [vmem:[#allocation2 + $0xa] sm:$0x1] %vm303_vm2, %v297_v60  ;;  %v333_v3 = vld [vmem:[%s7490_s30 + $0x1a] sm:$0x1] }
  0x6b   : > { %444 = vst.msk [vmem:[#allocation2 + $0x8] sm:$0x1] %vm435_vm6, %v427_v58  ;;  %v366_v4 = vld [vmem:[%s7490_s30 + $0x1a] sm:$0x1]  ;;  %v233_v9 = vld [vmem:[%s7490_s30 + $0x18] sm:$0x1] }
  0x6c   : > { %348 = vst.msk [vmem:[#allocation2 + $0xb] sm:$0x1] %vm336_vm3, %v331_v54  ;;  %347 = vst.msk [vmem:[#allocation2 + $0xa] sm:$0x1] %vm336_vm3, %v330_v61  ;;  %v399_v6 = vld [vmem:[%s7490_s30 + $0x1a] sm:$0x1] }
  0x6d   : > { %381 = vst.msk [vmem:[#allocation2 + $0xb] sm:$0x1] %vm369_vm4, %v364_v63  ;;  %380 = vst.msk [vmem:[#allocation2 + $0xa] sm:$0x1] %vm369_vm4, %v363_v62  ;;  %v266_v25 = vld [vmem:[%s7490_s30 + $0x18] sm:$0x1] }
  0x6e   : > { %218 = vst.msk [vmem:[#allocation2 + $0xd] sm:$0x1] %vm204_vm12, %v201_v21  ;;  %v432_v20 = vld [vmem:[%s7490_s30 + $0x1a] sm:$0x1]  ;;  %217 = vst.msk [vmem:[#allocation2 + $0xc] sm:$0x1] %vm204_vm12, %v200_v8 }
  0x6f   : > { %414 = vst.msk [vmem:[#allocation2 + $0xb] sm:$0x1] %vm402_vm5, %v397_v55  ;;  %413 = vst.msk [vmem:[#allocation2 + $0xa] sm:$0x1] %vm402_vm5, %v396_v7  ;;  %v299_v10 = vld [vmem:[%s7490_s30 + $0x18] sm:$0x1] }
  0x70   : > { %251 = vst.msk [vmem:[#allocation2 + $0xd] sm:$0x1] %vm237_vm0, %v234_v0  ;;  %v332_v11 = vld [vmem:[%s7490_s30 + $0x18] sm:$0x1]  ;;  %250 = vst.msk [vmem:[#allocation2 + $0xc] sm:$0x1] %vm237_vm0, %v233_v9 }
  0x71   : > { %447 = vst.msk [vmem:[#allocation2 + $0xb] sm:$0x1] %vm435_vm6, %v430_v30  ;;  %446 = vst.msk [vmem:[#allocation2 + $0xa] sm:$0x1] %vm435_vm6, %v429_v1  ;;  %v365_v26 = vld [vmem:[%s7490_s30 + $0x18] sm:$0x1] }
  0x72   : > { %284 = vst.msk [vmem:[#allocation2 + $0xd] sm:$0x1] %vm270_vm1, %v267_v12  ;;  %v398_v13 = vld [vmem:[%s7490_s30 + $0x18] sm:$0x1]  ;;  %v203_v17 = vld [vmem:[%s7490_s30 + $0x1e] sm:$0x1] }
  0x73   : > { %317 = vst.msk [vmem:[#allocation2 + $0xd] sm:$0x1] %vm303_vm2, %v300_v2  ;;  %v7852_v14 = vld.sshfl [vmem:[%s7490_s30 + $0x4] sm:$0x1 pattern:$0x75316420] }
  0x74   : > { %350 = vst.msk [vmem:[#allocation2 + $0xd] sm:$0x1] %vm336_vm3, %v333_v3  ;;  %v236_v15 = vld [vmem:[%s7490_s30 + $0x1e] sm:$0x1]  ;;  %v431_v22 = vld [vmem:[%s7490_s30 + $0x18] sm:$0x1]  ;;  %1354 = vrot.lane.b32.xlu1 %v7852_v14, %s7402_s5 }
  0x75   : > { %383 = vst.msk [vmem:[#allocation2 + $0xd] sm:$0x1] %vm369_vm4, %v366_v4  ;;  %v269_v16 = vld [vmem:[%s7490_s30 + $0x1e] sm:$0x1]  ;;  %v202_v24 = vld [vmem:[%s7490_s30 + $0x1c] sm:$0x1] }
  0x76   : > { %283 = vst.msk [vmem:[#allocation2 + $0xc] sm:$0x1] %vm270_vm1, %v266_v25  ;;  %v302_v18 = vld [vmem:[%s7490_s30 + $0x1e] sm:$0x1]  ;;  %v235_v27 = vld [vmem:[%s7490_s30 + $0x1c] sm:$0x1] }
  0x77   : > { %220 = vst.msk [vmem:[#allocation2 + $0xf] sm:$0x1] %vm204_vm12, %v203_v17  ;;  %v7863_v19 = vld.sshfl [vmem:[%s7490_s30 + $0x2] sm:$0x1 pattern:$0x75316420] }
  0x78   : > { %416 = vst.msk [vmem:[#allocation2 + $0xd] sm:$0x1] %vm402_vm5, %v399_v6  ;;  %v335_v23 = vld [vmem:[%s7490_s30 + $0x1e] sm:$0x1]  ;;  %v268_v35 = vld [vmem:[%s7490_s30 + $0x1c] sm:$0x1]  ;;  %1352 = vrot.lane.b32.xlu0 %v7863_v19, %s7402_s5 }
  0x79   : > { %316 = vst.msk [vmem:[#allocation2 + $0xc] sm:$0x1] %vm303_vm2, %v299_v10  ;;  %v368_v36 = vld [vmem:[%s7490_s30 + $0x1e] sm:$0x1]  ;;  %v301_v28 = vld [vmem:[%s7490_s30 + $0x1c] sm:$0x1] }
  0x7a   : > { %253 = vst.msk [vmem:[#allocation2 + $0xf] sm:$0x1] %vm237_vm0, %v236_v15  ;;  %v401_v33 = vld [vmem:[%s7490_s30 + $0x1e] sm:$0x1]  ;;  %v334_v31 = vld [vmem:[%s7490_s30 + $0x1c] sm:$0x1] }
  0x7b   : > { %449 = vst.msk [vmem:[#allocation2 + $0xd] sm:$0x1] %vm435_vm6, %v432_v20  ;;  %v434_v41 = vld [vmem:[%s7490_s30 + $0x1e] sm:$0x1]  ;;  %v367_v32 = vld [vmem:[%s7490_s30 + $0x1c] sm:$0x1] }
  0x7c   : > { %349 = vst.msk [vmem:[#allocation2 + $0xc] sm:$0x1] %vm336_vm3, %v332_v11  ;;  %v7886_v29 = vld.sshfl [vmem:[%s7490_s30 + $0x8] sm:$0x1 pattern:$0x75316420] }
  0x7d   : > { %286 = vst.msk [vmem:[#allocation2 + $0xf] sm:$0x1] %vm270_vm1, %v269_v16  ;;  %v400_v34 = vld [vmem:[%s7490_s30 + $0x1c] sm:$0x1]  ;;  %1358 = vrot.lane.b32.xlu1 %v7886_v29, %s7402_s5 }
  0x7e   : > { %382 = vst.msk [vmem:[#allocation2 + $0xc] sm:$0x1] %vm369_vm4, %v365_v26  ;;  %v7897_v37 = vld.sshfl [vmem:[%s7490_s30 + $0x6] sm:$0x1 pattern:$0x75316420] }
  0x7f   : > { %319 = vst.msk [vmem:[#allocation2 + $0xf] sm:$0x1] %vm303_vm2, %v302_v18  ;;  %v433_v38 = vld [vmem:[%s7490_s30 + $0x1c] sm:$0x1]  ;;  %1356 = vrot.lane.b32.xlu0 %v7897_v37, %s7402_s5 }
  0x80   : > { %219 = vst.msk [vmem:[#allocation2 + $0xe] sm:$0x1] %vm204_vm12, %v202_v24  ;;  %v7916_v39 = vld.sshfl [vmem:[%s7490_s30 + $0xc] sm:$0x1 pattern:$0x75316420] }
  0x81   : > { %415 = vst.msk [vmem:[#allocation2 + $0xc] sm:$0x1] %vm402_vm5, %v398_v13  ;;  %v7920_v47 = vld.sshfl [vmem:[%s7490_s30 + $0xa] sm:$0x1 pattern:$0x75316420]  ;;  %1362 = vrot.lane.b32.xlu1 %v7916_v39, %s7402_s5 }
  0x82   : > { %352 = vst.msk [vmem:[#allocation2 + $0xf] sm:$0x1] %vm336_vm3, %v335_v23  ;;  %v7927_v40 = vld.sshfl [vmem:[%s7490_s30 + $0x10] sm:$0x1 pattern:$0x75316420] }
  0x83   : > { %252 = vst.msk [vmem:[#allocation2 + $0xe] sm:$0x1] %vm237_vm0, %v235_v27  ;;  %1360 = vrot.lane.b32.xlu0 %v7920_v47, %s7402_s5  ;;  %v7930_v42 = vld.sshfl [vmem:[%s7490_s30 + $0xe] sm:$0x1 pattern:$0x75316420] }
  0x84   : > { %448 = vst.msk [vmem:[#allocation2 + $0xc] sm:$0x1] %vm435_vm6, %v431_v22  ;;  %v7937_v43 = vld.sshfl [vmem:[%s7490_s30 + $0x14] sm:$0x1 pattern:$0x75316420] }
  0x85   : > { %385 = vst.msk [vmem:[#allocation2 + $0xf] sm:$0x1] %vm369_vm4, %v368_v36  ;;  %1366 = vrot.lane.b32.xlu1 %v7927_v40, %s7402_s5  ;;  %v7940_v51 = vld.sshfl [vmem:[%s7490_s30 + $0x12] sm:$0x1 pattern:$0x75316420] }
  0x86   : > { %285 = vst.msk [vmem:[#allocation2 + $0xe] sm:$0x1] %vm270_vm1, %v268_v35  ;;  %v7947_v44 = vld.sshfl [vmem:[%s7490_s30 + $0x18] sm:$0x1 pattern:$0x75316420] }
  0x87   : > { %418 = vst.msk [vmem:[#allocation2 + $0xf] sm:$0x1] %vm402_vm5, %v401_v33  ;;  %1364 = vrot.lane.b32.xlu0 %v7930_v42, %s7402_s5  ;;  %v7950_v45 = vld.sshfl [vmem:[%s7490_s30 + $0x16] sm:$0x1 pattern:$0x75316420] }
  0x88   : > { %318 = vst.msk [vmem:[#allocation2 + $0xe] sm:$0x1] %vm303_vm2, %v301_v28  ;;  %v7957_v46 = vld.sshfl [vmem:[%s7490_s30 + $0x1c] sm:$0x1 pattern:$0x75316420] }
  0x89   : > { %451 = vst.msk [vmem:[#allocation2 + $0xf] sm:$0x1] %vm435_vm6, %v434_v41  ;;  %1370 = vrot.lane.b32.xlu1 %v7937_v43, %s7402_s5  ;;  %v7960_v48 = vld.sshfl [vmem:[%s7490_s30 + $0x1a] sm:$0x1 pattern:$0x75316420] }
  0x8a   : > { %351 = vst.msk [vmem:[#allocation2 + $0xe] sm:$0x1] %vm336_vm3, %v334_v31  ;;  %v7967_v49 = vld.sshfl [vmem:[%s7490_s30 + $0x20] sm:$0x1 pattern:$0x75316420] }
  0x8b   : > { %384 = vst.msk [vmem:[#allocation2 + $0xe] sm:$0x1] %vm369_vm4, %v367_v32  ;;  %1368 = vrot.lane.b32.xlu0 %v7940_v51, %s7402_s5  ;;  %v7970_v50 = vld.sshfl [vmem:[%s7490_s30 + $0x1e] sm:$0x1 pattern:$0x75316420] }
  0x8c   : > { %417 = vst.msk [vmem:[#allocation2 + $0xe] sm:$0x1] %vm402_vm5, %v400_v34  ;;  %vm2027_vm12 = vcmask 450976   ;;  %vm2654_vm0 = vcmask 549376   ;;  %vm2863_vm1 = vcmask 582176   ;;  %vm3232_vm2 = vcmask 614976  }
  0x8d   : > { %450 = vst.msk [vmem:[#allocation2 + $0xe] sm:$0x1] %vm435_vm6, %v433_v38  ;;  %1374 = vrot.lane.b32.xlu1 %v7947_v44, %s7402_s5  ;;  %vm3601_vm3 = vcmask 647776   ;;  %vm3813_vm4 = vcmask 680576   ;;  %vm4022_vm5 = vcmask 713376   ;;  %vm4231_vm6 = vcmask 746176  }
  0x8f   : > { %1372 = vrot.lane.b32.xlu0 %v7950_v45, %s7402_s5 }
  0x91   : > { %1378 = vrot.lane.b32.xlu1 %v7957_v46, %s7402_s5 }
  0x93   : > { %1376 = vrot.lane.b32.xlu0 %v7960_v48, %s7402_s5  ;;  %v776_v52 = vpop.permute.xlu1 %775 }
  0x94   : > { %822 = vst.msk [vmem:[#allocation2 + $0x2] sm:$0x1] %vm819_vm7, %v776_v52 }
  0x95   : > { %1382 = vrot.lane.b32.xlu1 %v7967_v49, %s7402_s5  ;;  %v772_v58 = vpop.permute.xlu0 %771 }
  0x96   : > { %820 = vst.msk [vmem:[#allocation2] sm:$0x1] %vm819_vm7, %v772_v58  ;;  %v8186_v58 = vld.sshfl [vmem:[%s7490_s30 + $0xa] sm:$0x1 pattern:$0x75316420] }
  0x97   : > { %1380 = vrot.lane.b32.xlu0 %v7970_v50, %s7402_s5  ;;  %v778_v53 = vpop.permute.xlu1 %777 }
  0x98   : > { %823 = vst.msk [vmem:[#allocation2 + $0x3] sm:$0x1] %vm819_vm7, %v778_v53 }
  0x99   : > { %1563 = vrot.lane.b32.xlu1 %v7852_v14, %s7402_s5  ;;  %v774_v54 = vpop.permute.xlu0 %773 }
  0x9a   : > { %821 = vst.msk [vmem:[#allocation2 + $0x1] sm:$0x1] %vm819_vm7, %v774_v54  ;;  %v8195_v54 = vld.sshfl [vmem:[%s7490_s30 + $0x10] sm:$0x1 pattern:$0x75316420] }
  0x9b   : > { %1561 = vrot.lane.b32.xlu0 %v7863_v19, %s7402_s5  ;;  %v782_v63 = vpop.permute.xlu1 %781 }
  0x9c   : > { %825 = vst.msk [vmem:[#allocation2 + $0x5] sm:$0x1] %vm819_vm7, %v782_v63 }
  0x9d   : > { %1567 = vrot.lane.b32.xlu1 %v7886_v29, %s7402_s5  ;;  %v780_v55 = vpop.permute.xlu0 %779 }
  0x9e   : > { %824 = vst.msk [vmem:[#allocation2 + $0x4] sm:$0x1] %vm819_vm7, %v780_v55  ;;  %v8198_v55 = vld.sshfl [vmem:[%s7490_s30 + $0xe] sm:$0x1 pattern:$0x75316420] }
  0x9f   : > { %1565 = vrot.lane.b32.xlu0 %v7897_v37, %s7402_s5  ;;  %v786_v56 = vpop.permute.xlu1 %785 }
  0xa0   : > { %827 = vst.msk [vmem:[#allocation2 + $0x7] sm:$0x1] %vm819_vm7, %v786_v56 }
  0xa1   : > { %1571 = vrot.lane.b32.xlu1 %v7916_v39, %s7402_s5  ;;  %v784_v57 = vpop.permute.xlu0 %783 }
  0xa2   : > { %826 = vst.msk [vmem:[#allocation2 + $0x6] sm:$0x1] %vm819_vm7, %v784_v57  ;;  %v8207_v57 = vld.sshfl [vmem:[%s7490_s30 + $0x14] sm:$0x1 pattern:$0x75316420] }
  0xa3   : > { %1569 = vrot.lane.b32.xlu0 %v7920_v47, %s7402_s5  ;;  %v790_v59 = vpop.permute.xlu1 %789 }
  0xa4   : > { %829 = vst.msk [vmem:[#allocation2 + $0x9] sm:$0x1] %vm819_vm7, %v790_v59 }
  0xa5   : > { %1575 = vrot.lane.b32.xlu1 %v7927_v40, %s7402_s5  ;;  %v788_v60 = vpop.permute.xlu0 %787 }
  0xa6   : > { %828 = vst.msk [vmem:[#allocation2 + $0x8] sm:$0x1] %vm819_vm7, %v788_v60  ;;  %v8210_v60 = vld.sshfl [vmem:[%s7490_s30 + $0x12] sm:$0x1 pattern:$0x75316420] }
  0xa7   : > { %1573 = vrot.lane.b32.xlu0 %v7930_v42, %s7402_s5  ;;  %v794_v30 = vpop.permute.xlu1 %793 }
  0xa8   : > { %831 = vst.msk [vmem:[#allocation2 + $0xb] sm:$0x1] %vm819_vm7, %v794_v30 }
  0xa9   : > { %1579 = vrot.lane.b32.xlu1 %v7937_v43, %s7402_s5  ;;  %v792_v61 = vpop.permute.xlu0 %791 }
  0xaa   : > { %830 = vst.msk [vmem:[#allocation2 + $0xa] sm:$0x1] %vm819_vm7, %v792_v61  ;;  %v8219_v61 = vld.sshfl [vmem:[%s7490_s30 + $0x18] sm:$0x1 pattern:$0x75316420] }
  0xab   : > { %1577 = vrot.lane.b32.xlu0 %v7940_v51, %s7402_s5  ;;  %v798_v62 = vpop.permute.xlu1 %797 }
  0xac   : > { %833 = vst.msk [vmem:[#allocation2 + $0xd] sm:$0x1] %vm819_vm7, %v798_v62 }
  0xad   : > { %1583 = vrot.lane.b32.xlu1 %v7947_v44, %s7402_s5  ;;  %v796_v7 = vpop.permute.xlu0 %795 }
  0xae   : > { %832 = vst.msk [vmem:[#allocation2 + $0xc] sm:$0x1] %vm819_vm7, %v796_v7  ;;  %v8222_v7 = vld.sshfl [vmem:[%s7490_s30 + $0x16] sm:$0x1 pattern:$0x75316420] }
  0xaf   : > { %1581 = vrot.lane.b32.xlu0 %v7950_v45, %s7402_s5  ;;  %v802_v21 = vpop.permute.xlu1 %801 }
  0xb0   : > { %835 = vst.msk [vmem:[#allocation2 + $0xf] sm:$0x1] %vm819_vm7, %v802_v21 }
  0xb1   : > { %1587 = vrot.lane.b32.xlu1 %v7957_v46, %s7402_s5  ;;  %v800_v0 = vpop.permute.xlu0 %799 }
  0xb2   : > { %834 = vst.msk [vmem:[#allocation2 + $0xe] sm:$0x1] %vm819_vm7, %v800_v0  ;;  %v8231_v0 = vld.sshfl [vmem:[%s7490_s30 + $0x1c] sm:$0x1 pattern:$0x75316420] }
  0xb3   : > { %1585 = vrot.lane.b32.xlu0 %v7960_v48, %s7402_s5  ;;  %v1143_v1 = vpop.permute.xlu1 %1142  ;;  %vm4440_vm7 = vcmask 778976  }
  0xb4   : > { %1190 = vst.msk [vmem:[#allocation2 + $0x1] sm:$0x1] %vm1188_vm8, %v1143_v1 }
  0xb5   : > { %1591 = vrot.lane.b32.xlu1 %v7967_v49, %s7402_s5  ;;  %v1141_v12 = vpop.permute.xlu0 %1140 }
  0xb6   : > { %1189 = vst.msk [vmem:[#allocation2] sm:$0x1] %vm1188_vm8, %v1141_v12  ;;  %v8234_v12 = vld.sshfl [vmem:[%s7490_s30 + $0x1a] sm:$0x1 pattern:$0x75316420] }
  0xb7   : > { %1589 = vrot.lane.b32.xlu0 %v7970_v50, %s7402_s5  ;;  %v1147_v2 = vpop.permute.xlu1 %1146 }
  0xb8   : > { %1192 = vst.msk [vmem:[#allocation2 + $0x3] sm:$0x1] %vm1188_vm8, %v1147_v2 }
  0xb9   : > { %1772 = vrot.lane.b32.xlu1 %v7852_v14, %s7402_s5  ;;  %v1145_v3 = vpop.permute.xlu0 %1144 }
  0xba   : > { %1191 = vst.msk [vmem:[#allocation2 + $0x2] sm:$0x1] %vm1188_vm8, %v1145_v3  ;;  %v8243_v3 = vld.sshfl [vmem:[%s7490_s30 + $0x20] sm:$0x1 pattern:$0x75316420] }
  0xbb   : > { %1770 = vrot.lane.b32.xlu0 %v7863_v19, %s7402_s5  ;;  %v1151_v4 = vpop.permute.xlu1 %1150 }
  0xbc   : > { %1194 = vst.msk [vmem:[#allocation2 + $0x5] sm:$0x1] %vm1188_vm8, %v1151_v4 }
  0xbd   : > { %1776 = vrot.lane.b32.xlu1 %v7886_v29, %s7402_s5  ;;  %v1149_v6 = vpop.permute.xlu0 %1148 }
  0xbe   : > { %1193 = vst.msk [vmem:[#allocation2 + $0x4] sm:$0x1] %vm1188_vm8, %v1149_v6  ;;  %v8246_v6 = vld.sshfl [vmem:[%s7490_s30 + $0x1e] sm:$0x1 pattern:$0x75316420] }
  0xbf   : > { %1774 = vrot.lane.b32.xlu0 %v7897_v37, %s7402_s5  ;;  %v1155_v8 = vpop.permute.xlu1 %1154 }
  0xc0   : > { %1196 = vst.msk [vmem:[#allocation2 + $0x7] sm:$0x1] %vm1188_vm8, %v1155_v8 }
  0xc1   : > { %1780 = vrot.lane.b32.xlu1 %v7916_v39, %s7402_s5  ;;  %v1153_v9 = vpop.permute.xlu0 %1152 }
  0xc2   : > { %1195 = vst.msk [vmem:[#allocation2 + $0x6] sm:$0x1] %vm1188_vm8, %v1153_v9 }
  0xc3   : > { %1778 = vrot.lane.b32.xlu0 %v7920_v47, %s7402_s5  ;;  %v1159_v25 = vpop.permute.xlu1 %1158 }
  0xc4   : > { %1198 = vst.msk [vmem:[#allocation2 + $0x9] sm:$0x1] %vm1188_vm8, %v1159_v25 }
  0xc5   : > { %1784 = vrot.lane.b32.xlu1 %v7927_v40, %s7402_s5  ;;  %v1157_v20 = vpop.permute.xlu0 %1156 }
  0xc6   : > { %1197 = vst.msk [vmem:[#allocation2 + $0x8] sm:$0x1] %vm1188_vm8, %v1157_v20 }
  0xc7   : > { %1782 = vrot.lane.b32.xlu0 %v7930_v42, %s7402_s5  ;;  %v1163_v10 = vpop.permute.xlu1 %1162 }
  0xc8   : > { %1200 = vst.msk [vmem:[#allocation2 + $0xb] sm:$0x1] %vm1188_vm8, %v1163_v10 }
  0xc9   : > { %1788 = vrot.lane.b32.xlu1 %v7937_v43, %s7402_s5  ;;  %v1161_v11 = vpop.permute.xlu0 %1160 }
  0xca   : > { %1199 = vst.msk [vmem:[#allocation2 + $0xa] sm:$0x1] %vm1188_vm8, %v1161_v11 }
  0xcb   : > { %1786 = vrot.lane.b32.xlu0 %v7940_v51, %s7402_s5  ;;  %v1167_v26 = vpop.permute.xlu1 %1166 }
  0xcc   : > { %1202 = vst.msk [vmem:[#allocation2 + $0xd] sm:$0x1] %vm1188_vm8, %v1167_v26 }
  0xcd   : > { %1792 = vrot.lane.b32.xlu1 %v7947_v44, %s7402_s5  ;;  %v1165_v13 = vpop.permute.xlu0 %1164 }
  0xce   : > { %1201 = vst.msk [vmem:[#allocation2 + $0xc] sm:$0x1] %vm1188_vm8, %v1165_v13 }
  0xcf   : > { %1790 = vrot.lane.b32.xlu0 %v7950_v45, %s7402_s5  ;;  %v1171_v17 = vpop.permute.xlu1 %1170 }
  0xd0   : > { %1204 = vst.msk [vmem:[#allocation2 + $0xf] sm:$0x1] %vm1188_vm8, %v1171_v17 }
  0xd1   : > { %1796 = vrot.lane.b32.xlu1 %v7957_v46, %s7402_s5  ;;  %v1169_v15 = vpop.permute.xlu0 %1168 }
  0xd2   : > { %1203 = vst.msk [vmem:[#allocation2 + $0xe] sm:$0x1] %vm1188_vm8, %v1169_v15  ;;  %vm4649_vm8 = vcmask 811776  }
  0xd3   : > { %1794 = vrot.lane.b32.xlu0 %v7960_v48, %s7402_s5 }
  0xd5   : > { %1800 = vrot.lane.b32.xlu1 %v7967_v49, %s7402_s5 }
  0xd7   : > { %1798 = vrot.lane.b32.xlu0 %v7970_v50, %s7402_s5 }
  0xd9   : > { %1981 = vrot.lane.b32.xlu1 %v7852_v14, %s7402_s5 }
  0xdb   : > { %1979 = vrot.lane.b32.xlu0 %v7863_v19, %s7402_s5 }
  0xdd   : > { %1985 = vrot.lane.b32.xlu1 %v7886_v29, %s7402_s5 }
  0xdf   : > { %1983 = vrot.lane.b32.xlu0 %v7897_v37, %s7402_s5 }
  0xe1   : > { %1989 = vrot.lane.b32.xlu1 %v7916_v39, %s7402_s5 }
  0xe3   : > { %1987 = vrot.lane.b32.xlu0 %v7920_v47, %s7402_s5 }
  0xe5   : > { %1993 = vrot.lane.b32.xlu1 %v7927_v40, %s7402_s5 }
  0xe6   : > { %v1355_v16 = vpop.permute.xlu1 %1354 }
  0xe7   : > { %1991 = vrot.lane.b32.xlu0 %v7930_v42, %s7402_s5  ;;  %1402 = vst.msk [vmem:[#allocation2 + $0x1] sm:$0x1] %vm1400_vm9, %v1355_v16 }
  0xe9   : > { %1997 = vrot.lane.b32.xlu1 %v7937_v43, %s7402_s5 }
  0xea   : > { %v1353_v18 = vpop.permute.xlu0 %1352 }
  0xeb   : > { %1995 = vrot.lane.b32.xlu0 %v7940_v51, %s7402_s5  ;;  %1401 = vst.msk [vmem:[#allocation2] sm:$0x1] %vm1400_vm9, %v1353_v18 }
  0xed   : > { %2001 = vrot.lane.b32.xlu1 %v7947_v44, %s7402_s5 }
  0xef   : > { %1999 = vrot.lane.b32.xlu0 %v7950_v45, %s7402_s5  ;;  %v1359_v22 = vpop.permute.xlu1 %1358 }
  0xf0   : > { %1404 = vst.msk [vmem:[#allocation2 + $0x3] sm:$0x1] %vm1400_vm9, %v1359_v22 }
  0xf1   : > { %v1357_v23 = vpop.permute.xlu0 %1356  ;;  %2005 = vrot.lane.b32.xlu1 %v7957_v46, %s7402_s5 }
  0xf2   : > { %1403 = vst.msk [vmem:[#allocation2 + $0x2] sm:$0x1] %vm1400_vm9, %v1357_v23 }
  0xf3   : > { %2003 = vrot.lane.b32.xlu0 %v7960_v48, %s7402_s5  ;;  %v1363_v36 = vpop.permute.xlu1 %1362 }
  0xf4   : > { %1406 = vst.msk [vmem:[#allocation2 + $0x5] sm:$0x1] %vm1400_vm9, %v1363_v36 }
  0xf5   : > { %v1361_v33 = vpop.permute.xlu0 %1360  ;;  %2009 = vrot.lane.b32.xlu1 %v7967_v49, %s7402_s5 }
  0xf6   : > { %1405 = vst.msk [vmem:[#allocation2 + $0x4] sm:$0x1] %vm1400_vm9, %v1361_v33 }
  0xf7   : > { %2007 = vrot.lane.b32.xlu0 %v7970_v50, %s7402_s5  ;;  %v1367_v24 = vpop.permute.xlu1 %1366 }
  0xf8   : > { %1408 = vst.msk [vmem:[#allocation2 + $0x7] sm:$0x1] %vm1400_vm9, %v1367_v24 }
  0xf9   : > { %v1365_v27 = vpop.permute.xlu0 %1364  ;;  %2190 = vrot.lane.b32.xlu1 %v7852_v14, %s7402_s5 }
  0xfa   : > { %1407 = vst.msk [vmem:[#allocation2 + $0x6] sm:$0x1] %vm1400_vm9, %v1365_v27 }
  0xfb   : > { %2188 = vrot.lane.b32.xlu0 %v7863_v19, %s7402_s5  ;;  %v1371_v41 = vpop.permute.xlu1 %1370 }
  0xfc   : > { %1410 = vst.msk [vmem:[#allocation2 + $0x9] sm:$0x1] %vm1400_vm9, %v1371_v41 }
  0xfd   : > { %v1369_v35 = vpop.permute.xlu0 %1368  ;;  %2194 = vrot.lane.b32.xlu1 %v7886_v29, %s7402_s5 }
  0xfe   : > { %1409 = vst.msk [vmem:[#allocation2 + $0x8] sm:$0x1] %vm1400_vm9, %v1369_v35 }
  0xff   : > { %2192 = vrot.lane.b32.xlu0 %v7897_v37, %s7402_s5  ;;  %v1375_v28 = vpop.permute.xlu1 %1374 }
 0x100   : > { %1412 = vst.msk [vmem:[#allocation2 + $0xb] sm:$0x1] %vm1400_vm9, %v1375_v28 }
 0x101   : > { %v1373_v31 = vpop.permute.xlu0 %1372  ;;  %2198 = vrot.lane.b32.xlu1 %v7916_v39, %s7402_s5 }
 0x102   : > { %1411 = vst.msk [vmem:[#allocation2 + $0xa] sm:$0x1] %vm1400_vm9, %v1373_v31 }
 0x103   : > { %2196 = vrot.lane.b32.xlu0 %v7920_v47, %s7402_s5  ;;  %v1379_v14 = vpop.permute.xlu1 %1378 }
 0x104   : > { %1414 = vst.msk [vmem:[#allocation2 + $0xd] sm:$0x1] %vm1400_vm9, %v1379_v14 }
 0x105   : > { %v1377_v19 = vpop.permute.xlu0 %1376  ;;  %2202 = vrot.lane.b32.xlu1 %v7927_v40, %s7402_s5 }
 0x106   : > { %1413 = vst.msk [vmem:[#allocation2 + $0xc] sm:$0x1] %vm1400_vm9, %v1377_v19 }
 0x107   : > { %2200 = vrot.lane.b32.xlu0 %v7930_v42, %s7402_s5  ;;  %v1383_v29 = vpop.permute.xlu1 %1382  ;;  %v8159_v42 = vld.sshfl [vmem:[%s7490_s30 + $0x4] sm:$0x1 pattern:$0x75316420] }
 0x108   : > { %1416 = vst.msk [vmem:[#allocation2 + $0xf] sm:$0x1] %vm1400_vm9, %v1383_v29 }
 0x109   : > { %v1381_v32 = vpop.permute.xlu0 %1380  ;;  %2206 = vrot.lane.b32.xlu1 %v7937_v43, %s7402_s5 }
 0x10a   : > { %1415 = vst.msk [vmem:[#allocation2 + $0xe] sm:$0x1] %vm1400_vm9, %v1381_v32  ;;  %vm4858_vm9 = vcmask 844576  }
 0x10b   : > { %2204 = vrot.lane.b32.xlu0 %v7940_v51, %s7402_s5  ;;  %v1564_v34 = vpop.permute.xlu1 %1563  ;;  %v8162_v51 = vld.sshfl [vmem:[%s7490_s30 + $0x2] sm:$0x1 pattern:$0x75316420] }
 0x10c   : > { %1611 = vst.msk [vmem:[#allocation2 + $0x1] sm:$0x1] %vm1609_vm10, %v1564_v34 }
 0x10d   : > { %v1562_v37 = vpop.permute.xlu0 %1561  ;;  %2210 = vrot.lane.b32.xlu1 %v7947_v44, %s7402_s5 }
 0x10e   : > { %1610 = vst.msk [vmem:[#allocation2] sm:$0x1] %vm1609_vm10, %v1562_v37 }
 0x10f   : > { %2208 = vrot.lane.b32.xlu0 %v7950_v45, %s7402_s5  ;;  %v1568_v38 = vpop.permute.xlu1 %1567  ;;  %v8171_v45 = vld.sshfl [vmem:[%s7490_s30 + $0x8] sm:$0x1 pattern:$0x75316420] }
 0x110   : > { %1613 = vst.msk [vmem:[#allocation2 + $0x3] sm:$0x1] %vm1609_vm10, %v1568_v38  ;;  %v6751_v38 = vld.sshfl [vmem:[%s7490_s30 + $0x4] sm:$0x11 pattern:$0x75316420] }
 0x111   : > { %v1566_v39 = vpop.permute.xlu0 %1565  ;;  %2214 = vrot.lane.b32.xlu1 %v7957_v46, %s7402_s5 }
 0x112   : > { %1612 = vst.msk [vmem:[#allocation2 + $0x2] sm:$0x1] %vm1609_vm10, %v1566_v39 }
 0x113   : > { %2212 = vrot.lane.b32.xlu0 %v7960_v48, %s7402_s5  ;;  %v1572_v47 = vpop.permute.xlu1 %1571  ;;  %v8174_v48 = vld.sshfl [vmem:[%s7490_s30 + $0x6] sm:$0x1 pattern:$0x75316420] }
 0x114   : > { %1615 = vst.msk [vmem:[#allocation2 + $0x5] sm:$0x1] %vm1609_vm10, %v1572_v47  ;;  %v6750_v47 = vld.sshfl [vmem:[%s7490_s30 + $0x2] sm:$0x11 pattern:$0x75316420] }
 0x115   : > { %v1570_v40 = vpop.permute.xlu0 %1569  ;;  %2218 = vrot.lane.b32.xlu1 %v7967_v49, %s7402_s5 }
 0x116   : > { %1614 = vst.msk [vmem:[#allocation2 + $0x4] sm:$0x1] %vm1609_vm10, %v1570_v40  ;;  %v2927_v40 = vcombine.high %v6751_v38, %v6751_v38 }
 0x117   : > { %2216 = vrot.lane.b32.xlu0 %v7970_v50, %s7402_s5  ;;  %v1576_v43 = vpop.permute.xlu1 %1575  ;;  %v8183_v50 = vld.sshfl [vmem:[%s7490_s30 + $0xc] sm:$0x1 pattern:$0x75316420] }
 0x118   : > { %1617 = vst.msk [vmem:[#allocation2 + $0x7] sm:$0x1] %vm1609_vm10, %v1576_v43 }
 0x119   : > { %v1574_v44 = vpop.permute.xlu0 %1573  ;;  %2399 = vrot.lane.b32.xlu1 %v8159_v42, %s7402_s5 }
 0x11a   : > { %1616 = vst.msk [vmem:[#allocation2 + $0x6] sm:$0x1] %vm1609_vm10, %v1574_v44  ;;  %v6753_v44 = vld.sshfl [vmem:[%s7490_s30 + $0x8] sm:$0x11 pattern:$0x75316420] }
 0x11b   : > { %2397 = vrot.lane.b32.xlu0 %v8162_v51, %s7402_s5  ;;  %v1580_v46 = vpop.permute.xlu1 %1579 }
 0x11c   : > { %1619 = vst.msk [vmem:[#allocation2 + $0x9] sm:$0x1] %vm1609_vm10, %v1580_v46 }
 0x11d   : > { %v1578_v49 = vpop.permute.xlu0 %1577  ;;  %2403 = vrot.lane.b32.xlu1 %v8171_v45, %s7402_s5 }
 0x11e   : > { %1618 = vst.msk [vmem:[#allocation2 + $0x8] sm:$0x1] %vm1609_vm10, %v1578_v49  ;;  %v6752_v49 = vld.sshfl [vmem:[%s7490_s30 + $0x6] sm:$0x11 pattern:$0x75316420] }
 0x11f   : > { %2401 = vrot.lane.b32.xlu0 %v8174_v48, %s7402_s5  ;;  %v1584_v52 = vpop.permute.xlu1 %1583 }
 0x120   : > { %1621 = vst.msk [vmem:[#allocation2 + $0xb] sm:$0x1] %vm1609_vm10, %v1584_v52  ;;  %v3050_v52 = vshrl.u32 %v6751_v38, 16 }
 0x121   : > { %v1582_v53 = vpop.permute.xlu0 %1581  ;;  %2407 = vrot.lane.b32.xlu1 %v8183_v50, %s7402_s5 }
 0x122   : > { %1620 = vst.msk [vmem:[#allocation2 + $0xa] sm:$0x1] %vm1609_vm10, %v1582_v53  ;;  %v3055_v53 = vshll.u32 %v2927_v40, 16 }
 0x123   : > { %2405 = vrot.lane.b32.xlu0 %v8186_v58, %s7402_s5  ;;  %v1588_v63 = vpop.permute.xlu1 %1587 }
 0x124   : > { %1623 = vst.msk [vmem:[#allocation2 + $0xd] sm:$0x1] %vm1609_vm10, %v1588_v63  ;;  %v2943_v63 = vcombine.high %v6753_v44, %v6753_v44 }
 0x125   : > { %v1586_v56 = vpop.permute.xlu0 %1585  ;;  %2411 = vrot.lane.b32.xlu1 %v8195_v54, %s7402_s5 }
 0x126   : > { %1622 = vst.msk [vmem:[#allocation2 + $0xc] sm:$0x1] %vm1609_vm10, %v1586_v56 }
 0x127   : > { %2409 = vrot.lane.b32.xlu0 %v8198_v55, %s7402_s5  ;;  %v1592_v59 = vpop.permute.xlu1 %1591 }
 0x128   : > { %1625 = vst.msk [vmem:[#allocation2 + $0xf] sm:$0x1] %vm1609_vm10, %v1592_v59  ;;  %v3041_v59 = vshrl.u32 %v6750_v47, 16 }
 0x129   : > { %v1590_v30 = vpop.permute.xlu0 %1589  ;;  %2415 = vrot.lane.b32.xlu1 %v8207_v57, %s7402_s5 }
 0x12a   : > { %1624 = vst.msk [vmem:[#allocation2 + $0xe] sm:$0x1] %vm1609_vm10, %v1590_v30  ;;  %vm6235_vm10 = vcmask 1043456  }
 0x12b   : > { %2413 = vrot.lane.b32.xlu0 %v8210_v60, %s7402_s5  ;;  %v1773_v62 = vpop.permute.xlu1 %1772 }
 0x12c   : > { %1820 = vst.msk [vmem:[#allocation2 + $0x1] sm:$0x1] %vm1818_vm11, %v1773_v62  ;;  %v2935_v62 = vcombine.high %v6752_v49, %v6752_v49 }
 0x12d   : > { %v1771_v21 = vpop.permute.xlu0 %1770  ;;  %2419 = vrot.lane.b32.xlu1 %v8219_v61, %s7402_s5 }
 0x12e   : > { %1819 = vst.msk [vmem:[#allocation2] sm:$0x1] %vm1818_vm11, %v1771_v21  ;;  %v6755_v21 = vld.sshfl [vmem:[%s7490_s30 + $0xc] sm:$0x11 pattern:$0x75316420] }
 0x12f   : > { %2417 = vrot.lane.b32.xlu0 %v8222_v7, %s7402_s5  ;;  %v1777_v1 = vpop.permute.xlu1 %1776 }
 0x130   : > { %1822 = vst.msk [vmem:[#allocation2 + $0x3] sm:$0x1] %vm1818_vm11, %v1777_v1 }
 0x131   : > { %v1775_v2 = vpop.permute.xlu0 %1774  ;;  %2423 = vrot.lane.b32.xlu1 %v8231_v0, %s7402_s5 }
 0x132   : > { %1821 = vst.msk [vmem:[#allocation2 + $0x2] sm:$0x1] %vm1818_vm11, %v1775_v2  ;;  %v6754_v2 = vld.sshfl [vmem:[%s7490_s30 + $0xa] sm:$0x11 pattern:$0x75316420] }
 0x133   : > { %2421 = vrot.lane.b32.xlu0 %v8234_v12, %s7402_s5  ;;  %v1781_v4 = vpop.permute.xlu1 %1780 }
 0x134   : > { %1824 = vst.msk [vmem:[#allocation2 + $0x5] sm:$0x1] %vm1818_vm11, %v1781_v4  ;;  %v8358_v4 = vsel %vm7496_vm15, %v3050_v52, %v3055_v53 }
 0x135   : > { %v1779_v8 = vpop.permute.xlu0 %1778  ;;  %2427 = vrot.lane.b32.xlu1 %v8243_v3, %s7402_s5 }
 0x136   : > { %1823 = vst.msk [vmem:[#allocation2 + $0x4] sm:$0x1] %vm1818_vm11, %v1779_v8  ;;  %v3068_v8 = vshrl.u32 %v6753_v44, 16 }
 0x137   : > { %2425 = vrot.lane.b32.xlu0 %v8246_v6, %s7402_s5  ;;  %v1785_v9 = vpop.permute.xlu1 %1784  ;;  %v6760_v44 = vld.sshfl [vmem:[%s7490_s30 + $0x16] sm:$0x11 pattern:$0x75316420] }
 0x138   : > { %1826 = vst.msk [vmem:[#allocation2 + $0x7] sm:$0x1] %vm1818_vm11, %v1785_v9  ;;  %v3073_v9 = vshll.u32 %v2943_v63, 16 }
 0x139   : > { %v1783_v25 = vpop.permute.xlu0 %1782  ;;  %2608 = vrot.lane.b32.xlu1 %v8159_v42, %s7402_s5 }
 0x13a   : > { %1825 = vst.msk [vmem:[#allocation2 + $0x6] sm:$0x1] %vm1818_vm11, %v1783_v25  ;;  %v2959_v25 = vcombine.high %v6755_v21, %v6755_v21 }
 0x13b   : > { %2606 = vrot.lane.b32.xlu0 %v8162_v51, %s7402_s5  ;;  %v1789_v20 = vpop.permute.xlu1 %1788 }
 0x13c   : > { %1828 = vst.msk [vmem:[#allocation2 + $0x9] sm:$0x1] %vm1818_vm11, %v1789_v20 }
 0x13d   : > { %v1787_v10 = vpop.permute.xlu0 %1786  ;;  %2612 = vrot.lane.b32.xlu1 %v8171_v45, %s7402_s5 }
 0x13e   : > { %1827 = vst.msk [vmem:[#allocation2 + $0x8] sm:$0x1] %vm1818_vm11, %v1787_v10 }
 0x13f   : > { %2610 = vrot.lane.b32.xlu0 %v8174_v48, %s7402_s5  ;;  %v1793_v11 = vpop.permute.xlu1 %1792 }
 0x140   : > { %1830 = vst.msk [vmem:[#allocation2 + $0xb] sm:$0x1] %vm1818_vm11, %v1793_v11  ;;  %v3059_v11 = vshrl.u32 %v6752_v49, 16 }
 0x141   : > { %v1791_v26 = vpop.permute.xlu0 %1790  ;;  %2616 = vrot.lane.b32.xlu1 %v8183_v50, %s7402_s5 }
 0x142   : > { %1829 = vst.msk [vmem:[#allocation2 + $0xa] sm:$0x1] %vm1818_vm11, %v1791_v26  ;;  %v3064_v26 = vshll.u32 %v2935_v62, 16  ;;  %v2999_v62 = vcombine.high %v6760_v44, %v6760_v44 }
 0x143   : > { %2614 = vrot.lane.b32.xlu0 %v8186_v58, %s7402_s5  ;;  %v1797_v13 = vpop.permute.xlu1 %1796 }
 0x144   : > { %1832 = vst.msk [vmem:[#allocation2 + $0xd] sm:$0x1] %vm1818_vm11, %v1797_v13  ;;  %v2951_v13 = vcombine.high %v6754_v2, %v6754_v2 }
 0x145   : > { %v1795_v17 = vpop.permute.xlu0 %1794  ;;  %2620 = vrot.lane.b32.xlu1 %v8195_v54, %s7402_s5 }
 0x146   : > { %1831 = vst.msk [vmem:[#allocation2 + $0xc] sm:$0x1] %vm1818_vm11, %v1795_v17  ;;  %v6757_v17 = vld.sshfl [vmem:[%s7490_s30 + $0x10] sm:$0x11 pattern:$0x75316420] }
 0x147   : > { %2618 = vrot.lane.b32.xlu0 %v8198_v55, %s7402_s5  ;;  %v1801_v15 = vpop.permute.xlu1 %1800 }
 0x148   : > { %1834 = vst.msk [vmem:[#allocation2 + $0xf] sm:$0x1] %vm1818_vm11, %v1801_v15 }
 0x149   : > { %v1799_v16 = vpop.permute.xlu0 %1798  ;;  %2624 = vrot.lane.b32.xlu1 %v8207_v57, %s7402_s5 }
 0x14a   : > { %1833 = vst.msk [vmem:[#allocation2 + $0xe] sm:$0x1] %vm1818_vm11, %v1799_v16  ;;  %v6756_v16 = vld.sshfl [vmem:[%s7490_s30 + $0xe] sm:$0x11 pattern:$0x75316420] }
 0x14b   : > { %2622 = vrot.lane.b32.xlu0 %v8210_v60, %s7402_s5  ;;  %v1982_v18 = vpop.permute.xlu1 %1981  ;;  %vm5276_vm11 = vcmask 910176  }
 0x14c   : > { %2029 = vst.msk [vmem:[#allocation2 + $0x1] sm:$0x1] %vm2027_vm12, %v1982_v18  ;;  %v8374_v18 = vsel %vm7496_vm15, %v3068_v8, %v3073_v9 }
 0x14d   : > { %v1980_v22 = vpop.permute.xlu0 %1979  ;;  %2628 = vrot.lane.b32.xlu1 %v8219_v61, %s7402_s5 }
 0x14e   : > { %2028 = vst.msk [vmem:[#allocation2] sm:$0x1] %vm2027_vm12, %v1980_v22  ;;  %v3086_v22 = vshrl.u32 %v6755_v21, 16 }
 0x14f   : > { %2626 = vrot.lane.b32.xlu0 %v8222_v7, %s7402_s5  ;;  %v1986_v23 = vpop.permute.xlu1 %1985  ;;  %v6763_v21 = vld.sshfl [vmem:[%s7490_s30 + $0x1c] sm:$0x11 pattern:$0x75316420] }
 0x150   : > { %2031 = vst.msk [vmem:[#allocation2 + $0x3] sm:$0x1] %vm2027_vm12, %v1986_v23  ;;  %v3091_v23 = vshll.u32 %v2959_v25, 16 }
 0x151   : > { %v1984_v36 = vpop.permute.xlu0 %1983  ;;  %2632 = vrot.lane.b32.xlu1 %v8231_v0, %s7402_s5 }
 0x152   : > { %2030 = vst.msk [vmem:[#allocation2 + $0x2] sm:$0x1] %vm2027_vm12, %v1984_v36  ;;  %v2975_v36 = vcombine.high %v6757_v17, %v6757_v17 }
 0x153   : > { %2630 = vrot.lane.b32.xlu0 %v8234_v12, %s7402_s5  ;;  %v1990_v33 = vpop.permute.xlu1 %1989 }
 0x154   : > { %2033 = vst.msk [vmem:[#allocation2 + $0x5] sm:$0x1] %vm2027_vm12, %v1990_v33 }
 0x155   : > { %v1988_v24 = vpop.permute.xlu0 %1987  ;;  %2636 = vrot.lane.b32.xlu1 %v8243_v3, %s7402_s5 }
 0x156   : > { %2032 = vst.msk [vmem:[#allocation2 + $0x4] sm:$0x1] %vm2027_vm12, %v1988_v24  ;;  %v8378_v24 = vsel %vm7496_vm15, %v3059_v11, %v3064_v26 }
 0x157   : > { %2634 = vrot.lane.b32.xlu0 %v8246_v6, %s7402_s5  ;;  %v1994_v27 = vpop.permute.xlu1 %1993 }
 0x158   : > { %2035 = vst.msk [vmem:[#allocation2 + $0x7] sm:$0x1] %vm2027_vm12, %v1994_v27  ;;  %v3077_v27 = vshrl.u32 %v6754_v2, 16 }
 0x159   : > { %v1992_v41 = vpop.permute.xlu0 %1991  ;;  %2817 = vrot.lane.b32.xlu1 %v8159_v42, %s7402_s5  ;;  %v6762_v2 = vld.sshfl [vmem:[%s7490_s30 + $0x1a] sm:$0x11 pattern:$0x75316420] }
 0x15a   : > { %2034 = vst.msk [vmem:[#allocation2 + $0x6] sm:$0x1] %vm2027_vm12, %v1992_v41  ;;  %v3082_v41 = vshll.u32 %v2951_v13, 16  ;;  %v3131_v13 = vshrl.u32 %v6760_v44, 16 }
 0x15b   : > { %2815 = vrot.lane.b32.xlu0 %v8162_v51, %s7402_s5  ;;  %v1998_v35 = vpop.permute.xlu1 %1997  ;;  %v2919_v51 = vcombine.high %v6750_v47, %v6750_v47 }
 0x15c   : > { %2037 = vst.msk [vmem:[#allocation2 + $0x9] sm:$0x1] %vm2027_vm12, %v1998_v35  ;;  %v2967_v35 = vcombine.high %v6756_v16, %v6756_v16  ;;  %v8394_v38 = vsel %vm7496_vm15, %v3077_v27, %v3082_v41 }
 0x15d   : > { %v1996_v28 = vpop.permute.xlu0 %1995  ;;  %2821 = vrot.lane.b32.xlu1 %v8171_v45, %s7402_s5  ;;  %v3046_v30 = vshll.u32 %v2919_v51, 16 }
 0x15e   : > { %2036 = vst.msk [vmem:[#allocation2 + $0x8] sm:$0x1] %vm2027_vm12, %v1996_v28  ;;  %v6759_v28 = vld.sshfl [vmem:[%s7490_s30 + $0x14] sm:$0x11 pattern:$0x75316420] }
 0x15f   : > { %2819 = vrot.lane.b32.xlu0 %v8174_v48, %s7402_s5  ;;  %v2002_v31 = vpop.permute.xlu1 %2001  ;;  %v8362_v10 = vsel %vm7496_vm15, %v3041_v59, %v3046_v30  ;;  %v3100_v47 = vshll.u32 %v2967_v35, 16  ;;  %v3122_v49 = vshrl.u32 %v6759_v28, 16 }
 0x160   : > { %2039 = vst.msk [vmem:[#allocation2 + $0xb] sm:$0x1] %vm2027_vm12, %v2002_v31 }
 0x161   : > { %v2000_v14 = vpop.permute.xlu0 %1999  ;;  %2825 = vrot.lane.b32.xlu1 %v8183_v50, %s7402_s5 }
 0x162   : > { %2038 = vst.msk [vmem:[#allocation2 + $0xa] sm:$0x1] %vm2027_vm12, %v2000_v14  ;;  %v6758_v14 = vld.sshfl [vmem:[%s7490_s30 + $0x12] sm:$0x11 pattern:$0x75316420] }
 0x163   : > { %2823 = vrot.lane.b32.xlu0 %v8186_v58, %s7402_s5  ;;  %v2006_v19 = vpop.permute.xlu1 %2005  ;;  %v2983_v40 = vcombine.high %v6758_v14, %v6758_v14  ;;  %v3113_v59 = vshrl.u32 %v6758_v14, 16 }
 0x164   : > { %2041 = vst.msk [vmem:[#allocation2 + $0xd] sm:$0x1] %vm2027_vm12, %v2006_v19  ;;  %v8390_v19 = vsel %vm7496_vm15, %v3086_v22, %v3091_v23  ;;  %v6764_v23 = vld.sshfl [vmem:[%s7490_s30 + $0x1e] sm:$0x11 pattern:$0x75316420] }
 0x165   : > { %v2004_v29 = vpop.permute.xlu0 %2003  ;;  %2829 = vrot.lane.b32.xlu1 %v8195_v54, %s7402_s5  ;;  %v3118_v30 = vshll.u32 %v2983_v40, 16 }
 0x166   : > { %2040 = vst.msk [vmem:[#allocation2 + $0xc] sm:$0x1] %vm2027_vm12, %v2004_v29  ;;  %v3104_v29 = vshrl.u32 %v6757_v17, 16  ;;  %v3136_v17 = vshll.u32 %v2999_v62, 16 }
 0x167   : > { %2827 = vrot.lane.b32.xlu0 %v8198_v55, %s7402_s5  ;;  %v2010_v32 = vpop.permute.xlu1 %2009  ;;  %v8426_v26 = vsel %vm7496_vm15, %v3113_v59, %v3118_v30 }
 0x168   : > { %2043 = vst.msk [vmem:[#allocation2 + $0xf] sm:$0x1] %vm2027_vm12, %v2010_v32  ;;  %v3109_v32 = vshll.u32 %v2975_v36, 16 }
 0x169   : > { %v2008_v34 = vpop.permute.xlu0 %2007  ;;  %2833 = vrot.lane.b32.xlu1 %v8207_v57, %s7402_s5 }
 0x16a   : > { %2042 = vst.msk [vmem:[#allocation2 + $0xe] sm:$0x1] %vm2027_vm12, %v2008_v34  ;;  %v2991_v34 = vcombine.high %v6759_v28, %v6759_v28  ;;  %v8442_v28 = vsel %vm7496_vm15, %v3131_v13, %v3136_v17  ;;  %vm5645_vm12 = vcmask 942976  }
 0x16b   : > { %2831 = vrot.lane.b32.xlu0 %v8210_v60, %s7402_s5  ;;  %v2191_v37 = vpop.permute.xlu1 %2190 }
 0x16c   : > { %2238 = vst.msk [vmem:[#allocation2 + $0x1] sm:$0x1] %vm2236_vm13, %v2191_v37  ;;  %v3127_v52 = vshll.u32 %v2991_v34, 16 }
 0x16d   : > { %v2189_v39 = vpop.permute.xlu0 %2188  ;;  %2837 = vrot.lane.b32.xlu1 %v8219_v61, %s7402_s5 }
 0x16e   : > { %2237 = vst.msk [vmem:[#allocation2] sm:$0x1] %vm2236_vm13, %v2189_v39  ;;  %v3095_v39 = vshrl.u32 %v6756_v16, 16  ;;  %v8422_v8 = vsel %vm7496_vm15, %v3122_v49, %v3127_v52 }
 0x16f   : > { %2835 = vrot.lane.b32.xlu0 %v8222_v7, %s7402_s5  ;;  %v2195_v43 = vpop.permute.xlu1 %2194  ;;  %v6765_v16 = vld.sshfl [vmem:[%s7490_s30 + $0x20] sm:$0x11 pattern:$0x75316420] }
 0x170   : > { %2240 = vst.msk [vmem:[#allocation2 + $0x3] sm:$0x1] %vm2236_vm13, %v2195_v43  ;;  %v6761_v43 = vld.sshfl [vmem:[%s7490_s30 + $0x18] sm:$0x11 pattern:$0x75316420]  ;;  %v3039_v41 = vcombine.high %v6765_v16, %v6765_v16 }
 0x171   : > { %v2193_v46 = vpop.permute.xlu0 %2192  ;;  %2841 = vrot.lane.b32.xlu1 %v8231_v0, %s7402_s5  ;;  %v3007_v53 = vcombine.high %v6761_v43, %v6761_v43  ;;  %v3140_v9 = vshrl.u32 %v6761_v43, 16  ;;  %v3167_v43 = vshrl.u32 %v6764_v23, 16 }
 0x172   : > { %2239 = vst.msk [vmem:[#allocation2 + $0x2] sm:$0x1] %vm2236_vm13, %v2193_v46  ;;  %v8406_v46 = vsel %vm7496_vm15, %v3104_v29, %v3109_v32  ;;  %v3031_v29 = vcombine.high %v6764_v23, %v6764_v23 }
 0x173   : > { %2839 = vrot.lane.b32.xlu0 %v8234_v12, %s7402_s5  ;;  %v2199_v56 = vpop.permute.xlu1 %2198  ;;  %v3145_v25 = vshll.u32 %v3007_v53, 16 }
 0x174   : > { %2242 = vst.msk [vmem:[#allocation2 + $0x5] sm:$0x1] %vm2236_vm13, %v2199_v56  ;;  %v8410_v56 = vsel %vm7496_vm15, %v3095_v39, %v3100_v47  ;;  %v3181_v39 = vshll.u32 %v3039_v41, 16 }
 0x175   : > { %v2197_v1 = vpop.permute.xlu0 %2196  ;;  %2845 = vrot.lane.b32.xlu1 %v8243_v3, %s7402_s5  ;;  %v8438_v36 = vsel %vm7496_vm15, %v3140_v9, %v3145_v25 }
 0x176   : > { %2241 = vst.msk [vmem:[#allocation2 + $0x4] sm:$0x1] %vm2236_vm13, %v2197_v1 }
 0x177   : > { %2843 = vrot.lane.b32.xlu0 %v8246_v6, %s7402_s5  ;;  %v2203_v20 = vpop.permute.xlu1 %2202 }
 0x178   : > { %2244 = vst.msk [vmem:[#allocation2 + $0x7] sm:$0x1] %vm2236_vm13, %v2203_v20  ;;  %v3023_v20 = vcombine.high %v6763_v21, %v6763_v21 }
 0x179   : > { %v2201_v15 = vpop.permute.xlu0 %2200  ;;  %3186 = vrot.lane.b32.xlu1 %v8358_v4, %s7403_s6 }
 0x17a   : > { %2243 = vst.msk [vmem:[#allocation2 + $0x6] sm:$0x1] %vm2236_vm13, %v2201_v15  ;;  %v3015_v15 = vcombine.high %v6762_v2, %v6762_v2  ;;  %v3163_v27 = vshll.u32 %v3023_v20, 16 }
 0x17b   : > { %3184 = vrot.lane.b32.xlu0 %v8362_v10, %s7403_s6  ;;  %v2207_v33 = vpop.permute.xlu1 %2206 }
 0x17c   : > { %2246 = vst.msk [vmem:[#allocation2 + $0x9] sm:$0x1] %vm2236_vm13, %v2207_v33  ;;  %v3158_v33 = vshrl.u32 %v6763_v21, 16  ;;  %v3154_v14 = vshll.u32 %v3015_v15, 16 }
 0x17d   : > { %v2205_v31 = vpop.permute.xlu0 %2204  ;;  %3190 = vrot.lane.b32.xlu1 %v8374_v18, %s7403_s6 }
 0x17e   : > { %2245 = vst.msk [vmem:[#allocation2 + $0x8] sm:$0x1] %vm2236_vm13, %v2205_v31  ;;  %v3149_v31 = vshrl.u32 %v6762_v2, 16  ;;  %v3165_v34 = vsel %vm7496_vm15, %v3158_v33, %v3163_v27 }
 0x17f   : > { %3188 = vrot.lane.b32.xlu0 %v8378_v24, %s7403_s6  ;;  %v2211_v37 = vpop.permute.xlu1 %2210  ;;  %v8562_v27 = vld.sshfl [vmem:[%s7490_s30 + $0x4] sm:$0x1 pattern:$0x75316420] }
 0x180   : > { %2248 = vst.msk [vmem:[#allocation2 + $0xb] sm:$0x1] %vm2236_vm13, %v2211_v37  ;;  %v3176_v37 = vshrl.u32 %v6765_v16, 16  ;;  %v3156_v40 = vsel %vm7496_vm15, %v3149_v31, %v3154_v14 }
 0x181   : > { %v2209_v51 = vpop.permute.xlu0 %2208  ;;  %3194 = vrot.lane.b32.xlu1 %v8390_v19, %s7403_s6 }
 0x182   : > { %2247 = vst.msk [vmem:[#allocation2 + $0xa] sm:$0x1] %vm2236_vm13, %v2209_v51  ;;  %v3172_v51 = vshll.u32 %v3031_v29, 16  ;;  %v3183_v49 = vsel %vm7496_vm15, %v3176_v37, %v3181_v39 }
 0x183   : > { %3192 = vrot.lane.b32.xlu0 %v8394_v38, %s7403_s6  ;;  %v2215_v63 = vpop.permute.xlu1 %2214  ;;  %v8607_v37 = vld.sshfl [vmem:[%s7490_s30 + $0x18] sm:$0x1 pattern:$0x75316420] }
 0x184   : > { %2250 = vst.msk [vmem:[#allocation2 + $0xd] sm:$0x1] %vm2236_vm13, %v2215_v63  ;;  %v3174_v53 = vsel %vm7496_vm15, %v3167_v43, %v3172_v51  ;;  %v8625_v43 = vld.sshfl [vmem:[%s7490_s30 + $0x20] sm:$0x1 pattern:$0x75316420] }
 0x185   : > { %v2213_v1 = vpop.permute.xlu0 %2212  ;;  %3198 = vrot.lane.b32.xlu1 %v8406_v46, %s7403_s6 }
 0x186   : > { %2249 = vst.msk [vmem:[#allocation2 + $0xc] sm:$0x1] %vm2236_vm13, %v2213_v1 }
 0x187   : > { %3196 = vrot.lane.b32.xlu0 %v8410_v56, %s7403_s6  ;;  %v2219_v11 = vpop.permute.xlu1 %2218 }
 0x188   : > { %2252 = vst.msk [vmem:[#allocation2 + $0xf] sm:$0x1] %vm2236_vm13, %v2219_v11 }
 0x189   : > { %v2217_v22 = vpop.permute.xlu0 %2216  ;;  %3202 = vrot.lane.b32.xlu1 %v8422_v8, %s7403_s6 }
 0x18a   : > { %2251 = vst.msk [vmem:[#allocation2 + $0xe] sm:$0x1] %vm2236_vm13, %v2217_v22  ;;  %vm6014_vm13 = vcmask 975776  }
 0x18b   : > { %3200 = vrot.lane.b32.xlu0 %v8426_v26, %s7403_s6  ;;  %v2400_v35 = vpop.permute.xlu1 %2399 }
 0x18c   : > { %2447 = vst.msk [vmem:[#allocation2 + $0x1] sm:$0x1] %vm2445_vm14, %v2400_v35  ;;  %v8571_v35 = vld.sshfl [vmem:[%s7490_s30 + $0x8] sm:$0x1 pattern:$0x75316420] }
 0x18d   : > { %v2398_v32 = vpop.permute.xlu0 %2397  ;;  %3206 = vrot.lane.b32.xlu1 %v8438_v36, %s7403_s6 }
 0x18e   : > { %2446 = vst.msk [vmem:[#allocation2] sm:$0x1] %vm2445_vm14, %v2398_v32 }
 0x18f   : > { %3204 = vrot.lane.b32.xlu0 %v8442_v28, %s7403_s6  ;;  %v2404_v47 = vpop.permute.xlu1 %2403 }
 0x190   : > { %2449 = vst.msk [vmem:[#allocation2 + $0x3] sm:$0x1] %vm2445_vm14, %v2404_v47  ;;  %v8616_v47 = vld.sshfl [vmem:[%s7490_s30 + $0x1c] sm:$0x1 pattern:$0x75316420] }
 0x191   : > { %v2402_v44 = vpop.permute.xlu0 %2401  ;;  %3210 = vrot.lane.b32.xlu1 %v3165_v34, %s7403_s6 }
 0x192   : > { %2448 = vst.msk [vmem:[#allocation2 + $0x2] sm:$0x1] %vm2445_vm14, %v2402_v44 }
 0x193   : > { %3208 = vrot.lane.b32.xlu0 %v3156_v40, %s7403_s6  ;;  %v2408_v52 = vpop.permute.xlu1 %2407 }
 0x194   : > { %2451 = vst.msk [vmem:[#allocation2 + $0x5] sm:$0x1] %vm2445_vm14, %v2408_v52  ;;  %v8643_v52 = vld.sshfl [vmem:[%s7490_s30 + $0xa] sm:$0x1 pattern:$0x75316420] }
 0x195   : > { %v2406_v63 = vpop.permute.xlu0 %2405  ;;  %3214 = vrot.lane.b32.xlu1 %v3183_v49, %s7403_s6 }
 0x196   : > { %2450 = vst.msk [vmem:[#allocation2 + $0x4] sm:$0x1] %vm2445_vm14, %v2406_v63 }
 0x197   : > { %3212 = vrot.lane.b32.xlu0 %v3174_v53, %s7403_s6  ;;  %v2412_v59 = vpop.permute.xlu1 %2411 }
 0x198   : > { %2453 = vst.msk [vmem:[#allocation2 + $0x7] sm:$0x1] %vm2445_vm14, %v2412_v59  ;;  %v8652_v59 = vld.sshfl [vmem:[%s7490_s30 + $0xe] sm:$0x1 pattern:$0x75316420] }
 0x199   : > { %v2410_v30 = vpop.permute.xlu0 %2409  ;;  %3555 = vrot.lane.b32.xlu1 %v8358_v4, %s7403_s6 }
 0x19a   : > { %2452 = vst.msk [vmem:[#allocation2 + $0x6] sm:$0x1] %vm2445_vm14, %v2410_v30 }
 0x19b   : > { %3553 = vrot.lane.b32.xlu0 %v8362_v10, %s7403_s6  ;;  %v2416_v62 = vpop.permute.xlu1 %2415 }
 0x19c   : > { %2455 = vst.msk [vmem:[#allocation2 + $0x9] sm:$0x1] %vm2445_vm14, %v2416_v62 }
 0x19d   : > { %v2414_v21 = vpop.permute.xlu0 %2413  ;;  %3559 = vrot.lane.b32.xlu1 %v8374_v18, %s7403_s6 }
 0x19e   : > { %2454 = vst.msk [vmem:[#allocation2 + $0x8] sm:$0x1] %vm2445_vm14, %v2414_v21  ;;  %v8661_v21 = vld.sshfl [vmem:[%s7490_s30 + $0x12] sm:$0x1 pattern:$0x75316420] }
 0x19f   : > { %3557 = vrot.lane.b32.xlu0 %v8378_v24, %s7403_s6  ;;  %v2420_v1 = vpop.permute.xlu1 %2419 }
 0x1a0   : > { %2457 = vst.msk [vmem:[#allocation2 + $0xb] sm:$0x1] %vm2445_vm14, %v2420_v1 }
 0x1a1   : > { %v2418_v2 = vpop.permute.xlu0 %2417  ;;  %3563 = vrot.lane.b32.xlu1 %v8390_v19, %s7403_s6 }
 0x1a2   : > { %2456 = vst.msk [vmem:[#allocation2 + $0xa] sm:$0x1] %vm2445_vm14, %v2418_v2 }
 0x1a3   : > { %3561 = vrot.lane.b32.xlu0 %v8394_v38, %s7403_s6  ;;  %v2424_v4 = vpop.permute.xlu1 %2423 }
 0x1a4   : > { %2459 = vst.msk [vmem:[#allocation2 + $0xd] sm:$0x1] %vm2445_vm14, %v2424_v4  ;;  %v8670_v4 = vld.sshfl [vmem:[%s7490_s30 + $0x16] sm:$0x1 pattern:$0x75316420] }
 0x1a5   : > { %v2422_v10 = vpop.permute.xlu0 %2421  ;;  %3567 = vrot.lane.b32.xlu1 %v8406_v46, %s7403_s6 }
 0x1a6   : > { %2458 = vst.msk [vmem:[#allocation2 + $0xc] sm:$0x1] %vm2445_vm14, %v2422_v10 }
 0x1a7   : > { %3565 = vrot.lane.b32.xlu0 %v8410_v56, %s7403_s6  ;;  %v2428_v18 = vpop.permute.xlu1 %2427 }
 0x1a8   : > { %2461 = vst.msk [vmem:[#allocation2 + $0xf] sm:$0x1] %vm2445_vm14, %v2428_v18 }
 0x1a9   : > { %v2426_v24 = vpop.permute.xlu0 %2425  ;;  %3571 = vrot.lane.b32.xlu1 %v8422_v8, %s7403_s6 }
 0x1aa   : > { %2460 = vst.msk [vmem:[#allocation2 + $0xe] sm:$0x1] %vm2445_vm14, %v2426_v24  ;;  %v8679_v24 = vld.sshfl [vmem:[%s7490_s30 + $0x1a] sm:$0x1 pattern:$0x75316420] }
 0x1ab   : > { %3569 = vrot.lane.b32.xlu0 %v8426_v26, %s7403_s6  ;;  %v2609_v19 = vpop.permute.xlu1 %2608  ;;  %vm6228_vm14 = vcmask 982016  }
 0x1ac   : > { %2656 = vst.msk [vmem:[#allocation2 + $0x1] sm:$0x1] %vm2654_vm0, %v2609_v19 }
 0x1ad   : > { %v2607_v38 = vpop.permute.xlu0 %2606  ;;  %3575 = vrot.lane.b32.xlu1 %v8438_v36, %s7403_s6 }
 0x1ae   : > { %2655 = vst.msk [vmem:[#allocation2] sm:$0x1] %vm2654_vm0, %v2607_v38 }
 0x1af   : > { %3573 = vrot.lane.b32.xlu0 %v8442_v28, %s7403_s6  ;;  %v2613_v46 = vpop.permute.xlu1 %2612  ;;  %v8580_v28 = vld.sshfl [vmem:[%s7490_s30 + $0xc] sm:$0x1 pattern:$0x75316420] }
 0x1b0   : > { %2658 = vst.msk [vmem:[#allocation2 + $0x3] sm:$0x1] %vm2654_vm0, %v2613_v46  ;;  %v8688_v46 = vld.sshfl [vmem:[%s7490_s30 + $0x1e] sm:$0x1 pattern:$0x75316420] }
 0x1b1   : > { %v2611_v56 = vpop.permute.xlu0 %2610  ;;  %3579 = vrot.lane.b32.xlu1 %v3165_v34, %s7403_s6 }
 0x1b2   : > { %2657 = vst.msk [vmem:[#allocation2 + $0x2] sm:$0x1] %vm2654_vm0, %v2611_v56 }
 0x1b3   : > { %3577 = vrot.lane.b32.xlu0 %v3156_v40, %s7403_s6  ;;  %v2617_v8 = vpop.permute.xlu1 %2616 }
 0x1b4   : > { %2660 = vst.msk [vmem:[#allocation2 + $0x5] sm:$0x1] %vm2654_vm0, %v2617_v8 }
 0x1b5   : > { %v2615_v9 = vpop.permute.xlu0 %2614  ;;  %3583 = vrot.lane.b32.xlu1 %v3183_v49, %s7403_s6 }
 0x1b6   : > { %2659 = vst.msk [vmem:[#allocation2 + $0x4] sm:$0x1] %vm2654_vm0, %v2615_v9 }
 0x1b7   : > { %3581 = vrot.lane.b32.xlu0 %v3174_v53, %s7403_s6  ;;  %v2621_v25 = vpop.permute.xlu1 %2620 }
 0x1b8   : > { %2662 = vst.msk [vmem:[#allocation2 + $0x7] sm:$0x1] %vm2654_vm0, %v2621_v25 }
 0x1b9   : > { %v2619_v20 = vpop.permute.xlu0 %2618  ;;  %3767 = vrot.lane.b32.xlu1 %v8174_v48, %s7404_s7 }
 0x1ba   : > { %2661 = vst.msk [vmem:[#allocation2 + $0x6] sm:$0x1] %vm2654_vm0, %v2619_v20 }
 0x1bb   : > { %3765 = vrot.lane.b32.xlu0 %v8159_v42, %s7404_s7  ;;  %v2625_v11 = vpop.permute.xlu1 %2624 }
 0x1bc   : > { %2664 = vst.msk [vmem:[#allocation2 + $0x9] sm:$0x1] %vm2654_vm0, %v2625_v11 }
 0x1bd   : > { %v2623_v26 = vpop.permute.xlu0 %2622  ;;  %3771 = vrot.lane.b32.xlu1 %v8186_v58, %s7404_s7 }
 0x1be   : > { %2663 = vst.msk [vmem:[#allocation2 + $0x8] sm:$0x1] %vm2654_vm0, %v2623_v26 }
 0x1bf   : > { %3769 = vrot.lane.b32.xlu0 %v8171_v45, %s7404_s7  ;;  %v2629_v13 = vpop.permute.xlu1 %2628 }
 0x1c0   : > { %2666 = vst.msk [vmem:[#allocation2 + $0xb] sm:$0x1] %vm2654_vm0, %v2629_v13 }
 0x1c1   : > { %v2627_v17 = vpop.permute.xlu0 %2626  ;;  %3775 = vrot.lane.b32.xlu1 %v8198_v55, %s7404_s7 }
 0x1c2   : > { %2665 = vst.msk [vmem:[#allocation2 + $0xa] sm:$0x1] %vm2654_vm0, %v2627_v17 }
 0x1c3   : > { %3773 = vrot.lane.b32.xlu0 %v8183_v50, %s7404_s7  ;;  %v2633_v42 = vpop.permute.xlu1 %2632 }
 0x1c4   : > { %2668 = vst.msk [vmem:[#allocation2 + $0xd] sm:$0x1] %vm2654_vm0, %v2633_v42 }
 0x1c5   : > { %v2631_v15 = vpop.permute.xlu0 %2630  ;;  %3779 = vrot.lane.b32.xlu1 %v8210_v60, %s7404_s7 }
 0x1c6   : > { %2667 = vst.msk [vmem:[#allocation2 + $0xc] sm:$0x1] %vm2654_vm0, %v2631_v15 }
 0x1c7   : > { %3777 = vrot.lane.b32.xlu0 %v8195_v54, %s7404_s7  ;;  %v2637_v45 = vpop.permute.xlu1 %2636 }
 0x1c8   : > { %2670 = vst.msk [vmem:[#allocation2 + $0xf] sm:$0x1] %vm2654_vm0, %v2637_v45 }
 0x1c9   : > { %v2635_v16 = vpop.permute.xlu0 %2634  ;;  %3783 = vrot.lane.b32.xlu1 %v8222_v7, %s7404_s7 }
 0x1ca   : > { %2669 = vst.msk [vmem:[#allocation2 + $0xe] sm:$0x1] %vm2654_vm0, %v2635_v16 }
 0x1cb   : > { %3781 = vrot.lane.b32.xlu0 %v8207_v57, %s7404_s7  ;;  %v2818_v50 = vpop.permute.xlu1 %2817  ;;  %v8553_v57 = vld.sshfl [vmem:[%s7490_s30 + $0x22] sm:$0x1 pattern:$0x75316420] }
 0x1cc   : > { %2865 = vst.msk [vmem:[#allocation2 + $0x1] sm:$0x1] %vm2863_vm1, %v2818_v50 }
 0x1cd   : > { %v2816_v22 = vpop.permute.xlu0 %2815  ;;  %3787 = vrot.lane.b32.xlu1 %v8234_v12, %s7404_s7 }
 0x1ce   : > { %2864 = vst.msk [vmem:[#allocation2] sm:$0x1] %vm2863_vm1, %v2816_v22 }
 0x1cf   : > { %3785 = vrot.lane.b32.xlu0 %v8219_v61, %s7404_s7  ;;  %v2822_v54 = vpop.permute.xlu1 %2821 }
 0x1d0   : > { %2867 = vst.msk [vmem:[#allocation2 + $0x3] sm:$0x1] %vm2863_vm1, %v2822_v54 }
 0x1d1   : > { %v2820_v23 = vpop.permute.xlu0 %2819  ;;  %3791 = vrot.lane.b32.xlu1 %v8246_v6, %s7404_s7 }
 0x1d2   : > { %2866 = vst.msk [vmem:[#allocation2 + $0x2] sm:$0x1] %vm2863_vm1, %v2820_v23 }
 0x1d3   : > { %3789 = vrot.lane.b32.xlu0 %v8231_v0, %s7404_s7  ;;  %v2826_v36 = vpop.permute.xlu1 %2825 }
 0x1d4   : > { %2869 = vst.msk [vmem:[#allocation2 + $0x5] sm:$0x1] %vm2863_vm1, %v2826_v36 }
 0x1d5   : > { %v2824_v33 = vpop.permute.xlu0 %2823  ;;  %3795 = vrot.lane.b32.xlu1 %v8553_v57, %s7404_s7 }
 0x1d6   : > { %2868 = vst.msk [vmem:[#allocation2 + $0x4] sm:$0x1] %vm2863_vm1, %v2824_v33 }
 0x1d7   : > { %3793 = vrot.lane.b32.xlu0 %v8243_v3, %s7404_s7  ;;  %v2830_v61 = vpop.permute.xlu1 %2829 }
 0x1d8   : > { %2871 = vst.msk [vmem:[#allocation2 + $0x7] sm:$0x1] %vm2863_vm1, %v2830_v61 }
 0x1d9   : > { %v2828_v0 = vpop.permute.xlu0 %2827  ;;  %3976 = vrot.lane.b32.xlu1 %v8174_v48, %s7404_s7 }
 0x1da   : > { %2870 = vst.msk [vmem:[#allocation2 + $0x6] sm:$0x1] %vm2863_vm1, %v2828_v0 }
 0x1db   : > { %3974 = vrot.lane.b32.xlu0 %v8562_v27, %s7404_s7  ;;  %v2834_v41 = vpop.permute.xlu1 %2833 }
 0x1dc   : > { %2873 = vst.msk [vmem:[#allocation2 + $0x9] sm:$0x1] %vm2863_vm1, %v2834_v41 }
 0x1dd   : > { %v2832_v3 = vpop.permute.xlu0 %2831  ;;  %3980 = vrot.lane.b32.xlu1 %v8186_v58, %s7404_s7  ;;  %v8589_v58 = vld.sshfl [vmem:[%s7490_s30 + $0x10] sm:$0x1 pattern:$0x75316420] }
 0x1de   : > { %2872 = vst.msk [vmem:[#allocation2 + $0x8] sm:$0x1] %vm2863_vm1, %v2832_v3 }
 0x1df   : > { %3978 = vrot.lane.b32.xlu0 %v8571_v35, %s7404_s7  ;;  %v2838_v48 = vpop.permute.xlu1 %2837 }
 0x1e0   : > { %2875 = vst.msk [vmem:[#allocation2 + $0xb] sm:$0x1] %vm2863_vm1, %v2838_v48 }
 0x1e1   : > { %v2836_v31 = vpop.permute.xlu0 %2835  ;;  %3984 = vrot.lane.b32.xlu1 %v8198_v55, %s7404_s7  ;;  %v8598_v55 = vld.sshfl [vmem:[%s7490_s30 + $0x14] sm:$0x1 pattern:$0x75316420] }
 0x1e2   : > { %2874 = vst.msk [vmem:[#allocation2 + $0xa] sm:$0x1] %vm2863_vm1, %v2836_v31 }
 0x1e3   : > { %3982 = vrot.lane.b32.xlu0 %v8580_v28, %s7404_s7  ;;  %v2842_v14 = vpop.permute.xlu1 %2841 }
 0x1e4   : > { %2877 = vst.msk [vmem:[#allocation2 + $0xd] sm:$0x1] %vm2863_vm1, %v2842_v14 }
 0x1e5   : > { %v2840_v29 = vpop.permute.xlu0 %2839  ;;  %3988 = vrot.lane.b32.xlu1 %v8210_v60, %s7404_s7 }
 0x1e6   : > { %2876 = vst.msk [vmem:[#allocation2 + $0xc] sm:$0x1] %vm2863_vm1, %v2840_v29 }
 0x1e7   : > { %3986 = vrot.lane.b32.xlu0 %v8589_v58, %s7404_s7  ;;  %v2846_v32 = vpop.permute.xlu1 %2845 }
 0x1e8   : > { %2879 = vst.msk [vmem:[#allocation2 + $0xf] sm:$0x1] %vm2863_vm1, %v2846_v32 }
 0x1e9   : > { %v2844_v34 = vpop.permute.xlu0 %2843  ;;  %3992 = vrot.lane.b32.xlu1 %v8222_v7, %s7404_s7 }
 0x1ea   : > { %2878 = vst.msk [vmem:[#allocation2 + $0xe] sm:$0x1] %vm2863_vm1, %v2844_v34 }
 0x1eb   : > { %3990 = vrot.lane.b32.xlu0 %v8598_v55, %s7404_s7  ;;  %v3187_v60 = vpop.permute.xlu1 %3186 }
 0x1ec   : > { %3234 = vst.msk [vmem:[#allocation2 + $0x1] sm:$0x1] %vm3232_vm2, %v3187_v60 }
 0x1ed   : > { %v3185_v39 = vpop.permute.xlu0 %3184  ;;  %3996 = vrot.lane.b32.xlu1 %v8234_v12, %s7404_s7 }
 0x1ee   : > { %3233 = vst.msk [vmem:[#allocation2] sm:$0x1] %vm3232_vm2, %v3185_v39 }
 0x1ef   : > { %3994 = vrot.lane.b32.xlu0 %v8607_v37, %s7404_s7  ;;  %v3191_v7 = vpop.permute.xlu1 %3190 }
 0x1f0   : > { %3236 = vst.msk [vmem:[#allocation2 + $0x3] sm:$0x1] %vm3232_vm2, %v3191_v7 }
 0x1f1   : > { %v3189_v40 = vpop.permute.xlu0 %3188  ;;  %4000 = vrot.lane.b32.xlu1 %v8246_v6, %s7404_s7  ;;  %v8634_v6 = vld.sshfl [vmem:[%s7490_s30 + $0x6] sm:$0x1 pattern:$0x75316420] }
 0x1f2   : > { %3235 = vst.msk [vmem:[#allocation2 + $0x2] sm:$0x1] %vm3232_vm2, %v3189_v40 }
 0x1f3   : > { %3998 = vrot.lane.b32.xlu0 %v8616_v47, %s7404_s7  ;;  %v3195_v12 = vpop.permute.xlu1 %3194 }
 0x1f4   : > { %3238 = vst.msk [vmem:[#allocation2 + $0x5] sm:$0x1] %vm3232_vm2, %v3195_v12 }
 0x1f5   : > { %v3193_v51 = vpop.permute.xlu0 %3192  ;;  %4004 = vrot.lane.b32.xlu1 %v8553_v57, %s7404_s7 }
 0x1f6   : > { %3237 = vst.msk [vmem:[#allocation2 + $0x4] sm:$0x1] %vm3232_vm2, %v3193_v51 }
 0x1f7   : > { %4002 = vrot.lane.b32.xlu0 %v8625_v43, %s7404_s7  ;;  %v3199_v44 = vpop.permute.xlu1 %3198 }
 0x1f8   : > { %3240 = vst.msk [vmem:[#allocation2 + $0x7] sm:$0x1] %vm3232_vm2, %v3199_v44 }
 0x1f9   : > { %v3197_v49 = vpop.permute.xlu0 %3196  ;;  %4185 = vrot.lane.b32.xlu1 %v8634_v6, %s7404_s7 }
 0x1fa   : > { %3239 = vst.msk [vmem:[#allocation2 + $0x6] sm:$0x1] %vm3232_vm2, %v3197_v49 }
 0x1fb   : > { %4183 = vrot.lane.b32.xlu0 %v8562_v27, %s7404_s7  ;;  %v3203_v53 = vpop.permute.xlu1 %3202 }
 0x1fc   : > { %3242 = vst.msk [vmem:[#allocation2 + $0x9] sm:$0x1] %vm3232_vm2, %v3203_v53 }
 0x1fd   : > { %v3201_v63 = vpop.permute.xlu0 %3200  ;;  %4189 = vrot.lane.b32.xlu1 %v8643_v52, %s7404_s7 }
 0x1fe   : > { %3241 = vst.msk [vmem:[#allocation2 + $0x8] sm:$0x1] %vm3232_vm2, %v3201_v63 }
 0x1ff   : > { %4187 = vrot.lane.b32.xlu0 %v8571_v35, %s7404_s7  ;;  %v3207_v30 = vpop.permute.xlu1 %3206 }
 0x200   : > { %3244 = vst.msk [vmem:[#allocation2 + $0xb] sm:$0x1] %vm3232_vm2, %v3207_v30 }
 0x201   : > { %v3205_v62 = vpop.permute.xlu0 %3204  ;;  %4193 = vrot.lane.b32.xlu1 %v8652_v59, %s7404_s7 }
 0x202   : > { %3243 = vst.msk [vmem:[#allocation2 + $0xa] sm:$0x1] %vm3232_vm2, %v3205_v62 }
 0x203   : > { %4191 = vrot.lane.b32.xlu0 %v8580_v28, %s7404_s7  ;;  %v3211_v1 = vpop.permute.xlu1 %3210 }
 0x204   : > { %3246 = vst.msk [vmem:[#allocation2 + $0xd] sm:$0x1] %vm3232_vm2, %v3211_v1 }
 0x205   : > { %v3209_v2 = vpop.permute.xlu0 %3208  ;;  %4197 = vrot.lane.b32.xlu1 %v8661_v21, %s7404_s7 }
 0x206   : > { %3245 = vst.msk [vmem:[#allocation2 + $0xc] sm:$0x1] %vm3232_vm2, %v3209_v2 }
 0x207   : > { %4195 = vrot.lane.b32.xlu0 %v8589_v58, %s7404_s7  ;;  %v3215_v10 = vpop.permute.xlu1 %3214 }
 0x208   : > { %3248 = vst.msk [vmem:[#allocation2 + $0xf] sm:$0x1] %vm3232_vm2, %v3215_v10 }
 0x209   : > { %v3213_v18 = vpop.permute.xlu0 %3212  ;;  %4201 = vrot.lane.b32.xlu1 %v8670_v4, %s7404_s7 }
 0x20a   : > { %3247 = vst.msk [vmem:[#allocation2 + $0xe] sm:$0x1] %vm3232_vm2, %v3213_v18 }
 0x20b   : > { %4199 = vrot.lane.b32.xlu0 %v8598_v55, %s7404_s7  ;;  %v3556_v19 = vpop.permute.xlu1 %3555 }
 0x20c   : > { %3603 = vst.msk [vmem:[#allocation2 + $0x1] sm:$0x1] %vm3601_vm3, %v3556_v19 }
 0x20d   : > { %v3554_v38 = vpop.permute.xlu0 %3553  ;;  %4205 = vrot.lane.b32.xlu1 %v8679_v24, %s7404_s7 }
 0x20e   : > { %3602 = vst.msk [vmem:[#allocation2] sm:$0x1] %vm3601_vm3, %v3554_v38 }
 0x20f   : > { %4203 = vrot.lane.b32.xlu0 %v8607_v37, %s7404_s7  ;;  %v3560_v56 = vpop.permute.xlu1 %3559 }
 0x210   : > { %3605 = vst.msk [vmem:[#allocation2 + $0x3] sm:$0x1] %vm3601_vm3, %v3560_v56 }
 0x211   : > { %v3558_v8 = vpop.permute.xlu0 %3557  ;;  %4209 = vrot.lane.b32.xlu1 %v8688_v46, %s7404_s7 }
 0x212   : > { %3604 = vst.msk [vmem:[#allocation2 + $0x2] sm:$0x1] %vm3601_vm3, %v3558_v8 }
 0x213   : > { %4207 = vrot.lane.b32.xlu0 %v8616_v47, %s7404_s7  ;;  %v3564_v9 = vpop.permute.xlu1 %3563 }
 0x214   : > { %3607 = vst.msk [vmem:[#allocation2 + $0x5] sm:$0x1] %vm3601_vm3, %v3564_v9 }
 0x215   : > { %v3562_v25 = vpop.permute.xlu0 %3561  ;;  %4213 = vrot.lane.b32.xlu1 %v8553_v57, %s7404_s7 }
 0x216   : > { %3606 = vst.msk [vmem:[#allocation2 + $0x4] sm:$0x1] %vm3601_vm3, %v3562_v25 }
 0x217   : > { %4211 = vrot.lane.b32.xlu0 %v8625_v43, %s7404_s7  ;;  %v3568_v20 = vpop.permute.xlu1 %3567 }
 0x218   : > { %3609 = vst.msk [vmem:[#allocation2 + $0x7] sm:$0x1] %vm3601_vm3, %v3568_v20 }
 0x219   : > { %v3566_v11 = vpop.permute.xlu0 %3565  ;;  %4394 = vrot.lane.b32.xlu1 %v8634_v6, %s7404_s7 }
 0x21a   : > { %3608 = vst.msk [vmem:[#allocation2 + $0x6] sm:$0x1] %vm3601_vm3, %v3566_v11 }
 0x21b   : > { %4392 = vrot.lane.b32.xlu0 %v8562_v27, %s7404_s7  ;;  %v3572_v26 = vpop.permute.xlu1 %3571 }
 0x21c   : > { %3611 = vst.msk [vmem:[#allocation2 + $0x9] sm:$0x1] %vm3601_vm3, %v3572_v26 }
 0x21d   : > { %v3570_v13 = vpop.permute.xlu0 %3569  ;;  %4398 = vrot.lane.b32.xlu1 %v8643_v52, %s7404_s7 }
 0x21e   : > { %3610 = vst.msk [vmem:[#allocation2 + $0x8] sm:$0x1] %vm3601_vm3, %v3570_v13 }
 0x21f   : > { %4396 = vrot.lane.b32.xlu0 %v8571_v35, %s7404_s7  ;;  %v3576_v17 = vpop.permute.xlu1 %3575 }
 0x220   : > { %3613 = vst.msk [vmem:[#allocation2 + $0xb] sm:$0x1] %vm3601_vm3, %v3576_v17 }
 0x221   : > { %v3574_v42 = vpop.permute.xlu0 %3573  ;;  %4402 = vrot.lane.b32.xlu1 %v8652_v59, %s7404_s7 }
 0x222   : > { %3612 = vst.msk [vmem:[#allocation2 + $0xa] sm:$0x1] %vm3601_vm3, %v3574_v42 }
 0x223   : > { %4400 = vrot.lane.b32.xlu0 %v8580_v28, %s7404_s7  ;;  %v3580_v15 = vpop.permute.xlu1 %3579 }
 0x224   : > { %3615 = vst.msk [vmem:[#allocation2 + $0xd] sm:$0x1] %vm3601_vm3, %v3580_v15 }
 0x225   : > { %v3578_v45 = vpop.permute.xlu0 %3577  ;;  %4406 = vrot.lane.b32.xlu1 %v8661_v21, %s7404_s7 }
 0x226   : > { %3614 = vst.msk [vmem:[#allocation2 + $0xc] sm:$0x1] %vm3601_vm3, %v3578_v45 }
 0x227   : > { %4404 = vrot.lane.b32.xlu0 %v8589_v58, %s7404_s7  ;;  %v3584_v16 = vpop.permute.xlu1 %3583 }
 0x228   : > { %3617 = vst.msk [vmem:[#allocation2 + $0xf] sm:$0x1] %vm3601_vm3, %v3584_v16 }
 0x229   : > { %v3582_v50 = vpop.permute.xlu0 %3581  ;;  %4410 = vrot.lane.b32.xlu1 %v8670_v4, %s7404_s7 }
 0x22a   : > { %3616 = vst.msk [vmem:[#allocation2 + $0xe] sm:$0x1] %vm3601_vm3, %v3582_v50 }
 0x22b   : > { %4408 = vrot.lane.b32.xlu0 %v8598_v55, %s7404_s7  ;;  %v3768_v22 = vpop.permute.xlu1 %3767 }
 0x22c   : > { %3815 = vst.msk [vmem:[#allocation2 + $0x1] sm:$0x1] %vm3813_vm4, %v3768_v22 }
 0x22d   : > { %v3766_v54 = vpop.permute.xlu0 %3765  ;;  %4414 = vrot.lane.b32.xlu1 %v8679_v24, %s7404_s7 }
 0x22e   : > { %3814 = vst.msk [vmem:[#allocation2] sm:$0x1] %vm3813_vm4, %v3766_v54 }
 0x22f   : > { %4412 = vrot.lane.b32.xlu0 %v8607_v37, %s7404_s7  ;;  %v3772_v23 = vpop.permute.xlu1 %3771 }
 0x230   : > { %3817 = vst.msk [vmem:[#allocation2 + $0x3] sm:$0x1] %vm3813_vm4, %v3772_v23 }
 0x231   : > { %v3770_v36 = vpop.permute.xlu0 %3769  ;;  %4418 = vrot.lane.b32.xlu1 %v8688_v46, %s7404_s7 }
 0x232   : > { %3816 = vst.msk [vmem:[#allocation2 + $0x2] sm:$0x1] %vm3813_vm4, %v3770_v36 }
 0x233   : > { %4416 = vrot.lane.b32.xlu0 %v8616_v47, %s7404_s7  ;;  %v3776_v33 = vpop.permute.xlu1 %3775 }
 0x234   : > { %3819 = vst.msk [vmem:[#allocation2 + $0x5] sm:$0x1] %vm3813_vm4, %v3776_v33 }
 0x235   : > { %v3774_v61 = vpop.permute.xlu0 %3773  ;;  %4422 = vrot.lane.b32.xlu1 %v8553_v57, %s7404_s7 }
 0x236   : > { %3818 = vst.msk [vmem:[#allocation2 + $0x4] sm:$0x1] %vm3813_vm4, %v3774_v61 }
 0x237   : > { %4420 = vrot.lane.b32.xlu0 %v8625_v43, %s7404_s7  ;;  %v3780_v0 = vpop.permute.xlu1 %3779 }
 0x238   : > { %3821 = vst.msk [vmem:[#allocation2 + $0x7] sm:$0x1] %vm3813_vm4, %v3780_v0 }
 0x239   : > { %v3778_v41 = vpop.permute.xlu0 %3777  ;;  %4603 = vrot.lane.b32.xlu1 %v8634_v6, %s7404_s7 }
 0x23a   : > { %3820 = vst.msk [vmem:[#allocation2 + $0x6] sm:$0x1] %vm3813_vm4, %v3778_v41 }
 0x23b   : > { %4601 = vrot.lane.b32.xlu0 %v8562_v27, %s7404_s7  ;;  %v3784_v3 = vpop.permute.xlu1 %3783 }
 0x23c   : > { %3823 = vst.msk [vmem:[#allocation2 + $0x9] sm:$0x1] %vm3813_vm4, %v3784_v3 }
 0x23d   : > { %v3782_v48 = vpop.permute.xlu0 %3781  ;;  %4607 = vrot.lane.b32.xlu1 %v8643_v52, %s7404_s7 }
 0x23e   : > { %3822 = vst.msk [vmem:[#allocation2 + $0x8] sm:$0x1] %vm3813_vm4, %v3782_v48 }
 0x23f   : > { %4605 = vrot.lane.b32.xlu0 %v8571_v35, %s7404_s7  ;;  %v3788_v31 = vpop.permute.xlu1 %3787 }
 0x240   : > { %3825 = vst.msk [vmem:[#allocation2 + $0xb] sm:$0x1] %vm3813_vm4, %v3788_v31 }
 0x241   : > { %v3786_v14 = vpop.permute.xlu0 %3785  ;;  %4611 = vrot.lane.b32.xlu1 %v8652_v59, %s7404_s7 }
 0x242   : > { %3824 = vst.msk [vmem:[#allocation2 + $0xa] sm:$0x1] %vm3813_vm4, %v3786_v14 }
 0x243   : > { %4609 = vrot.lane.b32.xlu0 %v8580_v28, %s7404_s7  ;;  %v3792_v29 = vpop.permute.xlu1 %3791 }
 0x244   : > { %3827 = vst.msk [vmem:[#allocation2 + $0xd] sm:$0x1] %vm3813_vm4, %v3792_v29 }
 0x245   : > { %v3790_v32 = vpop.permute.xlu0 %3789  ;;  %4615 = vrot.lane.b32.xlu1 %v8661_v21, %s7404_s7 }
 0x246   : > { %3826 = vst.msk [vmem:[#allocation2 + $0xc] sm:$0x1] %vm3813_vm4, %v3790_v32 }
 0x247   : > { %4613 = vrot.lane.b32.xlu0 %v8589_v58, %s7404_s7  ;;  %v3796_v34 = vpop.permute.xlu1 %3795 }
 0x248   : > { %3829 = vst.msk [vmem:[#allocation2 + $0xf] sm:$0x1] %vm3813_vm4, %v3796_v34 }
 0x249   : > { %v3794_v60 = vpop.permute.xlu0 %3793  ;;  %4619 = vrot.lane.b32.xlu1 %v8670_v4, %s7404_s7 }
 0x24a   : > { %3828 = vst.msk [vmem:[#allocation2 + $0xe] sm:$0x1] %vm3813_vm4, %v3794_v60  ;;  %v7105_v60 = vld.sshfl [vmem:[%s7490_s30 + $0xa] sm:$0x11 pattern:$0x75316420] }
 0x24b   : > { %4617 = vrot.lane.b32.xlu0 %v8598_v55, %s7404_s7  ;;  %v3977_v39 = vpop.permute.xlu1 %3976 }
 0x24c   : > { %4024 = vst.msk [vmem:[#allocation2 + $0x1] sm:$0x1] %vm4022_vm5, %v3977_v39  ;;  %v7104_v39 = vld.sshfl [vmem:[%s7490_s30 + $0x8] sm:$0x11 pattern:$0x75316420] }
 0x24d   : > { %v3975_v7 = vpop.permute.xlu0 %3974  ;;  %4623 = vrot.lane.b32.xlu1 %v8679_v24, %s7404_s7 }
 0x24e   : > { %4023 = vst.msk [vmem:[#allocation2] sm:$0x1] %vm4022_vm5, %v3975_v7  ;;  %v5356_v7 = vcombine.high %v7105_v60, %v7105_v60 }
 0x24f   : > { %4621 = vrot.lane.b32.xlu0 %v8607_v37, %s7404_s7  ;;  %v3981_v40 = vpop.permute.xlu1 %3980 }
 0x250   : > { %4026 = vst.msk [vmem:[#allocation2 + $0x3] sm:$0x1] %vm4022_vm5, %v3981_v40 }
 0x251   : > { %v3979_v12 = vpop.permute.xlu0 %3978  ;;  %4627 = vrot.lane.b32.xlu1 %v8688_v46, %s7404_s7 }
 0x252   : > { %4025 = vst.msk [vmem:[#allocation2 + $0x2] sm:$0x1] %vm4022_vm5, %v3979_v12 }
 0x253   : > { %4625 = vrot.lane.b32.xlu0 %v8616_v47, %s7404_s7  ;;  %v3985_v51 = vpop.permute.xlu1 %3984 }
 0x254   : > { %4028 = vst.msk [vmem:[#allocation2 + $0x5] sm:$0x1] %vm4022_vm5, %v3985_v51 }
 0x255   : > { %v3983_v44 = vpop.permute.xlu0 %3982  ;;  %4631 = vrot.lane.b32.xlu1 %v8553_v57, %s7404_s7 }
 0x256   : > { %4027 = vst.msk [vmem:[#allocation2 + $0x4] sm:$0x1] %vm4022_vm5, %v3983_v44  ;;  %v5348_v44 = vcombine.high %v7104_v39, %v7104_v39 }
 0x257   : > { %4629 = vrot.lane.b32.xlu0 %v8625_v43, %s7404_s7  ;;  %v3989_v49 = vpop.permute.xlu1 %3988 }
 0x258   : > { %4030 = vst.msk [vmem:[#allocation2 + $0x7] sm:$0x1] %vm4022_vm5, %v3989_v49  ;;  %v7107_v49 = vld.sshfl [vmem:[%s7490_s30 + $0xe] sm:$0x11 pattern:$0x75316420] }
 0x259   : > { %v3987_v53 = vpop.permute.xlu0 %3986  ;;  %4812 = vrot.lane.b32.xlu1 %v8634_v6, %s7404_s7 }
 0x25a   : > { %4029 = vst.msk [vmem:[#allocation2 + $0x6] sm:$0x1] %vm4022_vm5, %v3987_v53 }
 0x25b   : > { %4810 = vrot.lane.b32.xlu0 %v8562_v27, %s7404_s7  ;;  %v3993_v63 = vpop.permute.xlu1 %3992 }
 0x25c   : > { %4032 = vst.msk [vmem:[#allocation2 + $0x9] sm:$0x1] %vm4022_vm5, %v3993_v63  ;;  %v7106_v63 = vld.sshfl [vmem:[%s7490_s30 + $0xc] sm:$0x11 pattern:$0x75316420] }
 0x25d   : > { %v3991_v30 = vpop.permute.xlu0 %3990  ;;  %4816 = vrot.lane.b32.xlu1 %v8643_v52, %s7404_s7 }
 0x25e   : > { %4031 = vst.msk [vmem:[#allocation2 + $0x8] sm:$0x1] %vm4022_vm5, %v3991_v30  ;;  %v5486_v30 = vshll.u32 %v5356_v7, 16 }
 0x25f   : > { %4814 = vrot.lane.b32.xlu0 %v8571_v35, %s7404_s7  ;;  %v3997_v62 = vpop.permute.xlu1 %3996 }
 0x260   : > { %4034 = vst.msk [vmem:[#allocation2 + $0xb] sm:$0x1] %vm4022_vm5, %v3997_v62  ;;  %v5372_v62 = vcombine.high %v7107_v49, %v7107_v49 }
 0x261   : > { %v3995_v1 = vpop.permute.xlu0 %3994  ;;  %4820 = vrot.lane.b32.xlu1 %v8652_v59, %s7404_s7 }
 0x262   : > { %4033 = vst.msk [vmem:[#allocation2 + $0xa] sm:$0x1] %vm4022_vm5, %v3995_v1 }
 0x263   : > { %4818 = vrot.lane.b32.xlu0 %v8580_v28, %s7404_s7  ;;  %v4001_v2 = vpop.permute.xlu1 %4000 }
 0x264   : > { %4036 = vst.msk [vmem:[#allocation2 + $0xd] sm:$0x1] %vm4022_vm5, %v4001_v2 }
 0x265   : > { %v3999_v10 = vpop.permute.xlu0 %3998  ;;  %4824 = vrot.lane.b32.xlu1 %v8661_v21, %s7404_s7 }
 0x266   : > { %4035 = vst.msk [vmem:[#allocation2 + $0xc] sm:$0x1] %vm4022_vm5, %v3999_v10  ;;  %v5472_v10 = vshrl.u32 %v7104_v39, 16 }
 0x267   : > { %4822 = vrot.lane.b32.xlu0 %v8589_v58, %s7404_s7  ;;  %v4005_v18 = vpop.permute.xlu1 %4004 }
 0x268   : > { %4038 = vst.msk [vmem:[#allocation2 + $0xf] sm:$0x1] %vm4022_vm5, %v4005_v18  ;;  %v5477_v18 = vshll.u32 %v5348_v44, 16 }
 0x269   : > { %v4003_v19 = vpop.permute.xlu0 %4002  ;;  %4828 = vrot.lane.b32.xlu1 %v8670_v4, %s7404_s7  ;;  %v7116_v44 = vld.sshfl [vmem:[%s7490_s30 + $0x20] sm:$0x11 pattern:$0x75316420] }
 0x26a   : > { %4037 = vst.msk [vmem:[#allocation2 + $0xe] sm:$0x1] %vm4022_vm5, %v4003_v19  ;;  %v5364_v19 = vcombine.high %v7106_v63, %v7106_v63 }
 0x26b   : > { %4826 = vrot.lane.b32.xlu0 %v8598_v55, %s7404_s7  ;;  %v4186_v38 = vpop.permute.xlu1 %4185 }
 0x26c   : > { %4233 = vst.msk [vmem:[#allocation2 + $0x1] sm:$0x1] %vm4231_vm6, %v4186_v38  ;;  %v7109_v38 = vld.sshfl [vmem:[%s7490_s30 + $0x12] sm:$0x11 pattern:$0x75316420] }
 0x26d   : > { %v4184_v56 = vpop.permute.xlu0 %4183  ;;  %4832 = vrot.lane.b32.xlu1 %v8679_v24, %s7404_s7 }
 0x26e   : > { %4232 = vst.msk [vmem:[#allocation2] sm:$0x1] %vm4231_vm6, %v4184_v56 }
 0x26f   : > { %4830 = vrot.lane.b32.xlu0 %v8607_v37, %s7404_s7  ;;  %v4190_v8 = vpop.permute.xlu1 %4189 }
 0x270   : > { %4235 = vst.msk [vmem:[#allocation2 + $0x3] sm:$0x1] %vm4231_vm6, %v4190_v8  ;;  %v5499_v8 = vshrl.u32 %v7107_v49, 16 }
 0x271   : > { %v4188_v9 = vpop.permute.xlu0 %4187  ;;  %4836 = vrot.lane.b32.xlu1 %v8688_v46, %s7404_s7 }
 0x272   : > { %4234 = vst.msk [vmem:[#allocation2 + $0x2] sm:$0x1] %vm4231_vm6, %v4188_v9  ;;  %v5504_v9 = vshll.u32 %v5372_v62, 16 }
 0x273   : > { %4834 = vrot.lane.b32.xlu0 %v8616_v47, %s7404_s7  ;;  %v4194_v25 = vpop.permute.xlu1 %4193 }
 0x274   : > { %4237 = vst.msk [vmem:[#allocation2 + $0x5] sm:$0x1] %vm4231_vm6, %v4194_v25  ;;  %v5388_v25 = vcombine.high %v7109_v38, %v7109_v38 }
 0x275   : > { %v4192_v20 = vpop.permute.xlu0 %4191  ;;  %4840 = vrot.lane.b32.xlu1 %v8553_v57, %s7404_s7 }
 0x276   : > { %4236 = vst.msk [vmem:[#allocation2 + $0x4] sm:$0x1] %vm4231_vm6, %v4192_v20 }
 0x277   : > { %4838 = vrot.lane.b32.xlu0 %v8625_v43, %s7404_s7  ;;  %v4198_v11 = vpop.permute.xlu1 %4197 }
 0x278   : > { %4239 = vst.msk [vmem:[#allocation2 + $0x7] sm:$0x1] %vm4231_vm6, %v4198_v11  ;;  %v8970_v11 = vsel %vm7496_vm15, %v5472_v10, %v5477_v18  ;;  %v5444_v18 = vcombine.high %v7116_v44, %v7116_v44 }
 0x279   : > { %v4196_v26 = vpop.permute.xlu0 %4195  ;;  %5021 = vrot.lane.b32.xlu1 %v8634_v6, %s7404_s7 }
 0x27a   : > { %4238 = vst.msk [vmem:[#allocation2 + $0x6] sm:$0x1] %vm4231_vm6, %v4196_v26  ;;  %v5490_v26 = vshrl.u32 %v7106_v63, 16 }
 0x27b   : > { %5019 = vrot.lane.b32.xlu0 %v8562_v27, %s7404_s7  ;;  %v4202_v13 = vpop.permute.xlu1 %4201 }
 0x27c   : > { %4241 = vst.msk [vmem:[#allocation2 + $0x9] sm:$0x1] %vm4231_vm6, %v4202_v13  ;;  %v5495_v13 = vshll.u32 %v5364_v19, 16 }
 0x27d   : > { %v4200_v17 = vpop.permute.xlu0 %4199  ;;  %5025 = vrot.lane.b32.xlu1 %v8643_v52, %s7404_s7 }
 0x27e   : > { %4240 = vst.msk [vmem:[#allocation2 + $0x8] sm:$0x1] %vm4231_vm6, %v4200_v17 }
 0x27f   : > { %5023 = vrot.lane.b32.xlu0 %v8571_v35, %s7404_s7  ;;  %v4206_v42 = vpop.permute.xlu1 %4205 }
 0x280   : > { %4243 = vst.msk [vmem:[#allocation2 + $0xb] sm:$0x1] %vm4231_vm6, %v4206_v42  ;;  %v7111_v42 = vld.sshfl [vmem:[%s7490_s30 + $0x16] sm:$0x11 pattern:$0x75316420] }
 0x281   : > { %v4204_v15 = vpop.permute.xlu0 %4203  ;;  %5029 = vrot.lane.b32.xlu1 %v8652_v59, %s7404_s7 }
 0x282   : > { %4242 = vst.msk [vmem:[#allocation2 + $0xa] sm:$0x1] %vm4231_vm6, %v4204_v15 }
 0x283   : > { %5027 = vrot.lane.b32.xlu0 %v8580_v28, %s7404_s7  ;;  %v4210_v45 = vpop.permute.xlu1 %4209 }
 0x284   : > { %4245 = vst.msk [vmem:[#allocation2 + $0xd] sm:$0x1] %vm4231_vm6, %v4210_v45  ;;  %v7110_v45 = vld.sshfl [vmem:[%s7490_s30 + $0x14] sm:$0x11 pattern:$0x75316420] }
 0x285   : > { %v4208_v16 = vpop.permute.xlu0 %4207  ;;  %5033 = vrot.lane.b32.xlu1 %v8661_v21, %s7404_s7 }
 0x286   : > { %4244 = vst.msk [vmem:[#allocation2 + $0xc] sm:$0x1] %vm4231_vm6, %v4208_v16  ;;  %v8982_v16 = vsel %vm7496_vm15, %v5499_v8, %v5504_v9 }
 0x287   : > { %5031 = vrot.lane.b32.xlu0 %v8589_v58, %s7404_s7  ;;  %v4214_v50 = vpop.permute.xlu1 %4213 }
 0x288   : > { %4247 = vst.msk [vmem:[#allocation2 + $0xf] sm:$0x1] %vm4231_vm6, %v4214_v50  ;;  %v5517_v50 = vshrl.u32 %v7109_v38, 16 }
 0x289   : > { %v4212_v22 = vpop.permute.xlu0 %4211  ;;  %5037 = vrot.lane.b32.xlu1 %v8670_v4, %s7404_s7 }
 0x28a   : > { %4246 = vst.msk [vmem:[#allocation2 + $0xe] sm:$0x1] %vm4231_vm6, %v4212_v22  ;;  %v5522_v22 = vshll.u32 %v5388_v25, 16  ;;  %v5580_v25 = vshrl.u32 %v7116_v44, 16 }
 0x28b   : > { %5035 = vrot.lane.b32.xlu0 %v8598_v55, %s7404_s7  ;;  %v4395_v54 = vpop.permute.xlu1 %4394 }
 0x28c   : > { %4442 = vst.msk [vmem:[#allocation2 + $0x1] sm:$0x1] %vm4440_vm7, %v4395_v54  ;;  %v5404_v54 = vcombine.high %v7111_v42, %v7111_v42 }
 0x28d   : > { %v4393_v23 = vpop.permute.xlu0 %4392  ;;  %5041 = vrot.lane.b32.xlu1 %v8679_v24, %s7404_s7 }
 0x28e   : > { %4441 = vst.msk [vmem:[#allocation2] sm:$0x1] %vm4440_vm7, %v4393_v23 }
 0x28f   : > { %5039 = vrot.lane.b32.xlu0 %v8607_v37, %s7404_s7  ;;  %v4399_v36 = vpop.permute.xlu1 %4398 }
 0x290   : > { %4444 = vst.msk [vmem:[#allocation2 + $0x3] sm:$0x1] %vm4440_vm7, %v4399_v36  ;;  %v8986_v36 = vsel %vm7496_vm15, %v5490_v26, %v5495_v13 }
 0x291   : > { %v4397_v33 = vpop.permute.xlu0 %4396  ;;  %5045 = vrot.lane.b32.xlu1 %v8688_v46, %s7404_s7 }
 0x292   : > { %4443 = vst.msk [vmem:[#allocation2 + $0x2] sm:$0x1] %vm4440_vm7, %v4397_v33 }
 0x293   : > { %5043 = vrot.lane.b32.xlu0 %v8616_v47, %s7404_s7  ;;  %v4403_v61 = vpop.permute.xlu1 %4402 }
 0x294   : > { %4446 = vst.msk [vmem:[#allocation2 + $0x5] sm:$0x1] %vm4440_vm7, %v4403_v61 }
 0x295   : > { %v4401_v0 = vpop.permute.xlu0 %4400  ;;  %5049 = vrot.lane.b32.xlu1 %v8553_v57, %s7404_s7 }
 0x296   : > { %4445 = vst.msk [vmem:[#allocation2 + $0x4] sm:$0x1] %vm4440_vm7, %v4401_v0  ;;  %v5396_v0 = vcombine.high %v7110_v45, %v7110_v45 }
 0x297   : > { %5047 = vrot.lane.b32.xlu0 %v8625_v43, %s7404_s7  ;;  %v4407_v41 = vpop.permute.xlu1 %4406 }
 0x298   : > { %4448 = vst.msk [vmem:[#allocation2 + $0x7] sm:$0x1] %vm4440_vm7, %v4407_v41  ;;  %v7113_v41 = vld.sshfl [vmem:[%s7490_s30 + $0x1a] sm:$0x11 pattern:$0x75316420] }
 0x299   : > { %v4405_v3 = vpop.permute.xlu0 %4404  ;;  %5230 = vrot.lane.b32.xlu1 %v8634_v6, %s7404_s7 }
 0x29a   : > { %4447 = vst.msk [vmem:[#allocation2 + $0x6] sm:$0x1] %vm4440_vm7, %v4405_v3 }
 0x29b   : > { %5228 = vrot.lane.b32.xlu0 %v8562_v27, %s7404_s7  ;;  %v4411_v48 = vpop.permute.xlu1 %4410 }
 0x29c   : > { %4450 = vst.msk [vmem:[#allocation2 + $0x9] sm:$0x1] %vm4440_vm7, %v4411_v48  ;;  %v7112_v48 = vld.sshfl [vmem:[%s7490_s30 + $0x18] sm:$0x11 pattern:$0x75316420] }
 0x29d   : > { %v4409_v31 = vpop.permute.xlu0 %4408  ;;  %5234 = vrot.lane.b32.xlu1 %v8643_v52, %s7404_s7 }
 0x29e   : > { %4449 = vst.msk [vmem:[#allocation2 + $0x8] sm:$0x1] %vm4440_vm7, %v4409_v31  ;;  %v8998_v31 = vsel %vm7496_vm15, %v5517_v50, %v5522_v22 }
 0x29f   : > { %5232 = vrot.lane.b32.xlu0 %v8571_v35, %s7404_s7  ;;  %v4415_v14 = vpop.permute.xlu1 %4414 }
 0x2a0   : > { %4452 = vst.msk [vmem:[#allocation2 + $0xb] sm:$0x1] %vm4440_vm7, %v4415_v14  ;;  %v5535_v14 = vshrl.u32 %v7111_v42, 16 }
 0x2a1   : > { %v4413_v29 = vpop.permute.xlu0 %4412  ;;  %5238 = vrot.lane.b32.xlu1 %v8652_v59, %s7404_s7  ;;  %v7103_v59 = vld.sshfl [vmem:[%s7490_s30 + $0x6] sm:$0x11 pattern:$0x75316420] }
 0x2a2   : > { %4451 = vst.msk [vmem:[#allocation2 + $0xa] sm:$0x1] %vm4440_vm7, %v4413_v29  ;;  %v5540_v29 = vshll.u32 %v5404_v54, 16 }
 0x2a3   : > { %5236 = vrot.lane.b32.xlu0 %v8580_v28, %s7404_s7  ;;  %v4419_v27 = vpop.permute.xlu1 %4418 }
 0x2a4   : > { %4454 = vst.msk [vmem:[#allocation2 + $0xd] sm:$0x1] %vm4440_vm7, %v4419_v27  ;;  %v5420_v27 = vcombine.high %v7113_v41, %v7113_v41 }
 0x2a5   : > { %v4417_v6 = vpop.permute.xlu0 %4416  ;;  %5242 = vrot.lane.b32.xlu1 %v8661_v21, %s7404_s7  ;;  %v7102_v21 = vld.sshfl [vmem:[%s7490_s30 + $0x4] sm:$0x11 pattern:$0x75316420] }
 0x2a6   : > { %4453 = vst.msk [vmem:[#allocation2 + $0xc] sm:$0x1] %vm4440_vm7, %v4417_v6  ;;  %v5332_v34 = vcombine.high %v7102_v21, %v7102_v21  ;;  %v5454_v12 = vshrl.u32 %v7102_v21, 16 }
 0x2a7   : > { %5240 = vrot.lane.b32.xlu0 %v8589_v58, %s7404_s7  ;;  %v4423_v35 = vpop.permute.xlu1 %4422 }
 0x2a8   : > { %4456 = vst.msk [vmem:[#allocation2 + $0xf] sm:$0x1] %vm4440_vm7, %v4423_v35  ;;  %v5459_v51 = vshll.u32 %v5332_v34, 16  ;;  %v5553_v34 = vshrl.u32 %v7113_v41, 16 }
 0x2a9   : > { %v4421_v52 = vpop.permute.xlu0 %4420  ;;  %5246 = vrot.lane.b32.xlu1 %v8670_v4, %s7404_s7  ;;  %v5340_v4 = vcombine.high %v7103_v59, %v7103_v59 }
 0x2aa   : > { %4455 = vst.msk [vmem:[#allocation2 + $0xe] sm:$0x1] %vm4440_vm7, %v4421_v52  ;;  %v8954_v2 = vsel %vm7496_vm15, %v5454_v12, %v5459_v51  ;;  %v5526_v52 = vshrl.u32 %v7110_v45, 16 }
 0x2ab   : > { %5244 = vrot.lane.b32.xlu0 %v8598_v55, %s7404_s7  ;;  %v4604_v28 = vpop.permute.xlu1 %4603  ;;  %v7117_v12 = vld.sshfl [vmem:[%s7490_s30 + $0x22] sm:$0x11 pattern:$0x75316420] }
 0x2ac   : > { %4651 = vst.msk [vmem:[#allocation2 + $0x1] sm:$0x1] %vm4649_vm8, %v4604_v28  ;;  %v5531_v28 = vshll.u32 %v5396_v0, 16  ;;  %v7317_v0 = vld [vmem:[%s9261_s1 + $0x20] sm:$0xff]  }
 0x2ad   : > { %v4602_v58 = vpop.permute.xlu0 %4601  ;;  %5250 = vrot.lane.b32.xlu1 %v8679_v24, %s7404_s7  ;;  %v5463_v24 = vshrl.u32 %v7103_v59, 16  ;;  %v5412_v59 = vcombine.high %v7112_v48, %v7112_v48 }
 0x2ae   : > { %4650 = vst.msk [vmem:[#allocation2] sm:$0x1] %vm4649_vm8, %v4602_v58  ;;  %v7115_v58 = vld.sshfl [vmem:[%s7490_s30 + $0x1e] sm:$0x11 pattern:$0x75316420] }
 0x2af   : > { %5248 = vrot.lane.b32.xlu0 %v8607_v37, %s7404_s7  ;;  %v4608_v32 = vpop.permute.xlu1 %4607  ;;  %v5468_v37 = vshll.u32 %v5340_v4, 16  ;;  %v7114_v4 = vld.sshfl [vmem:[%s7490_s30 + $0x1c] sm:$0x11 pattern:$0x75316420]  ;;  %v5549_v7 = vshll.u32 %v5412_v59, 16 }
 0x2b0   : > { %4653 = vst.msk [vmem:[#allocation2 + $0x3] sm:$0x1] %vm4649_vm8, %v4608_v32  ;;  %v9014_v32 = vsel %vm7496_vm15, %v5535_v14, %v5540_v29 }
 0x2b1   : > { %v4606_v55 = vpop.permute.xlu0 %4605  ;;  %5254 = vrot.lane.b32.xlu1 %v8688_v46, %s7404_s7  ;;  %v5481_v46 = vshrl.u32 %v7105_v60, 16  ;;  %v5558_v60 = vshll.u32 %v5420_v27, 16  ;;  %v7320_v27 = vld [vmem:[%s9261_s1 + $0x38] ss:$0 sps:$4 sm:$0xff]  }
 0x2b2   : > { %4652 = vst.msk [vmem:[#allocation2 + $0x2] sm:$0x1] %vm4649_vm8, %v4606_v55  ;;  %v5436_v55 = vcombine.high %v7115_v58, %v7115_v58 }
 0x2b3   : > { %5252 = vrot.lane.b32.xlu0 %v8616_v47, %s7404_s7  ;;  %v4612_v40 = vpop.permute.xlu1 %4611  ;;  %v8950_v47 = vsel %vm7496_vm15, %v5463_v24, %v5468_v37  ;;  %v8966_v56 = vsel %vm7496_vm15, %v5481_v46, %v5486_v30  ;;  %v9018_v24 = vsel %vm7496_vm15, %v5526_v52, %v5531_v28  ;;  %v5544_v37 = vshrl.u32 %v7112_v48, 16 }
 0x2b4   : > { %4655 = vst.msk [vmem:[#allocation2 + $0x5] sm:$0x1] %vm4649_vm8, %v4612_v40  ;;  %v5428_v40 = vcombine.high %v7114_v4, %v7114_v4  ;;  %v9030_v49 = vsel %vm7496_vm15, %v5553_v34, %v5558_v60  ;;  %v5576_v63 = vshll.u32 %v5436_v55, 16  ;;  %v5452_v46 = vcombine.high %v7117_v12, %v7117_v12 }
 0x2b5   : > { %v4610_v53 = vpop.permute.xlu0 %4609  ;;  %5258 = vrot.lane.b32.xlu1 %v8553_v57, %s7404_s7  ;;  %v9034_v62 = vsel %vm7496_vm15, %v5544_v37, %v5549_v7  ;;  %v6237_v52 = vsel %vm6235_vm10, %v7320_v27, 0 }
 0x2b6   : > { %4654 = vst.msk [vmem:[#allocation2 + $0x4] sm:$0x1] %vm4649_vm8, %v4610_v53  ;;  %v5571_v53 = vshrl.u32 %v7115_v58, 16  ;;  %v5567_v10 = vshll.u32 %v5428_v40, 16 }
 0x2b7   : > { %5256 = vrot.lane.b32.xlu0 %v8625_v43, %s7404_s7  ;;  %v4616_v1 = vpop.permute.xlu1 %4615  ;;  %v7108_v43 = vld.sshfl [vmem:[%s7490_s30 + $0x10] sm:$0x11 pattern:$0x75316420]  ;;  %s7325_s30 = sshll.u32 %s7407_s29, 4  ;;  %s7326_s30 = int_to_ptr.vmem [resolvable:$false] %s7325_s30 }
 0x2b8   : > { %4657 = vst.msk [vmem:[#allocation2 + $0x7] sm:$0x1] %vm4649_vm8, %v4616_v1  ;;  %v5380_v17 = vcombine.high %v7108_v43, %v7108_v43  ;;  %v5508_v33 = vshrl.u32 %v7108_v43, 16  ;;  %v5562_v1 = vshrl.u32 %v7114_v4, 16  ;;  %v9044_v38 = vsel %vm7496_vm15, %v5571_v53, %v5576_v63  ;;  %s7327_s4 = scalar_lea.vmem %s7326_s30, 512 }
 0x2b9   : > { %v4614_v57 = vpop.permute.xlu0 %4613  ;;  %5599 = vrot.lane.b32.xlu1 %v8950_v47, %s7405_s8  ;;  %v5594_v43 = vshll.u32 %v5452_v46, 16 }
 0x2ba   : > { %4656 = vst.msk [vmem:[#allocation2 + $0x6] sm:$0x1] %vm4649_vm8, %v4614_v57  ;;  %v5513_v61 = vshll.u32 %v5380_v17, 16  ;;  %v5589_v57 = vshrl.u32 %v7117_v12, 16  ;;  %v9048_v9 = vsel %vm7496_vm15, %v5562_v1, %v5567_v10 }
 0x2bb   : > { %5597 = vrot.lane.b32.xlu0 %v8954_v2, %s7405_s8  ;;  %v4620_v20 = vpop.permute.xlu1 %4619 }
 0x2bc   : > { %4659 = vst.msk [vmem:[#allocation2 + $0x9] sm:$0x1] %vm4649_vm8, %v4620_v20  ;;  %v9002_v35 = vsel %vm7496_vm15, %v5508_v33, %v5513_v61  ;;  %v5585_v20 = vshll.u32 %v5444_v18, 16  ;;  %v9058_v13 = vsel %vm7496_vm15, %v5589_v57, %v5594_v43 }
 0x2bd   : > { %v4618_v15 = vpop.permute.xlu0 %4617  ;;  %5603 = vrot.lane.b32.xlu1 %v8966_v56, %s7405_s8 }
 0x2be   : > { %4658 = vst.msk [vmem:[#allocation2 + $0x8] sm:$0x1] %vm4649_vm8, %v4618_v15  ;;  %v9062_v42 = vsel %vm7496_vm15, %v5580_v25, %v5585_v20  ;;  %vm5067_vm15 = vcmask 877376  }
 0x2bf   : > { %5601 = vrot.lane.b32.xlu0 %v8970_v11, %s7405_s8  ;;  %v4624_v23 = vpop.permute.xlu1 %4623 }
 0x2c0   : > { %4661 = vst.msk [vmem:[#allocation2 + $0xb] sm:$0x1] %vm4649_vm8, %v4624_v23 }
 0x2c1   : > { %v4622_v3 = vpop.permute.xlu0 %4621  ;;  %5607 = vrot.lane.b32.xlu1 %v8982_v16, %s7405_s8 }
 0x2c2   : > { %4660 = vst.msk [vmem:[#allocation2 + $0xa] sm:$0x1] %vm4649_vm8, %v4622_v3  ;;  %v7318_v3 = vld [vmem:[%s9261_s1 + $0x28] sm:$0xff]  }
 0x2c3   : > { %5605 = vrot.lane.b32.xlu0 %v8986_v36, %s7405_s8  ;;  %v4628_v6 = vpop.permute.xlu1 %4627 }
 0x2c4   : > { %4663 = vst.msk [vmem:[#allocation2 + $0xd] sm:$0x1] %vm4649_vm8, %v4628_v6 }
 0x2c5   : > { %v4626_v21 = vpop.permute.xlu0 %4625  ;;  %5611 = vrot.lane.b32.xlu1 %v8998_v31, %s7405_s8 }
 0x2c6   : > { %4662 = vst.msk [vmem:[#allocation2 + $0xc] sm:$0x1] %vm4649_vm8, %v4626_v21 }
 0x2c7   : > { %5609 = vrot.lane.b32.xlu0 %v9002_v35, %s7405_s8  ;;  %v4632_v39 = vpop.permute.xlu1 %4631 }
 0x2c8   : > { %4665 = vst.msk [vmem:[#allocation2 + $0xf] sm:$0x1] %vm4649_vm8, %v4632_v39 }
 0x2c9   : > { %v4630_v51 = vpop.permute.xlu0 %4629  ;;  %5615 = vrot.lane.b32.xlu1 %v9014_v32, %s7405_s8 }
 0x2ca   : > { %4664 = vst.msk [vmem:[#allocation2 + $0xe] sm:$0x1] %vm4649_vm8, %v4630_v51 }
 0x2cb   : > { %5613 = vrot.lane.b32.xlu0 %v9018_v24, %s7405_s8  ;;  %v4813_v30 = vpop.permute.xlu1 %4812 }
 0x2cc   : > { %4860 = vst.msk [vmem:[#allocation2 + $0x1] sm:$0x1] %vm4858_vm9, %v4813_v30 }
 0x2cd   : > { %v4811_v19 = vpop.permute.xlu0 %4810  ;;  %5619 = vrot.lane.b32.xlu1 %v9030_v49, %s7405_s8 }
 0x2ce   : > { %4859 = vst.msk [vmem:[#allocation2] sm:$0x1] %vm4858_vm9, %v4811_v19 }
 0x2cf   : > { %5617 = vrot.lane.b32.xlu0 %v9034_v62, %s7405_s8  ;;  %v4817_v8 = vpop.permute.xlu1 %4816 }
 0x2d0   : > { %4862 = vst.msk [vmem:[#allocation2 + $0x3] sm:$0x1] %vm4858_vm9, %v4817_v8 }
 0x2d1   : > { %v4815_v26 = vpop.permute.xlu0 %4814  ;;  %5623 = vrot.lane.b32.xlu1 %v9044_v38, %s7405_s8 }
 0x2d2   : > { %4861 = vst.msk [vmem:[#allocation2 + $0x2] sm:$0x1] %vm4858_vm9, %v4815_v26 }
 0x2d3   : > { %5621 = vrot.lane.b32.xlu0 %v9048_v9, %s7405_s8  ;;  %v4821_v17 = vpop.permute.xlu1 %4820 }
 0x2d4   : > { %4864 = vst.msk [vmem:[#allocation2 + $0x5] sm:$0x1] %vm4858_vm9, %v4821_v17 }
 0x2d5   : > { %v4819_v15 = vpop.permute.xlu0 %4818  ;;  %5627 = vrot.lane.b32.xlu1 %v9058_v13, %s7405_s8 }
 0x2d6   : > { %4863 = vst.msk [vmem:[#allocation2 + $0x4] sm:$0x1] %vm4858_vm9, %v4819_v15 }
 0x2d7   : > { %5625 = vrot.lane.b32.xlu0 %v9062_v42, %s7405_s8  ;;  %v4825_v45 = vpop.permute.xlu1 %4824 }
 0x2d8   : > { %4866 = vst.msk [vmem:[#allocation2 + $0x7] sm:$0x1] %vm4858_vm9, %v4825_v45 }
 0x2d9   : > { %v4823_v50 = vpop.permute.xlu0 %4822  ;;  %5968 = vrot.lane.b32.xlu1 %v8950_v47, %s7405_s8  ;;  %v7314_v47 = vld [vmem:[%s9261_s1 + $0x8] sm:$0xff]  }
 0x2da   : > { %4865 = vst.msk [vmem:[#allocation2 + $0x6] sm:$0x1] %vm4858_vm9, %v4823_v50  ;;  %7230 = vmatprep.subr.bf16.mxu0 %v7314_v47 }
 0x2db   : > { %5966 = vrot.lane.b32.xlu0 %v8954_v2, %s7405_s8  ;;  %v4829_v22 = vpop.permute.xlu1 %4828  ;;  %7231 = vmatpush3.bf16.msra.mxu0 %v7314_v47 }
 0x2dc   : > { %4868 = vst.msk [vmem:[#allocation2 + $0x9] sm:$0x1] %vm4858_vm9, %v4829_v22 }
 0x2dd   : > { %v4827_v54 = vpop.permute.xlu0 %4826  ;;  %5972 = vrot.lane.b32.xlu1 %v8966_v56, %s7405_s8  ;;  %v7315_v56 = vld [vmem:[%s9261_s1 + $0x10] sm:$0xff]  }
 0x2de   : > { %4867 = vst.msk [vmem:[#allocation2 + $0x8] sm:$0x1] %vm4858_vm9, %v4827_v54  ;;  %7232 = vmatprep.subr.bf16.mxu0 %v7315_v56 }
 0x2df   : > { %5970 = vrot.lane.b32.xlu0 %v8970_v11, %s7405_s8  ;;  %v4833_v23 = vpop.permute.xlu1 %4832  ;;  %7233 = vmatpush3.bf16.msra.mxu0 %v7315_v56 }
 0x2e0   : > { %4870 = vst.msk [vmem:[#allocation2 + $0xb] sm:$0x1] %vm4858_vm9, %v4833_v23 }
 0x2e1   : > { %v4831_v2 = vpop.permute.xlu0 %4830  ;;  %5976 = vrot.lane.b32.xlu1 %v8982_v16, %s7405_s8  ;;  %v7316_v16 = vld [vmem:[%s9261_s1 + $0x18] sm:$0xff]  }
 0x2e2   : > { %4869 = vst.msk [vmem:[#allocation2 + $0xa] sm:$0x1] %vm4858_vm9, %v4831_v2  ;;  %7234 = vmatprep.subr.bf16.mxu0 %v7316_v16 }
 0x2e3   : > { %5974 = vrot.lane.b32.xlu0 %v8986_v36, %s7405_s8  ;;  %v4837_v33 = vpop.permute.xlu1 %4836  ;;  %7235 = vmatpush3.bf16.msra.mxu0 %v7316_v16  ;;  %v6092_v16 = vlaneseq }
 0x2e4   : > { %4872 = vst.msk [vmem:[#allocation2 + $0xd] sm:$0x1] %vm4858_vm9, %v4837_v33  ;;  %7236 = vmatprep.subr.bf16.mxu0 %v7317_v0  ;;  %v7406_v33 = vmov 1966171168  }
 0x2e5   : > { %v4835_v11 = vpop.permute.xlu0 %4834  ;;  %5980 = vrot.lane.b32.xlu1 %v8998_v31, %s7405_s8  ;;  %v7319_v31 = vld [vmem:[%s9261_s1 + $0x30] sm:$0xff]  }
 0x2e6   : > { %4871 = vst.msk [vmem:[#allocation2 + $0xc] sm:$0x1] %vm4858_vm9, %v4835_v11  ;;  %v6090_v11 = vunpack.c.l.s4 %v7406_v33 }
 0x2e7   : > { %5978 = vrot.lane.b32.xlu0 %v9002_v35, %s7405_s8  ;;  %v4841_v61 = vpop.permute.xlu1 %4840  ;;  %7237 = vmatpush3.bf16.msra.mxu0 %v7317_v0 }
 0x2e8   : > { %4874 = vst.msk [vmem:[#allocation2 + $0xf] sm:$0x1] %vm4858_vm9, %v4841_v61  ;;  %7238 = vmatprep.subr.bf16.mxu0 %v7318_v3 }
 0x2e9   : > { %v4839_v36 = vpop.permute.xlu0 %4838  ;;  %5984 = vrot.lane.b32.xlu1 %v9014_v32, %s7405_s8 }
 0x2ea   : > { %4873 = vst.msk [vmem:[#allocation2 + $0xe] sm:$0x1] %vm4858_vm9, %v4839_v36 }
 0x2eb   : > { %5982 = vrot.lane.b32.xlu0 %v9018_v24, %s7405_s8  ;;  %v5022_v41 = vpop.permute.xlu1 %5021  ;;  %7239 = vmatpush3.bf16.msra.mxu0 %v7318_v3  ;;  %v6091_v3 = vunpack.c.0.s8 %v6090_v11 }
 0x2ec   : > { %5069 = vst.msk [vmem:[#allocation2 + $0x1] sm:$0x1] %vm5067_vm15, %v5022_v41  ;;  %7240 = vmatprep.subr.bf16.mxu0 %v7319_v31 }
 0x2ed   : > { %v5020_v48 = vpop.permute.xlu0 %5019  ;;  %5988 = vrot.lane.b32.xlu1 %v9030_v49, %s7405_s8 }
 0x2ee   : > { %5068 = vst.msk [vmem:[#allocation2] sm:$0x1] %vm5067_vm15, %v5020_v48  ;;  %v6093_v48 = vshrl.u32 %v6092_v16, 7 }
 0x2ef   : > { %5986 = vrot.lane.b32.xlu0 %v9034_v62, %s7405_s8  ;;  %v5026_v14 = vpop.permute.xlu1 %5025  ;;  %7241 = vmatpush3.bf16.msra.mxu0 %v7319_v31 }
 0x2f0   : > { %5071 = vst.msk [vmem:[#allocation2 + $0x3] sm:$0x1] %vm5067_vm15, %v5026_v14  ;;  %7248 = vmatprep.subr.msk.bf16.mxu0 %vm6235_vm10, %v7320_v27 }
 0x2f1   : > { %v5024_v29 = vpop.permute.xlu0 %5023  ;;  %5992 = vrot.lane.b32.xlu1 %v9044_v38, %s7405_s8 }
 0x2f2   : > { %5070 = vst.msk [vmem:[#allocation2 + $0x2] sm:$0x1] %vm5067_vm15, %v5024_v29 }
 0x2f3   : > { %5990 = vrot.lane.b32.xlu0 %v9048_v9, %s7405_s8  ;;  %v5030_v6 = vpop.permute.xlu1 %5029  ;;  %7243 = vmatpush3.bf16.msra.mxu0 %v6237_v52 }
 0x2f4   : > { %5073 = vst.msk [vmem:[#allocation2 + $0x5] sm:$0x1] %vm5067_vm15, %v5030_v6 }
 0x2f5   : > { %v5028_v35 = vpop.permute.xlu0 %5027  ;;  %5996 = vrot.lane.b32.xlu1 %v9058_v13, %s7405_s8 }
 0x2f6   : > { %5072 = vst.msk [vmem:[#allocation2 + $0x4] sm:$0x1] %vm5067_vm15, %v5028_v35 }
 0x2f7   : > { %5994 = vrot.lane.b32.xlu0 %v9062_v42, %s7405_s8  ;;  %v5034_v28 = vpop.permute.xlu1 %5033  ;;  %s175_s8 = sand.u32 1, %s7383_s13  }
 0x2f8   : > { %5075 = vst.msk [vmem:[#allocation2 + $0x7] sm:$0x1] %vm5067_vm15, %v5034_v28  ;;  %s6412_s9 = sshll.u32 %s175_s8, 4  ;;  %s9214_s15 = scalar_lea.sflag [#allocation4], %s175_s8 }
 0x2f9   : > { %v5032_v59 = vpop.permute.xlu0 %5031  ;;  %s177_s18 = scalar_lea.vmem [#allocation3], %s6412_s9 }
 0x2fa   : > { %5074 = vst.msk [vmem:[#allocation2 + $0x6] sm:$0x1] %vm5067_vm15, %v5032_v59  ;;  %v6094_v59 = vsub.s32 %v6091_v3, %v6093_v48  ;;  %s6324_s19 = sshll.u32 %s177_s18, 4  ;;  %s9207_s19 = int_to_ptr.vmem [resolvable:$true] %s6324_s19 }
 0x2fb   : > { %v5038_v58 = vpop.permute.xlu1 %5037  ;;  %s7321_s28 = scalar_lea.vmem %s9207_s19, 256  ;;  %p7328_p1 = scmp.lt.s32.totalorder %s9207_s19, %s7326_s30 }
 0x2fc   : > { %5077 = vst.msk [vmem:[#allocation2 + $0x9] sm:$0x1] %vm5067_vm15, %v5038_v58  ;;  %p7322_p12 = scmp.ne.s32.totalorder %s9207_s19, %s7321_s28  ;;  %p7329_p2 = scmp.lt.s32.totalorder %s7327_s4, %s7321_s28 }
 0x2fd   : > { %v5036_v21 = vpop.permute.xlu0 %5035 }
 0x2fe   : > { %5076 = vst.msk [vmem:[#allocation2 + $0x8] sm:$0x1] %vm5067_vm15, %v5036_v21  ;;  %p7323_p13 = pnand %p7322_p12, %p7470_p4  ;;  %p7330_p3 = por %p7329_p2, %p7328_p1 }
 0x2ff   : > { %v5042_v4 = vpop.permute.xlu1 %5041 }
 0x300   : > { %5079 = vst.msk [vmem:[#allocation2 + $0xb] sm:$0x1] %vm5067_vm15, %v5042_v4  ;;  %p7324_p0 = pneg %p7323_p13 }
 0x301   : > { %v5040_v32 = vpop.permute.xlu0 %5039 }
 0x302   : > { %5078 = vst.msk [vmem:[#allocation2 + $0xa] sm:$0x1] %vm5067_vm15, %v5040_v32  ;;  %p7331_p5 = pnand %p7330_p3, %p7324_p0 }
 0x303   : > { %v5046_v34 = vpop.permute.xlu1 %5045 }
 0x304   : > { %5081 = vst.msk [vmem:[#allocation2 + $0xd] sm:$0x1] %vm5067_vm15, %v5046_v34 }
 0x305   : > { %v5044_v60 = vpop.permute.xlu0 %5043 }
 0x306   : > { %5080 = vst.msk [vmem:[#allocation2 + $0xc] sm:$0x1] %vm5067_vm15, %v5044_v60 }
 0x307   : > { %v5050_v55 = vpop.permute.xlu1 %5049 }
 0x308   : > { %5083 = vst.msk [vmem:[#allocation2 + $0xf] sm:$0x1] %vm5067_vm15, %v5050_v55 }
 0x309   : > { %v5048_v39 = vpop.permute.xlu0 %5047 }
 0x30a   : > { %5082 = vst.msk [vmem:[#allocation2 + $0xe] sm:$0x1] %vm5067_vm15, %v5048_v39 }
 0x30b   : > { %v5231_v24 = vpop.permute.xlu1 %5230 }
 0x30c   : > { %5278 = vst.msk [vmem:[#allocation2 + $0x1] sm:$0x1] %vm5276_vm11, %v5231_v24 }
 0x30d   : > { %v5229_v37 = vpop.permute.xlu0 %5228 }
 0x30e   : > { %5277 = vst.msk [vmem:[#allocation2] sm:$0x1] %vm5276_vm11, %v5229_v37 }
 0x30f   : > { %v5235_v7 = vpop.permute.xlu1 %5234 }
 0x310   : > { %5280 = vst.msk [vmem:[#allocation2 + $0x3] sm:$0x1] %vm5276_vm11, %v5235_v7 }
 0x311   : > { %v5233_v40 = vpop.permute.xlu0 %5232 }
 0x312   : > { %5279 = vst.msk [vmem:[#allocation2 + $0x2] sm:$0x1] %vm5276_vm11, %v5233_v40 }
 0x313   : > { %v5239_v12 = vpop.permute.xlu1 %5238 }
 0x314   : > { %5282 = vst.msk [vmem:[#allocation2 + $0x5] sm:$0x1] %vm5276_vm11, %v5239_v12 }
 0x315   : > { %v5237_v51 = vpop.permute.xlu0 %5236 }
 0x316   : > { %5281 = vst.msk [vmem:[#allocation2 + $0x4] sm:$0x1] %vm5276_vm11, %v5237_v51 }
 0x317   : > { %v5243_v44 = vpop.permute.xlu1 %5242 }
 0x318   : > { %5284 = vst.msk [vmem:[#allocation2 + $0x7] sm:$0x1] %vm5276_vm11, %v5243_v44 }
 0x319   : > { %v5241_v49 = vpop.permute.xlu0 %5240 }
 0x31a   : > { %5283 = vst.msk [vmem:[#allocation2 + $0x6] sm:$0x1] %vm5276_vm11, %v5241_v49 }
 0x31b   : > { %v5247_v53 = vpop.permute.xlu1 %5246 }
 0x31c   : > { %5286 = vst.msk [vmem:[#allocation2 + $0x9] sm:$0x1] %vm5276_vm11, %v5247_v53 }
 0x31d   : > { %v5245_v63 = vpop.permute.xlu0 %5244 }
 0x31e   : > { %5285 = vst.msk [vmem:[#allocation2 + $0x8] sm:$0x1] %vm5276_vm11, %v5245_v63 }
 0x31f   : > { %v5251_v46 = vpop.permute.xlu1 %5250 }
 0x320   : > { %5288 = vst.msk [vmem:[#allocation2 + $0xb] sm:$0x1] %vm5276_vm11, %v5251_v46 }
 0x321   : > { %v5249_v30 = vpop.permute.xlu0 %5248 }
 0x322   : > { %5287 = vst.msk [vmem:[#allocation2 + $0xa] sm:$0x1] %vm5276_vm11, %v5249_v30 }
 0x323   : > { %v5255_v62 = vpop.permute.xlu1 %5254 }
 0x324   : > { %5290 = vst.msk [vmem:[#allocation2 + $0xd] sm:$0x1] %vm5276_vm11, %v5255_v62 }
 0x325   : > { %v5253_v1 = vpop.permute.xlu0 %5252 }
 0x326   : > { %5289 = vst.msk [vmem:[#allocation2 + $0xc] sm:$0x1] %vm5276_vm11, %v5253_v1 }
 0x327   : > { %v5259_v10 = vpop.permute.xlu1 %5258 }
 0x328   : > { %5292 = vst.msk [vmem:[#allocation2 + $0xf] sm:$0x1] %vm5276_vm11, %v5259_v10 }
 0x329   : > { %v5257_v18 = vpop.permute.xlu0 %5256 }
 0x32a   : > { %5291 = vst.msk [vmem:[#allocation2 + $0xe] sm:$0x1] %vm5276_vm11, %v5257_v18 }
 0x32b   : > { %v5600_v19 = vpop.permute.xlu1 %5599 }
 0x32c   : > { %5647 = vst.msk [vmem:[#allocation2 + $0x1] sm:$0x1] %vm5645_vm12, %v5600_v19 }
 0x32d   : > { %v5598_v38 = vpop.permute.xlu0 %5597 }
 0x32e   : > { %5646 = vst.msk [vmem:[#allocation2] sm:$0x1] %vm5645_vm12, %v5598_v38 }
 0x32f   : > { %v5604_v57 = vpop.permute.xlu1 %5603 }
 0x330   : > { %5649 = vst.msk [vmem:[#allocation2 + $0x3] sm:$0x1] %vm5645_vm12, %v5604_v57 }
 0x331   : > { %v5602_v43 = vpop.permute.xlu0 %5601 }
 0x332   : > { %5648 = vst.msk [vmem:[#allocation2 + $0x2] sm:$0x1] %vm5645_vm12, %v5602_v43 }
 0x333   : > { %v5608_v8 = vpop.permute.xlu1 %5607 }
 0x334   : > { %5651 = vst.msk [vmem:[#allocation2 + $0x5] sm:$0x1] %vm5645_vm12, %v5608_v8 }
 0x335   : > { %v5606_v9 = vpop.permute.xlu0 %5605 }
 0x336   : > { %5650 = vst.msk [vmem:[#allocation2 + $0x4] sm:$0x1] %vm5645_vm12, %v5606_v9 }
 0x337   : > { %v5612_v25 = vpop.permute.xlu1 %5611 }
 0x338   : > { %5653 = vst.msk [vmem:[#allocation2 + $0x7] sm:$0x1] %vm5645_vm12, %v5612_v25 }
 0x339   : > { %v5610_v20 = vpop.permute.xlu0 %5609 }
 0x33a   : > { %5652 = vst.msk [vmem:[#allocation2 + $0x6] sm:$0x1] %vm5645_vm12, %v5610_v20 }
 0x33b   : > { %v5616_v26 = vpop.permute.xlu1 %5615 }
 0x33c   : > { %5655 = vst.msk [vmem:[#allocation2 + $0x9] sm:$0x1] %vm5645_vm12, %v5616_v26 }
 0x33d   : > { %v5614_v13 = vpop.permute.xlu0 %5613 }
 0x33e   : > { %5654 = vst.msk [vmem:[#allocation2 + $0x8] sm:$0x1] %vm5645_vm12, %v5614_v13 }
 0x33f   : > { %v5620_v17 = vpop.permute.xlu1 %5619 }
 0x340   : > { %5657 = vst.msk [vmem:[#allocation2 + $0xb] sm:$0x1] %vm5645_vm12, %v5620_v17 }
 0x341   : > { %v5618_v42 = vpop.permute.xlu0 %5617 }
 0x342   : > { %5656 = vst.msk [vmem:[#allocation2 + $0xa] sm:$0x1] %vm5645_vm12, %v5618_v42 }
 0x343   : > { %v5624_v15 = vpop.permute.xlu1 %5623 }
 0x344   : > { %5659 = vst.msk [vmem:[#allocation2 + $0xd] sm:$0x1] %vm5645_vm12, %v5624_v15 }
 0x345   : > { %v5622_v45 = vpop.permute.xlu0 %5621 }
 0x346   : > { %5658 = vst.msk [vmem:[#allocation2 + $0xc] sm:$0x1] %vm5645_vm12, %v5622_v45 }
 0x347   : > { %v5628_v50 = vpop.permute.xlu1 %5627 }
 0x348   : > { %5661 = vst.msk [vmem:[#allocation2 + $0xf] sm:$0x1] %vm5645_vm12, %v5628_v50 }
 0x349   : > { %v5626_v5 = vpop.permute.xlu0 %5625 }
 0x34a   : > { %5660 = vst.msk [vmem:[#allocation2 + $0xe] sm:$0x1] %vm5645_vm12, %v5626_v5 }
 0x34b   : > { %v5969_v22 = vpop.permute.xlu1 %5968 }
 0x34c   : > { %6016 = vst.msk [vmem:[#allocation2 + $0x1] sm:$0x1] %vm6014_vm13, %v5969_v22 }
 0x34d   : > { %v5967_v54 = vpop.permute.xlu0 %5966 }
 0x34e   : > { %6015 = vst.msk [vmem:[#allocation2] sm:$0x1] %vm6014_vm13, %v5967_v54  ;;  %v7182_v54 = vld [vmem:[%s9262_s2] ss:$0 sm:$0xff] }
 0x34f   : > { %v5973_v47 = vpop.permute.xlu1 %5972 }
 0x350   : > { %6018 = vst.msk [vmem:[#allocation2 + $0x3] sm:$0x1] %vm6014_vm13, %v5973_v47 }
 0x351   : > { %v5971_v23 = vpop.permute.xlu0 %5970 }
 0x352   : > { %6017 = vst.msk [vmem:[#allocation2 + $0x2] sm:$0x1] %vm6014_vm13, %v5971_v23 }
 0x353   : > { %v5977_v2 = vpop.permute.xlu1 %5976  ;;  %v6032_v14 = vld [vmem:[#allocation2 + $0x1] sm:$0x1] }
 0x354   : > { %6020 = vst.msk [vmem:[#allocation2 + $0x5] sm:$0x1] %vm6014_vm13, %v5977_v2 }
 0x355   : > { %v5975_v56 = vpop.permute.xlu0 %5974  ;;  %v6031_v31 = vld [vmem:[#allocation2] sm:$0x1] }
 0x356   : > { %6019 = vst.msk [vmem:[#allocation2 + $0x4] sm:$0x1] %vm6014_vm13, %v5975_v56  ;;  %v6085_v28 = vcombine.low %v6031_v31, %v6032_v14 }
 0x357   : > { %v5981_v61 = vpop.permute.xlu1 %5980  ;;  %v6034_v41 = vld [vmem:[#allocation2 + $0x3] sm:$0x1] }
 0x358   : > { %6022 = vst.msk [vmem:[#allocation2 + $0x7] sm:$0x1] %vm6014_vm13, %v5981_v61  ;;  %v6095_v39 = vrot.slane %v6085_v28, %v6094_v59 }
 0x359   : > { %v5979_v36 = vpop.permute.xlu0 %5978  ;;  %v6033_v0 = vld [vmem:[#allocation2 + $0x2] sm:$0x1] }
 0x35a   : > { %6021 = vst.msk [vmem:[#allocation2 + $0x6] sm:$0x1] %vm6014_vm13, %v5979_v36  ;;  %v6086_v27 = vcombine.low %v6033_v0, %v6034_v41 }
 0x35b   : > { %v5985_v29 = vpop.permute.xlu1 %5984  ;;  %v6036_v52 = vld [vmem:[#allocation2 + $0x5] sm:$0x1] }
 0x35c   : > { %6024 = vst.msk [vmem:[#allocation2 + $0x9] sm:$0x1] %vm6014_vm13, %v5985_v29  ;;  %v6102_v32 = vrot.slane %v6086_v27, %v6094_v59 }
 0x35d   : > { %v5983_v6 = vpop.permute.xlu0 %5982  ;;  %v6035_v35 = vld [vmem:[#allocation2 + $0x4] sm:$0x1] }
 0x35e   : > { %6023 = vst.msk [vmem:[#allocation2 + $0x8] sm:$0x1] %vm6014_vm13, %v5983_v6  ;;  %v6087_v4 = vcombine.low %v6035_v35, %v6036_v52  ;;  %v6117_v40 = vcombine.low %v6095_v39, %v6102_v32 }
 0x35f   : > { %v5989_v58 = vpop.permute.xlu1 %5988  ;;  %v6038_v21 = vld [vmem:[#allocation2 + $0x7] sm:$0x1] }
 0x360   : > { %6026 = vst.msk [vmem:[#allocation2 + $0xb] sm:$0x1] %vm6014_vm13, %v5989_v58  ;;  %v6109_v37 = vrot.slane %v6087_v4, %v6094_v59  ;;  %v6125_v49 = vrot.slane %v6117_v40, %v6094_v59 }
 0x361   : > { %v5987_v34 = vpop.permute.xlu0 %5986  ;;  %v6037_v60 = vld [vmem:[#allocation2 + $0x6] sm:$0x1] }
 0x362   : > { %6025 = vst.msk [vmem:[#allocation2 + $0xa] sm:$0x1] %vm6014_vm13, %v5987_v34  ;;  %v6088_v55 = vcombine.low %v6037_v60, %v6038_v21 }
 0x363   : > { %v5993_v24 = vpop.permute.xlu1 %5992  ;;  %v6040_v10 = vld [vmem:[#allocation2 + $0x9] sm:$0x1] }
 0x364   : > { %v6116_v7 = vrot.slane %v6088_v55, %v6094_v59  ;;  %6028 = vst.msk [vmem:[#allocation2 + $0xd] sm:$0x1] %vm6014_vm13, %v5993_v24 }
 0x365   : > { %v5991_v12 = vpop.permute.xlu0 %5990  ;;  %v6039_v1 = vld [vmem:[#allocation2 + $0x8] sm:$0x1] }
 0x366   : > { %6027 = vst.msk [vmem:[#allocation2 + $0xc] sm:$0x1] %vm6014_vm13, %v5991_v12  ;;  %v6118_v51 = vcombine.low %v6109_v37, %v6116_v7  ;;  %v6134_v57 = vcombine.low %v6039_v1, %v6040_v10 }
 0x367   : > { %v5997_v44 = vpop.permute.xlu1 %5996  ;;  %v6042_v30 = vld [vmem:[#allocation2 + $0xb] sm:$0x1] }
 0x368   : > { %v6132_v53 = vrot.slane %v6118_v51, %v6094_v59  ;;  %6030 = vst.msk [vmem:[#allocation2 + $0xf] sm:$0x1] %vm6014_vm13, %v5997_v44  ;;  %v6144_v26 = vrot.slane %v6134_v57, %v6094_v59 }
 0x369   : > { %v5995_v63 = vpop.permute.xlu0 %5994  ;;  %v6041_v46 = vld [vmem:[#allocation2 + $0xa] sm:$0x1] }
 0x36a   : > { %6029 = vst.msk [vmem:[#allocation2 + $0xe] sm:$0x1] %vm6014_vm13, %v5995_v63  ;;  %v6133_v62 = vcombine.low %v6125_v49, %v6132_v53  ;;  %v6135_v18 = vcombine.low %v6041_v46, %v6042_v30 }
 0x36b   : > { %v6044_v38 = vld [vmem:[#allocation2 + $0xd] sm:$0x1] }
 0x36c   : > { %7244 = vmatprep.mubr.msk.bf16.mxu0 %vm6228_vm14, %v6133_v62  ;;  %v6151_v9 = vrot.slane %v6135_v18, %v6094_v59 }
 0x36d   : > { %v6043_v19 = vld [vmem:[#allocation2 + $0xc] sm:$0x1] }
 0x36e   : > { %v6136_v8 = vcombine.low %v6043_v19, %v6044_v38  ;;  %v6166_v42 = vcombine.low %v6144_v26, %v6151_v9 }
 0x36f   : > { %v6046_v43 = vld [vmem:[#allocation2 + $0xf] sm:$0x1] }
 0x370   : > { %v6158_v13 = vrot.slane %v6136_v8, %v6094_v59  ;;  %v6174_v45 = vrot.slane %v6166_v42, %v6094_v59 }
 0x371   : > { %v6045_v25 = vld [vmem:[#allocation2 + $0xe] sm:$0x1] }
 0x372   : > { %v6137_v20 = vcombine.low %v6045_v25, %v6046_v43 }
 0x374   : > { %v6165_v17 = vrot.slane %v6137_v20, %v6094_v59 }
 0x376   : > { %v6167_v15 = vcombine.low %v6158_v13, %v6165_v17 }
 0x378   : > { %v6181_v50 = vrot.slane %v6167_v15, %v6094_v59 }
 0x37a   : > { %v6182_v5 = vcombine.low %v6174_v45, %v6181_v50 }
 0x37c   : > { %7245 = vmatmul.mubr.msk.bf16.vlgmr.msra.gmra.mrb[0].mxu0 %vm6228_vm14, %v6182_v5 }
 0x44f   : > { %v7246_v22 = vpop.f32.mrb[0].mxu0 }
 0x450   : > { %v6273_v47 = vpop.f32.mrb[1].mxu0  ;;  %v6282_v2 = vadd.f32 %v7246_v22, %v7182_v54 }
 0x451   : > { %v7247_v23 = vpop.f32.mrb[2].mxu0  ;;  %v6274_v11 = vadd.f32 %v7182_v54, %v6273_v47 }
 0x452   : > { %v6285_v56 = vadd.f32 %v7247_v23, %v7182_v54  ;;  %v6276_v33 = vpop.f32.mrb[3].mxu0 }
 0x453   : > { %v6277_v16 = vadd.f32 %v7182_v54, %v6276_v33 }
 0x454   : > { %v7215_v61 = vpack.c.bf16 %v6285_v56, %v6282_v2 }
 0x455   : > { %v7210_v36 = vpack.c.bf16 %v6277_v16, %v6274_v11 }
 0x456   : > { %7217 = vst [vmem:[%s177_s18 + $0x8] sm:$0xff] %v7215_v61  }
 0x457   : > { %7211 = vst [vmem:[%s177_s18] sm:$0xff] %v7210_v36  }
 0x458   : > { %7334 = shalt.err (!%p7331_p5)
}
 0x459   : > { %s7335_s5 = scalar_lea.hbm %s9212_s27, 256  ;;  %s7339_s8 = scalar_lea.hbm %s9263_s3, 512 }
 0x45a   : > { %p7336_p6 = scmp.ne.s32.totalorder %s9212_s27, %s7335_s5  ;;  %p7340_p10 = scmp.lt.u32.totalorder %s9212_s27, %s9263_s3 }
 0x45b   : > { %p7341_p11 = scmp.lt.u32.totalorder %s7339_s8, %s7335_s5  ;;  %p7343_p13 = scmp.lt.u32.totalorder %s7335_s5, %s9212_s27 }
 0x45c   : > { %p7337_p7 = pnand %p7336_p6, %p7470_p4 }
 0x45d   : > { %p7342_p12 = por %p7341_p11, %p7340_p10 }
 0x45e   : > { %p7338_p9 = pneg %p7337_p7 }
 0x45f   : > { %p7344_p0 = por %p7343_p13, %p7342_p12 }
 0x461   : > { %p7345_p1 = pnand %p7344_p0, %p7338_p9 }
 0x463   : > { %7348 = shalt.err (!%p7345_p1)
}
 0x464   : > { %s7408_s11 = smov 64   ;;  %s7409_s18 = smov 4  }
 0x465   : > { %7250 = dma.vmem_to_hbm [thread:$0]  (%p7470_p4), %s9207_s19, 256, %s9212_s27, %s9214_s15, %s7408_s11, %s7408_s11, %s7409_s18  }
 0x466 PF: > { %p7256_p2 = scmp.ge.s32.totalorder %s7399_s17, 2  ;;  %s6339_s21 = sand.u32 1, %s7379_s12  }
 0x467   : > { %s6340_s23 = scalar_lea.sflag [#allocation4], %s6339_s21 }
 0x468   : > { %p7253_p3 = pnand %p7256_p2, %p7477_p8 }
 0x46a   : > { %7374 = dma.done.wait (!%p7253_p3), %s6340_s23, 256  }
 0x46b   : > { %7376 = vsyncadd (!%p7253_p3), %s6340_s23, 4294967040  ;;  %s16_s17 = sadd.s32 1, %s7399_s17   ;;  %s9268_s12 = smov %s7383_s13 }
 0x46c   : > { %p13_p5 = scmp.ge.s32.totalorder %s16_s17, 4   ;;  %s9269_s13 = smov %s7387_s14 }
 0x46d   : > { %s9270_s14 = smov %s7483_s25  ;;  %s9271_s15 = smov %s7395_s16 }
 0x46e   : > { %s9272_s16 = smov %s9274_s20  ;;  %15 = sbr.rel (!%p13_p5) target bundleno = 4 (0x4), region = 70 }
 0x475   :  { %6345 = vsyncpa [#allocation4], 1 }
 0x476   :  { %6347 = vsyncpa [#allocation4 + $0x1], 1 }

</bundles_post_ra>
